<compile_context>
chip_gen: v6e
topology: v6e:2x2x1
jax: 0.10.0
libtpu: 0.0.40
codegen_flags: <defaults>
</compile_context>

<pallas_src>
import functools

import jax
import jax.numpy as jnp
from jax.experimental import pallas as pl
from jax.experimental.pallas import tpu as pltpu

BN_EPS = 1e-5
NEG_SLOPE = 0.2          # LeakyReLU slope used by conv_fuse / label_conv
NUM_CLASSES = 50         # part_num default
CLS_PAD = 128            # lane-dense padded class dim
NUM_SHAPES = 16
IN_CHANNELS = 6          # 3 xyz + 3 normals (normal_channel=True)
PAD_IN = 8               # padded input channel dim (aligned DMA)
EMBED = 128
OUT_CHANNELS = [128, 128, 128]
FUSE_OUT = 1024
LABEL_CH = 64


# --------------------------------------------------------------------------
# Kernel 1: embedding -> encoder stack -> conv_fuse, plus running global
# max / sum over the N (point) axis.  Grid = (B, C, N // (C*tile_n)),
# N-tile axis last ("arbitrary"); C is a megacore split of the N reduction.
# --------------------------------------------------------------------------
def _encode_fuse_kernel(pts_ref,
                        we1_ref, be1_ref, we2_ref, be2_ref,
                        wb1_ref, bb1_ref, wb2_ref, bb2_ref, wb3_ref, bb3_ref,
                        wf_ref, bf_ref,
                        fuse_ref, xmax_ref, xsum_ref, *, act_dtype):
    f32, bf16 = jnp.float32, jnp.bfloat16
    nt = pl.program_id(2)

    def dense(v, w_ref, b_ref):
        # bf16 MXU matmul, f32 accumulation; bias add in f32.
        return jnp.dot(v.astype(bf16), w_ref[...],
                       preferred_element_type=f32) + b_ref[...]

    def relu(v):
        # keep activations bf16 on v6e/v7x (bf16 VALU), f32 on v5e.
        return jnp.maximum(v, 0.0).astype(act_dtype)

    leaky = lambda v: jnp.where(v >= 0.0, v, NEG_SLOPE * v)

    x = pts_ref[0]                                               # [TN, 8] bf16

    # ---- input_embedding: 2x (Conv1d(k=1, bias=False) + BN + ReLU) --------
    e = relu(dense(x, we1_ref, be1_ref))                         # [TN, 128]
    e = relu(dense(e, we2_ref, be2_ref))                         # [TN, 128]

    # ---- encoder (3 blocks) ------------------------------------------------
    # TODO(synk): PVDSA_Res internals (voxel branch + knn attention) were not
    # provided with the module; stand-in is pointwise conv + BN + ReLU with a
    # residual add (in == out == 128).
    enc1 = relu(dense(e,    wb1_ref, bb1_ref)) + e               # [TN, 128]
    enc2 = relu(dense(enc1, wb2_ref, bb2_ref)) + enc1            # [TN, 128]
    enc3 = relu(dense(enc2, wb3_ref, bb3_ref)) + enc2            # [TN, 128]

    # ---- conv_fuse: single K=384 contraction on concat([enc1,enc2,enc3]) ---
    cat = jnp.concatenate([enc1, enc2, enc3], axis=-1)           # [TN, 384]
    fuse_f32 = leaky(jnp.dot(cat.astype(bf16), wf_ref[...],
                             preferred_element_type=f32) + bf_ref[...])  # [TN,1024]

    fuse_ref[0] = fuse_f32.astype(fuse_ref.dtype)

    # ---- running per-core global max / sum over the N axis ----------------
    @pl.when(nt == 0)
    def _():
        xmax_ref[0] = jnp.full((1, FUSE_OUT), -jnp.inf, f32)
        xsum_ref[0] = jnp.zeros((1, FUSE_OUT), f32)

    xmax_ref[0] = jnp.maximum(xmax_ref[0],
                              jnp.max(fuse_f32, axis=0, keepdims=True))
    xsum_ref[0] = xsum_ref[0] + jnp.sum(fuse_f32, axis=0, keepdims=True)


# --------------------------------------------------------------------------
# Kernel 2: per-point classifier + log_softmax.  Grid = (B, N // tile_n).
# The per-batch global features are pre-folded into bc1_eff in the wrapper.
# --------------------------------------------------------------------------
def _classifier_kernel(fuse_ref, bc1_ref,
                       wc1_ref, wc2_ref, bc2_ref, wc3_ref, bc3_ref,
                       out_ref):
    f32, bf16 = jnp.float32, jnp.bfloat16
    relu = lambda v: jnp.maximum(v, 0.0)

    # classifier conv1 (local rows) + per-batch effective bias (global rows
    # + label_conv output + folded BN bias), ReLU.
    c1 = relu(jnp.dot(fuse_ref[0], wc1_ref[...],
                      preferred_element_type=f32) + bc1_ref[0])       # [TN,512]

    # nn.Dropout(0.5) -> identity in eval mode.
    c2 = relu(jnp.dot(c1.astype(bf16), wc2_ref[...],
                      preferred_element_type=f32) + bc2_ref[...])     # [TN,256]
    logits = jnp.dot(c2.astype(bf16), wc3_ref[...],
                     preferred_element_type=f32) + bc3_ref[...]       # [TN,128]

    # log_softmax over the (padded) class dim.  Pad lanes carry bias -1e9, so
    # exp() underflows to 0 there and the real 50 classes are exact (f32).
    m = jnp.max(logits, axis=-1, keepdims=True)
    z = logits - m
    lse = jnp.log(jnp.sum(jnp.exp(z), axis=-1, keepdims=True))
    out_ref[0] = (z - lse).astype(out_ref.dtype)


# --------------------------------------------------------------------------
# Parameter construction (deterministic, BN folded for eval mode).
# --------------------------------------------------------------------------
def _fold_bn(w, gamma, beta, conv_bias=None, eps=BN_EPS):
    # eval-mode BN with running_mean=0, running_var=1 (fresh BN statistics).
    scale = gamma / jnp.sqrt(1.0 + eps)
    w_eff = w * scale[None, :]
    b = beta if conv_bias is None else conv_bias * scale + beta
    return w_eff, b.reshape(1, -1).astype(jnp.float32)


def make_params(key):
    keys = iter(jax.random.split(key, 40))
    normal = lambda shape: jax.random.normal(next(keys), shape, jnp.float32)

    def conv_bn(cin, cout, conv_bias=False):
        w = normal((cin, cout)) / jnp.sqrt(float(cin))
        cb = 0.01 * normal((cout,)) if conv_bias else None
        gamma = 1.0 + 0.1 * normal((cout,))
        beta = 0.05 * normal((cout,))
        w, b = _fold_bn(w, gamma, beta, cb)
        return w.astype(jnp.bfloat16), b          # bf16 weights, f32 bias

    p = {}
    we1, p["be1"] = conv_bn(IN_CHANNELS, EMBED)
    p["we1"] = jnp.pad(we1, ((0, PAD_IN - IN_CHANNELS), (0, 0)))   # 6 -> 8 rows
    p["we2"], p["be2"] = conv_bn(EMBED, EMBED)
    p["wb1"], p["bb1"] = conv_bn(EMBED, OUT_CHANNELS[0])
    p["wb2"], p["bb2"] = conv_bn(OUT_CHANNELS[0], OUT_CHANNELS[1])
    p["wb3"], p["bb3"] = conv_bn(OUT_CHANNELS[1], OUT_CHANNELS[2])
    p["wf"], p["bf"] = conv_bn(sum(OUT_CHANNELS), FUSE_OUT)
    p["wl"], p["bl"] = conv_bn(NUM_SHAPES, LABEL_CH)

    wc1, p["bc1"] = conv_bn(FUSE_OUT * 3 + LABEL_CH, 512, conv_bias=True)
    p["wc1_local"] = wc1[:FUSE_OUT]                # rows for per-point fuse
    p["wc1_global"] = wc1[FUSE_OUT:]               # rows for [x_max|x_avg|label]
    p["wc2"], p["bc2"] = conv_bn(512, 256, conv_bias=True)

    # final conv: bias, no BN; pad classes 50 -> 128 (zero weights, -1e9 bias).
    wc3 = normal((256, NUM_CLASSES)) / jnp.sqrt(256.0)
    bc3 = 0.01 * normal((NUM_CLASSES,))
    p["wc3"] = jnp.pad(wc3, ((0, 0), (0, CLS_PAD - NUM_CLASSES))).astype(jnp.bfloat16)
    p["bc3"] = jnp.concatenate(
        [bc3, jnp.full((CLS_PAD - NUM_CLASSES,), -1e9, jnp.float32)]).reshape(1, -1)
    return p


# --------------------------------------------------------------------------
# Hardware-aware knobs.
# --------------------------------------------------------------------------
def _device_kind():
    try:
        return jax.devices()[0].device_kind.lower()
    except Exception:
        return ""


def _vmem_limit_bytes():
    cap = 128 << 20
    try:
        info = pltpu.get_tpu_info()
        cap = int(getattr(info, "vmem_capacity_bytes", cap))
    except Exception:
        pass
    # leave ~25% headroom for Mosaic internals / double-buffered I/O.
    return max(32 << 20, min(96 << 20, (cap * 3) // 4))


def _pick_tile_n(n, requested=None):
    if requested is not None:
        assert n % requested == 0, "N must be a multiple of tile_n"
        return requested
    cap = min(n, 1024)
    for t in range(cap, 0, -1):
        if n % t == 0 and (t % 8 == 0 or t == n):
            return t
    return n


# --------------------------------------------------------------------------
# Wrapper: layout glue + two pallas_calls + per-batch global path in JAX.
# --------------------------------------------------------------------------
def get_model_forward(points, label, params, *, tile_n=None):
    """points: [B, 6, N] (NCW); label: [B, 1, 16] one-hot -> ([B, N, 50], None)."""
    B, _, N = points.shape
    tile_n = _pick_tile_n(N, tile_n)
    nt_total = N // tile_n

    kind = _device_kind()
    act_dtype = jnp.bfloat16 if ("v6" in kind or "v7" in kind) else jnp.float32
    # v7x has 2 TensorCores per chip: split the N reduction across them.
    C = 2 if ("v7" in kind and nt_total % 2 == 0) else 1
    ntc = nt_total // C
    vmem_limit = _vmem_limit_bytes()

    # channels -> lanes; pad 6 -> 8 channels; bf16 input halves the input DMA.
    pts = jnp.transpose(points[:, :IN_CHANNELS, :], (0, 2, 1))          # [B,N,6]
    pts = jnp.pad(pts, ((0, 0), (0, 0), (0, PAD_IN - IN_CHANNELS)))     # [B,N,8]
    pts = pts.astype(jnp.bfloat16)
    p = params

    def const_spec(arr, ngrid):
        zeros = (0,) * arr.ndim
        if ngrid == 3:
            return pl.BlockSpec(arr.shape, lambda b, c, n: zeros)
        return pl.BlockSpec(arr.shape, lambda b, n: zeros)

    # -------------------- kernel 1: encode + fuse + partial max/sum ---------
    enc_w = [p["we1"], p["be1"], p["we2"], p["be2"],
             p["wb1"], p["bb1"], p["wb2"], p["bb2"], p["wb3"], p["bb3"],
             p["wf"], p["bf"]]
    enc_bytes = sum(int(a.size) * a.dtype.itemsize for a in enc_w)
    k1_macs_per_pt = (PAD_IN * EMBED + EMBED * EMBED
                      + 3 * EMBED * EMBED + sum(OUT_CHANNELS) * FUSE_OUT)
    k1_cost = pl.CostEstimate(
        flops=2 * B * N * k1_macs_per_pt,
        transcendentals=0,
        bytes_accessed=int(B * N * PAD_IN * 2 + B * N * FUSE_OUT * 2
                           + 2 * B * C * FUSE_OUT * 4 + enc_bytes))

    fuse, xmax_p, xsum_p = pl.pallas_call(
        functools.partial(_encode_fuse_kernel, act_dtype=act_dtype),
        out_shape=(
            jax.ShapeDtypeStruct((B, N, FUSE_OUT), jnp.bfloat16),
            jax.ShapeDtypeStruct((B * C, 1, FUSE_OUT), jnp.float32),
            jax.ShapeDtypeStruct((B * C, 1, FUSE_OUT), jnp.float32),
        ),
        grid_spec=pltpu.PrefetchScalarGridSpec(
            num_scalar_prefetch=0,
            grid=(B, C, ntc),
            in_specs=[pl.BlockSpec((1, tile_n, PAD_IN),
                                   lambda b, c, n: (b, c * ntc + n, 0))]
                     + [const_spec(w, 3) for w in enc_w],
            out_specs=(
                pl.BlockSpec((1, tile_n, FUSE_OUT),
                             lambda b, c, n: (b, c * ntc + n, 0)),
                pl.BlockSpec((1, 1, FUSE_OUT), lambda b, c, n: (b * C + c, 0, 0)),
                pl.BlockSpec((1, 1, FUSE_OUT), lambda b, c, n: (b * C + c, 0, 0)),
            ),
        ),
        compiler_params=pltpu.CompilerParams(
            dimension_semantics=("parallel", "parallel", "arbitrary"),
            vmem_limit_bytes=vmem_limit),
        cost_estimate=k1_cost,
    )(pts, *enc_w)

    # -------------------- per-batch global path (hoisted out of kernel 2) ---
    x_max = jnp.max(xmax_p.reshape(B, C, FUSE_OUT), axis=1)              # [B,1024]
    x_avg = jnp.sum(xsum_p.reshape(B, C, FUSE_OUT), axis=1) * (1.0 / N)  # [B,1024]

    onehot = label.reshape(B, NUM_SHAPES).astype(jnp.bfloat16)           # [B,16]
    lab = jnp.dot(onehot, p["wl"], preferred_element_type=jnp.float32) + p["bl"]
    lab = jnp.where(lab >= 0.0, lab, NEG_SLOPE * lab)                    # [B,64]

    # concat order matches torch.cat((x, x_max, x_avg, label), dim=1).
    grow = jnp.concatenate([x_max, x_avg, lab], axis=-1)                 # [B,2112]
    g = jnp.dot(grow.astype(jnp.bfloat16), p["wc1_global"],
                preferred_element_type=jnp.float32)                      # [B,512]
    bc1_eff = (g + p["bc1"]).reshape(B, 1, 512).astype(jnp.float32)      # [B,1,512]

    # -------------------- kernel 2: per-point classifier + log_softmax ------
    cls_w = [p["wc1_local"], p["wc2"], p["bc2"], p["wc3"], p["bc3"]]
    cls_bytes = (sum(int(a.size) * a.dtype.itemsize for a in cls_w)
                 + B * 512 * 4)
    k2_macs_per_pt = FUSE_OUT * 512 + 512 * 256 + 256 * CLS_PAD
    k2_cost = pl.CostEstimate(
        flops=2 * B * N * k2_macs_per_pt,
        transcendentals=B * N * (CLS_PAD + 1),
        bytes_accessed=int(B * N * FUSE_OUT * 2 + B * N * CLS_PAD * 4 + cls_bytes))

    out = pl.pallas_call(
        _classifier_kernel,
        out_shape=jax.ShapeDtypeStruct((B, N, CLS_PAD), jnp.float32),
        grid_spec=pltpu.PrefetchScalarGridSpec(
            num_scalar_prefetch=0,
            grid=(B, nt_total),
            in_specs=[
                pl.BlockSpec((1, tile_n, FUSE_OUT), lambda b, n: (b, n, 0)),
                pl.BlockSpec((1, 1, 512), lambda b, n: (b, 0, 0)),
            ] + [const_spec(w, 2) for w in cls_w],
            out_specs=pl.BlockSpec((1, tile_n, CLS_PAD), lambda b, n: (b, n, 0)),
        ),
        compiler_params=pltpu.CompilerParams(
            dimension_semantics=("parallel", "parallel"),
            vmem_limit_bytes=vmem_limit),
        cost_estimate=k2_cost,
    )(fuse, bc1_eff, *cls_w)

    # Matches get_model.forward: log_softmax(x, dim=1).transpose(1, 2), None
    return out[:, :, :NUM_CLASSES], None


if __name__ == "__main__":
    key = jax.random.PRNGKey(0)
    kp, kx = jax.random.split(key)

    B, N = 2, 128
    points = jax.random.normal(kx, (B, IN_CHANNELS, N), jnp.float32)
    shape_ids = jnp.array([0, 3], dtype=jnp.int32)
    label = jax.nn.one_hot(shape_ids, NUM_SHAPES, dtype=jnp.float32)[:, None, :]

    params = make_params(kp)

    out, trans_feat = get_model_forward(points, label, params)
    out = jax.block_until_ready(out)

    assert out.shape == (B, N, NUM_CLASSES), out.shape
    assert trans_feat is None
    # log_softmax sanity: probabilities per point sum to 1 over the 50 classes
    probs_sum = jnp.exp(out).sum(axis=-1)
    assert bool(jnp.allclose(probs_sum, 1.0, atol=1e-3))
    print("KERNEL_OK")
</pallas_src>

<mosaic_0001>
module attributes {stable_mosaic.version = 11 : i64} {
  func.func @_encode_fuse_kernel(%arg0: i32, %arg1: i32, %arg2: i32, %arg3: memref<1x128x8xbf16, #tpu.memory_space<vmem>>, %arg4: memref<8x128xbf16, #tpu.memory_space<vmem>>, %arg5: memref<1x128xf32, #tpu.memory_space<vmem>>, %arg6: memref<128x128xbf16, #tpu.memory_space<vmem>>, %arg7: memref<1x128xf32, #tpu.memory_space<vmem>>, %arg8: memref<128x128xbf16, #tpu.memory_space<vmem>>, %arg9: memref<1x128xf32, #tpu.memory_space<vmem>>, %arg10: memref<128x128xbf16, #tpu.memory_space<vmem>>, %arg11: memref<1x128xf32, #tpu.memory_space<vmem>>, %arg12: memref<128x128xbf16, #tpu.memory_space<vmem>>, %arg13: memref<1x128xf32, #tpu.memory_space<vmem>>, %arg14: memref<384x1024xbf16, #tpu.memory_space<vmem>>, %arg15: memref<1x1024xf32, #tpu.memory_space<vmem>>, %arg16: memref<1x128x1024xbf16, #tpu.memory_space<vmem>>, %arg17: memref<1x1x1024xf32, #tpu.memory_space<vmem>>, %arg18: memref<1x1x1024xf32, #tpu.memory_space<vmem>>) attributes {dimension_semantics = [#tpu.dimension_semantics<parallel>, #tpu.dimension_semantics<parallel>, #tpu.dimension_semantics<arbitrary>], iteration_bounds = array<i64: 2, 1, 1>, scalar_prefetch = 0 : i64, scratch_operands = 0 : i64, tpu.core_type = #tpu.core_type<tc>, window_params = [{transform_indices = @transform_0, window_bounds = array<i64: 1, 128, 8>}, {pipeline_mode = #tpu.pipeline_mode<synchronous>, transform_indices = @transform_1, window_bounds = array<i64: 8, 128>}, {pipeline_mode = #tpu.pipeline_mode<synchronous>, transform_indices = @transform_2, window_bounds = array<i64: 1, 128>}, {pipeline_mode = #tpu.pipeline_mode<synchronous>, transform_indices = @transform_3, window_bounds = array<i64: 128, 128>}, {pipeline_mode = #tpu.pipeline_mode<synchronous>, transform_indices = @transform_4, window_bounds = array<i64: 1, 128>}, {pipeline_mode = #tpu.pipeline_mode<synchronous>, transform_indices = @transform_5, window_bounds = array<i64: 128, 128>}, {pipeline_mode = #tpu.pipeline_mode<synchronous>, transform_indices = @transform_6, window_bounds = array<i64: 1, 128>}, {pipeline_mode = #tpu.pipeline_mode<synchronous>, transform_indices = @transform_7, window_bounds = array<i64: 128, 128>}, {pipeline_mode = #tpu.pipeline_mode<synchronous>, transform_indices = @transform_8, window_bounds = array<i64: 1, 128>}, {pipeline_mode = #tpu.pipeline_mode<synchronous>, transform_indices = @transform_9, window_bounds = array<i64: 128, 128>}, {pipeline_mode = #tpu.pipeline_mode<synchronous>, transform_indices = @transform_10, window_bounds = array<i64: 1, 128>}, {pipeline_mode = #tpu.pipeline_mode<synchronous>, transform_indices = @transform_11, window_bounds = array<i64: 384, 1024>}, {pipeline_mode = #tpu.pipeline_mode<synchronous>, transform_indices = @transform_12, window_bounds = array<i64: 1, 1024>}, {transform_indices = @transform_13, window_bounds = array<i64: 1, 128, 1024>}, {transform_indices = @transform_14, window_bounds = array<i64: 1, 1, 1024>}, {transform_indices = @transform_15, window_bounds = array<i64: 1, 1, 1024>}]} {
    %c0 = arith.constant 0 : index
    %c0_0 = arith.constant 0 : index
    %c0_1 = arith.constant 0 : index
    %0 = vector.load %arg3[%c0, %c0_0, %c0_1] : memref<1x128x8xbf16, #tpu.memory_space<vmem>>, vector<1x128x8xbf16>
    %1 = vector.shape_cast %0 : vector<1x128x8xbf16> to vector<128x8xbf16>
    %c0_2 = arith.constant 0 : index
    %c0_3 = arith.constant 0 : index
    %2 = vector.load %arg4[%c0_2, %c0_3] : memref<8x128xbf16, #tpu.memory_space<vmem>>, vector<8x128xbf16>
    %cst = arith.constant dense<0.000000e+00> : vector<128x128xf32>
    %3 = tpu.matmul %1, %2, %cst {dimension_numbers = #tpu.dot_dimension_numbers<[1], [0], [0], [1], [0, 0, 1, 1], [], []>} : vector<128x8xbf16>, vector<8x128xbf16>, vector<128x128xf32> -> vector<128x128xf32>
    %c0_4 = arith.constant 0 : index
    %c0_5 = arith.constant 0 : index
    %4 = vector.load %arg5[%c0_4, %c0_5] : memref<1x128xf32, #tpu.memory_space<vmem>>, vector<1x128xf32>
    %5 = vector.broadcast %4 : vector<1x128xf32> to vector<128x128xf32>
    %6 = arith.addf %3, %5 : vector<128x128xf32>
    %cst_6 = arith.constant 0.000000e+00 : f32
    %7 = vector.broadcast %cst_6 : f32 to vector<128x128xf32>
    %8 = arith.maximumf %6, %7 : vector<128x128xf32>
    %9 = arith.truncf %8 : vector<128x128xf32> to vector<128x128xbf16>
    %c0_7 = arith.constant 0 : index
    %c0_8 = arith.constant 0 : index
    %10 = vector.load %arg6[%c0_7, %c0_8] : memref<128x128xbf16, #tpu.memory_space<vmem>>, vector<128x128xbf16>
    %cst_9 = arith.constant dense<0.000000e+00> : vector<128x128xf32>
    %11 = tpu.matmul %9, %10, %cst_9 {dimension_numbers = #tpu.dot_dimension_numbers<[1], [0], [0], [1], [0, 0, 1, 1], [], []>} : vector<128x128xbf16>, vector<128x128xbf16>, vector<128x128xf32> -> vector<128x128xf32>
    %c0_10 = arith.constant 0 : index
    %c0_11 = arith.constant 0 : index
    %12 = vector.load %arg7[%c0_10, %c0_11] : memref<1x128xf32, #tpu.memory_space<vmem>>, vector<1x128xf32>
    %13 = vector.broadcast %12 : vector<1x128xf32> to vector<128x128xf32>
    %14 = arith.addf %11, %13 : vector<128x128xf32>
    %cst_12 = arith.constant 0.000000e+00 : f32
    %15 = vector.broadcast %cst_12 : f32 to vector<128x128xf32>
    %16 = arith.maximumf %14, %15 : vector<128x128xf32>
    %17 = arith.truncf %16 : vector<128x128xf32> to vector<128x128xbf16>
    %c0_13 = arith.constant 0 : index
    %c0_14 = arith.constant 0 : index
    %18 = vector.load %arg8[%c0_13, %c0_14] : memref<128x128xbf16, #tpu.memory_space<vmem>>, vector<128x128xbf16>
    %cst_15 = arith.constant dense<0.000000e+00> : vector<128x128xf32>
    %19 = tpu.matmul %17, %18, %cst_15 {dimension_numbers = #tpu.dot_dimension_numbers<[1], [0], [0], [1], [0, 0, 1, 1], [], []>} : vector<128x128xbf16>, vector<128x128xbf16>, vector<128x128xf32> -> vector<128x128xf32>
    %c0_16 = arith.constant 0 : index
    %c0_17 = arith.constant 0 : index
    %20 = vector.load %arg9[%c0_16, %c0_17] : memref<1x128xf32, #tpu.memory_space<vmem>>, vector<1x128xf32>
    %21 = vector.broadcast %20 : vector<1x128xf32> to vector<128x128xf32>
    %22 = arith.addf %19, %21 : vector<128x128xf32>
    %cst_18 = arith.constant 0.000000e+00 : f32
    %23 = vector.broadcast %cst_18 : f32 to vector<128x128xf32>
    %24 = arith.maximumf %22, %23 : vector<128x128xf32>
    %25 = arith.addf %24, %16 : vector<128x128xf32>
    %26 = arith.truncf %25 : vector<128x128xf32> to vector<128x128xbf16>
    %c0_19 = arith.constant 0 : index
    %c0_20 = arith.constant 0 : index
    %27 = vector.load %arg10[%c0_19, %c0_20] : memref<128x128xbf16, #tpu.memory_space<vmem>>, vector<128x128xbf16>
    %cst_21 = arith.constant dense<0.000000e+00> : vector<128x128xf32>
    %28 = tpu.matmul %26, %27, %cst_21 {dimension_numbers = #tpu.dot_dimension_numbers<[1], [0], [0], [1], [0, 0, 1, 1], [], []>} : vector<128x128xbf16>, vector<128x128xbf16>, vector<128x128xf32> -> vector<128x128xf32>
    %c0_22 = arith.constant 0 : index
    %c0_23 = arith.constant 0 : index
    %29 = vector.load %arg11[%c0_22, %c0_23] : memref<1x128xf32, #tpu.memory_space<vmem>>, vector<1x128xf32>
    %30 = vector.broadcast %29 : vector<1x128xf32> to vector<128x128xf32>
    %31 = arith.addf %28, %30 : vector<128x128xf32>
    %cst_24 = arith.constant 0.000000e+00 : f32
    %32 = vector.broadcast %cst_24 : f32 to vector<128x128xf32>
    %33 = arith.maximumf %31, %32 : vector<128x128xf32>
    %34 = arith.addf %33, %25 : vector<128x128xf32>
    %35 = arith.truncf %34 : vector<128x128xf32> to vector<128x128xbf16>
    %c0_25 = arith.constant 0 : index
    %c0_26 = arith.constant 0 : index
    %36 = vector.load %arg12[%c0_25, %c0_26] : memref<128x128xbf16, #tpu.memory_space<vmem>>, vector<128x128xbf16>
    %cst_27 = arith.constant dense<0.000000e+00> : vector<128x128xf32>
    %37 = tpu.matmul %35, %36, %cst_27 {dimension_numbers = #tpu.dot_dimension_numbers<[1], [0], [0], [1], [0, 0, 1, 1], [], []>} : vector<128x128xbf16>, vector<128x128xbf16>, vector<128x128xf32> -> vector<128x128xf32>
    %c0_28 = arith.constant 0 : index
    %c0_29 = arith.constant 0 : index
    %38 = vector.load %arg13[%c0_28, %c0_29] : memref<1x128xf32, #tpu.memory_space<vmem>>, vector<1x128xf32>
    %39 = vector.broadcast %38 : vector<1x128xf32> to vector<128x128xf32>
    %40 = arith.addf %37, %39 : vector<128x128xf32>
    %cst_30 = arith.constant 0.000000e+00 : f32
    %41 = vector.broadcast %cst_30 : f32 to vector<128x128xf32>
    %42 = arith.maximumf %40, %41 : vector<128x128xf32>
    %43 = arith.addf %42, %34 : vector<128x128xf32>
    %44 = tpu.concatenate %25, %34, %43 in 1 : vector<128x128xf32>, vector<128x128xf32>, vector<128x128xf32> -> vector<128x384xf32>
    %45 = arith.truncf %44 : vector<128x384xf32> to vector<128x384xbf16>
    %c0_31 = arith.constant 0 : index
    %c0_32 = arith.constant 0 : index
    %46 = vector.load %arg14[%c0_31, %c0_32] : memref<384x1024xbf16, #tpu.memory_space<vmem>>, vector<384x1024xbf16>
    %cst_33 = arith.constant dense<0.000000e+00> : vector<128x1024xf32>
    %47 = tpu.matmul %45, %46, %cst_33 {dimension_numbers = #tpu.dot_dimension_numbers<[1], [0], [0], [1], [0, 0, 1, 1], [], []>} : vector<128x384xbf16>, vector<384x1024xbf16>, vector<128x1024xf32> -> vector<128x1024xf32>
    %c0_34 = arith.constant 0 : index
    %c0_35 = arith.constant 0 : index
    %48 = vector.load %arg15[%c0_34, %c0_35] : memref<1x1024xf32, #tpu.memory_space<vmem>>, vector<1x1024xf32>
    %49 = vector.broadcast %48 : vector<1x1024xf32> to vector<128x1024xf32>
    %50 = arith.addf %47, %49 : vector<128x1024xf32>
    %cst_36 = arith.constant 0.000000e+00 : f32
    %51 = vector.broadcast %cst_36 : f32 to vector<128x1024xf32>
    %52 = arith.cmpf oge, %50, %51 : vector<128x1024xf32>
    %cst_37 = arith.constant 2.000000e-01 : f32
    %53 = vector.broadcast %cst_37 : f32 to vector<128x1024xf32>
    %54 = arith.mulf %53, %50 : vector<128x1024xf32>
    %55 = arith.select %52, %50, %54 : vector<128x1024xi1>, vector<128x1024xf32>
    %56 = arith.truncf %55 : vector<128x1024xf32> to vector<128x1024xbf16>
    %c0_38 = arith.constant 0 : index
    %c0_39 = arith.constant 0 : index
    %c0_40 = arith.constant 0 : index
    %57 = vector.load %arg16[%c0_38, %c0_39, %c0_40] : memref<1x128x1024xbf16, #tpu.memory_space<vmem>>, vector<1x128x1024xbf16>
    %58 = vector.shape_cast %57 : vector<1x128x1024xbf16> to vector<128x1024xbf16>
    %59 = vector.shape_cast %56 : vector<128x1024xbf16> to vector<1x128x1024xbf16>
    tpu.vector_store %arg16[%c0_38, %c0_39, %c0_40], %59 {strides = array<i32>} : memref<1x128x1024xbf16, #tpu.memory_space<vmem>>, vector<1x128x1024xbf16>,
    %c0_i32 = arith.constant 0 : i32
    %60 = arith.cmpi eq, %arg2, %c0_i32 : i32
    %61 = arith.extui %60 : i1 to i32
    %c0_i32_41 = arith.constant 0 : i32
    %62 = arith.cmpi ne, %61, %c0_i32_41 : i32
    scf.if %62 {
      %cst_56 = arith.constant 0xFF800000 : f32
      %79 = vector.broadcast %cst_56 : f32 to vector<1x1024xf32>
      %c0_57 = arith.constant 0 : index
      %c0_58 = arith.constant 0 : index
      %c0_59 = arith.constant 0 : index
      %80 = vector.load %arg17[%c0_57, %c0_58, %c0_59] : memref<1x1x1024xf32, #tpu.memory_space<vmem>>, vector<1x1x1024xf32>
      %81 = vector.shape_cast %80 : vector<1x1x1024xf32> to vector<1x1024xf32>
      %82 = vector.shape_cast %79 : vector<1x1024xf32> to vector<1x1x1024xf32>
      tpu.vector_store %arg17[%c0_57, %c0_58, %c0_59], %82 {strides = array<i32>} : memref<1x1x1024xf32, #tpu.memory_space<vmem>>, vector<1x1x1024xf32>,
      %cst_60 = arith.constant 0.000000e+00 : f32
      %83 = vector.broadcast %cst_60 : f32 to vector<1x1024xf32>
      %c0_61 = arith.constant 0 : index
      %c0_62 = arith.constant 0 : index
      %c0_63 = arith.constant 0 : index
      %84 = vector.load %arg18[%c0_61, %c0_62, %c0_63] : memref<1x1x1024xf32, #tpu.memory_space<vmem>>, vector<1x1x1024xf32>
      %85 = vector.shape_cast %84 : vector<1x1x1024xf32> to vector<1x1024xf32>
      %86 = vector.shape_cast %83 : vector<1x1024xf32> to vector<1x1x1024xf32>
      tpu.vector_store %arg18[%c0_61, %c0_62, %c0_63], %86 {strides = array<i32>} : memref<1x1x1024xf32, #tpu.memory_space<vmem>>, vector<1x1x1024xf32>,
    } else {
    }
    %c0_42 = arith.constant 0 : index
    %c0_43 = arith.constant 0 : index
    %c0_44 = arith.constant 0 : index
    %63 = vector.load %arg17[%c0_42, %c0_43, %c0_44] : memref<1x1x1024xf32, #tpu.memory_space<vmem>>, vector<1x1x1024xf32>
    %64 = vector.shape_cast %63 : vector<1x1x1024xf32> to vector<1x1024xf32>
    %cst_45 = arith.constant dense<0xFF800000> : vector<1024xf32>
    %65 = vector.multi_reduction <maximumf>, %55, %cst_45 [0] : vector<128x1024xf32> to vector<1024xf32>
    %66 = vector.shape_cast %65 : vector<1024xf32> to vector<1x1024xf32>
    %67 = arith.maximumf %64, %66 : vector<1x1024xf32>
    %c0_46 = arith.constant 0 : index
    %c0_47 = arith.constant 0 : index
    %c0_48 = arith.constant 0 : index
    %68 = vector.load %arg17[%c0_46, %c0_47, %c0_48] : memref<1x1x1024xf32, #tpu.memory_space<vmem>>, vector<1x1x1024xf32>
    %69 = vector.shape_cast %68 : vector<1x1x1024xf32> to vector<1x1024xf32>
    %70 = vector.shape_cast %67 : vector<1x1024xf32> to vector<1x1x1024xf32>
    tpu.vector_store %arg17[%c0_46, %c0_47, %c0_48], %70 {strides = array<i32>} : memref<1x1x1024xf32, #tpu.memory_space<vmem>>, vector<1x1x1024xf32>,
    %c0_49 = arith.constant 0 : index
    %c0_50 = arith.constant 0 : index
    %c0_51 = arith.constant 0 : index
    %71 = vector.load %arg18[%c0_49, %c0_50, %c0_51] : memref<1x1x1024xf32, #tpu.memory_space<vmem>>, vector<1x1x1024xf32>
    %72 = vector.shape_cast %71 : vector<1x1x1024xf32> to vector<1x1024xf32>
    %cst_52 = arith.constant dense<0.000000e+00> : vector<1024xf32>
    %73 = vector.multi_reduction <add>, %55, %cst_52 [0] : vector<128x1024xf32> to vector<1024xf32>
    %74 = vector.shape_cast %73 : vector<1024xf32> to vector<1x1024xf32>
    %75 = arith.addf %72, %74 : vector<1x1024xf32>
    %c0_53 = arith.constant 0 : index
    %c0_54 = arith.constant 0 : index
    %c0_55 = arith.constant 0 : index
    %76 = vector.load %arg18[%c0_53, %c0_54, %c0_55] : memref<1x1x1024xf32, #tpu.memory_space<vmem>>, vector<1x1x1024xf32>
    %77 = vector.shape_cast %76 : vector<1x1x1024xf32> to vector<1x1024xf32>
    %78 = vector.shape_cast %75 : vector<1x1024xf32> to vector<1x1x1024xf32>
    tpu.vector_store %arg18[%c0_53, %c0_54, %c0_55], %78 {strides = array<i32>} : memref<1x1x1024xf32, #tpu.memory_space<vmem>>, vector<1x1x1024xf32>,
    return
  }
  func.func @transform_0(%arg0: i32, %arg1: i32, %arg2: i32) -> (i32, i32, i32) {
    %c1_i32 = arith.constant 1 : i32
    %0 = arith.muli %arg1, %c1_i32 : i32
    %1 = arith.addi %0, %arg2 : i32
    %c0_i32 = arith.constant 0 : i32
    %c0_i32_0 = arith.constant 0 : i32
    return %arg0, %1, %c0_i32 : i32, i32, i32
  }
  func.func @transform_1(%arg0: i32, %arg1: i32, %arg2: i32) -> (i32, i32) {
    %c0_i32 = arith.constant 0 : i32
    %c0_i32_0 = arith.constant 0 : i32
    %c0_i32_1 = arith.constant 0 : i32
    return %c0_i32, %c0_i32_0 : i32, i32
  }
  func.func @transform_2(%arg0: i32, %arg1: i32, %arg2: i32) -> (i32, i32) {
    %c0_i32 = arith.constant 0 : i32
    %c0_i32_0 = arith.constant 0 : i32
    %c0_i32_1 = arith.constant 0 : i32
    return %c0_i32, %c0_i32_0 : i32, i32
  }
  func.func @transform_3(%arg0: i32, %arg1: i32, %arg2: i32) -> (i32, i32) {
    %c0_i32 = arith.constant 0 : i32
    %c0_i32_0 = arith.constant 0 : i32
    %c0_i32_1 = arith.constant 0 : i32
    return %c0_i32, %c0_i32_0 : i32, i32
  }
  func.func @transform_4(%arg0: i32, %arg1: i32, %arg2: i32) -> (i32, i32) {
    %c0_i32 = arith.constant 0 : i32
    %c0_i32_0 = arith.constant 0 : i32
    %c0_i32_1 = arith.constant 0 : i32
    return %c0_i32, %c0_i32_0 : i32, i32
  }
  func.func @transform_5(%arg0: i32, %arg1: i32, %arg2: i32) -> (i32, i32) {
    %c0_i32 = arith.constant 0 : i32
    %c0_i32_0 = arith.constant 0 : i32
    %c0_i32_1 = arith.constant 0 : i32
    return %c0_i32, %c0_i32_0 : i32, i32
  }
  func.func @transform_6(%arg0: i32, %arg1: i32, %arg2: i32) -> (i32, i32) {
    %c0_i32 = arith.constant 0 : i32
    %c0_i32_0 = arith.constant 0 : i32
    %c0_i32_1 = arith.constant 0 : i32
    return %c0_i32, %c0_i32_0 : i32, i32
  }
  func.func @transform_7(%arg0: i32, %arg1: i32, %arg2: i32) -> (i32, i32) {
    %c0_i32 = arith.constant 0 : i32
    %c0_i32_0 = arith.constant 0 : i32
    %c0_i32_1 = arith.constant 0 : i32
    return %c0_i32, %c0_i32_0 : i32, i32
  }
  func.func @transform_8(%arg0: i32, %arg1: i32, %arg2: i32) -> (i32, i32) {
    %c0_i32 = arith.constant 0 : i32
    %c0_i32_0 = arith.constant 0 : i32
    %c0_i32_1 = arith.constant 0 : i32
    return %c0_i32, %c0_i32_0 : i32, i32
  }
  func.func @transform_9(%arg0: i32, %arg1: i32, %arg2: i32) -> (i32, i32) {
    %c0_i32 = arith.constant 0 : i32
    %c0_i32_0 = arith.constant 0 : i32
    %c0_i32_1 = arith.constant 0 : i32
    return %c0_i32, %c0_i32_0 : i32, i32
  }
  func.func @transform_10(%arg0: i32, %arg1: i32, %arg2: i32) -> (i32, i32) {
    %c0_i32 = arith.constant 0 : i32
    %c0_i32_0 = arith.constant 0 : i32
    %c0_i32_1 = arith.constant 0 : i32
    return %c0_i32, %c0_i32_0 : i32, i32
  }
  func.func @transform_11(%arg0: i32, %arg1: i32, %arg2: i32) -> (i32, i32) {
    %c0_i32 = arith.constant 0 : i32
    %c0_i32_0 = arith.constant 0 : i32
    %c0_i32_1 = arith.constant 0 : i32
    return %c0_i32, %c0_i32_0 : i32, i32
  }
  func.func @transform_12(%arg0: i32, %arg1: i32, %arg2: i32) -> (i32, i32) {
    %c0_i32 = arith.constant 0 : i32
    %c0_i32_0 = arith.constant 0 : i32
    %c0_i32_1 = arith.constant 0 : i32
    return %c0_i32, %c0_i32_0 : i32, i32
  }
  func.func @transform_13(%arg0: i32, %arg1: i32, %arg2: i32) -> (i32, i32, i32) {
    %c1_i32 = arith.constant 1 : i32
    %0 = arith.muli %arg1, %c1_i32 : i32
    %1 = arith.addi %0, %arg2 : i32
    %c0_i32 = arith.constant 0 : i32
    %c0_i32_0 = arith.constant 0 : i32
    return %arg0, %1, %c0_i32 : i32, i32, i32
  }
  func.func @transform_14(%arg0: i32, %arg1: i32, %arg2: i32) -> (i32, i32, i32) {
    %c1_i32 = arith.constant 1 : i32
    %0 = arith.muli %arg0, %c1_i32 : i32
    %1 = arith.addi %0, %arg1 : i32
    %c0_i32 = arith.constant 0 : i32
    %c0_i32_0 = arith.constant 0 : i32
    %c0_i32_1 = arith.constant 0 : i32
    return %1, %c0_i32, %c0_i32_0 : i32, i32, i32
  }
  func.func @transform_15(%arg0: i32, %arg1: i32, %arg2: i32) -> (i32, i32, i32) {
    %c1_i32 = arith.constant 1 : i32
    %0 = arith.muli %arg0, %c1_i32 : i32
    %1 = arith.addi %0, %arg1 : i32
    %c0_i32 = arith.constant 0 : i32
    %c0_i32_0 = arith.constant 0 : i32
    %c0_i32_1 = arith.constant 0 : i32
    return %1, %c0_i32, %c0_i32_0 : i32, i32, i32
  }
}

</mosaic_0001>

<bundles_post_ra>
// kernel: tpu_custom_call.1
= control target key start
LH: loop header
LB: loop body
LE: loop exit
PB: predicated region body
PF: predicated region fallthrough
CT: control target
= control target key end

     0   :  { %s8191_s0 = inlined_call_operand.vmem [shape: bf16[2,128,8], index: 0, kind: input, shape index: {}]   ;;  %s8192_s1 = inlined_call_operand.hbm [shape: bf16[8,128], index: 1, kind: input, shape index: {}]   ;;  %s8193_s2 = inlined_call_operand.vmem [shape: f32[1,128], index: 2, kind: input, shape index: {}]   ;;  %s8194_s3 = inlined_call_operand.vmem [shape: bf16[128,128], index: 3, kind: input, shape index: {}]   ;;  %s8195_s4 = inlined_call_operand.vmem [shape: f32[1,128], index: 4, kind: input, shape index: {}]   ;;  %s8196_s5 = inlined_call_operand.vmem [shape: bf16[128,128], index: 5, kind: input, shape index: {}]   ;;  %s8197_s6 = inlined_call_operand.vmem [shape: f32[1,128], index: 6, kind: input, shape index: {}]   ;;  %s8198_s7 = inlined_call_operand.hbm [shape: bf16[128,128], index: 7, kind: input, shape index: {}]   ;;  %s8199_s8 = inlined_call_operand.vmem [shape: f32[1,128], index: 8, kind: input, shape index: {}]   ;;  %s8200_s9 = inlined_call_operand.hbm [shape: bf16[128,128], index: 9, kind: input, shape index: {}]   ;;  %s8201_s10 = inlined_call_operand.vmem [shape: f32[1,128], index: 10, kind: input, shape index: {}]   ;;  %s8202_s11 = inlined_call_operand.hbm [shape: bf16[384,1024], index: 11, kind: input, shape index: {}]   ;;  %s8203_s12 = inlined_call_operand.vmem [shape: f32[1,1024], index: 12, kind: input, shape index: {}]   ;;  %s8204_s13 = inlined_call_operand.hbm [shape: bf16[2,128,1024], index: 13, kind: output, shape index: {0}]   ;;  %s8205_s14 = inlined_call_operand.hbm [shape: f32[2,1,1024], index: 14, kind: output, shape index: {1}]   ;;  %s8206_s15 = inlined_call_operand.hbm [shape: f32[2,1,1024], index: 15, kind: output, shape index: {2}]  }
   0x1   :  { %8227 = sst [smem:[#allocation41_spill]] %s8192_s1 }
   0x2   :  { %21 = vsyncpa [#allocation3], 0 }
   0x3   :  { %22 = vsyncpa [#allocation6], 0 }
   0x4   :  { %23 = vsyncpa [#allocation9], 0 }
   0x5   :  { %24 = vsyncpa [#allocation4], 0 }
   0x6   :  { %26 = vsyncpa [#allocation4 + $0x1], 0 }
   0x7   :  { %27 = vsyncpa [#allocation12], 0 }
   0x8   :  { %29 = vsyncpa [#allocation12 + $0x1], 0  ;;  %s6436_s18 = smov 0   ;;  %s6438_s19 = smov 0  }
   0x9   :  { %s6440_s20 = smov 0   ;;  %s6442_s21 = smov 0  }
   0xa   :  { %s6444_s22 = smov 0   ;;  %s6446_s23 = smov 0  }
   0xb LB: > { %8228 = sst [smem:[#allocation19_spill]] %s6319_s18  ;;  %s6467_s24 = sadd.s32 4294967295, %s6339_s23   ;;  %s6339_s23 = sphi %s6446_s23, %s35_s23   ;;  %s6335_s22 = sphi %s6444_s22, %s8302_s22   ;;  %s6331_s21 = sphi %s6442_s21, %s8301_s21   ;;  %s6327_s20 = sphi %s6440_s20, %s8300_s20   ;;  %s6323_s19 = sphi %s6438_s19, %s8304_s19   ;;  %s6319_s18 = sphi %s6436_s18, %s8303_s18  }
   0xc   : > { %8229 = sst [smem:[#allocation20_spill]] %s6327_s20  ;;  %s8208_s25 = sadd.s32 4294967294, %s6339_s23  }
   0xd   : > { %8230 = sst [smem:[#allocation21_spill]] %s6335_s22  ;;  %s54_s26 = sadd.s32 1, %s6335_s22 }
   0xe   : > { %8231 = sst [smem:[#allocation22_spill]] %s6339_s23  ;;  %s347_s27 = sadd.s32 1, %s6327_s20 }
   0xf   : > { %p56_p0 = scmp.ge.s32.totalorder %s54_s26, 2  ;;  %p357_p1 = scmp.ne.s32.totalorder %s6327_s20, %s6323_s19 }
  0x10   : > { %p358_p2 = scmp.eq.s32.totalorder %s6467_s24, 1  ;;  %p363_p3 = scmp.ne.s32.totalorder %s6323_s19, %s6319_s18 }
  0x11   : > { %s8306_s26 = smov (%p56_p0, %s54_s26), 0  ;;  %p364_p5 = scmp.eq.s32.totalorder %s8208_s25, 1 }
  0x12   : > { %8232 = sst [smem:[#allocation23_spill]] %s8306_s26  ;;  %p6479_p4 = por %p358_p2, %p357_p1 }
  0x13   : > { %s342_s29 = ssub.s32 %s6335_s22, %s8306_s26  ;;  %p5294_p6 = scmp.ge.s32.totalorder %s6339_s23, 1 }
  0x14   : > { %p345_p7 = scmp.eq.s32.totalorder %s342_s29, 0  ;;  %p6488_p8 = por %p364_p5, %p363_p3 }
  0x15   : > { %p427_p9 = scmp.lt.s32.totalorder %s6339_s23, 3  ;;  %p5979_p11 = scmp.eq.s32.totalorder %s6467_s24, 0 }
  0x16   : > { %s8234_s30 = scalar_select %p6488_p8, 1, 0 }
  0x17   : > { %s6494_s16 = scalar_select %p345_p7, %s6327_s20, %s347_s27  }
  0x18   : > { %8235 = sst [smem:[#allocation24_spill]] %s8234_s30  ;;  %p6496_p10 = pnand %p5294_p6, %p427_p9 }
  0x19   : > { %8236 = sst [smem:[#allocation25_spill]] %s6494_s16  ;;  %s6341_s18 = smov [#allocation5]  }
  0x1a   : > { %p5956_p12 = pneg %p6496_p10  ;;  %s465_s25 = sshll.u32 %s6341_s18, 4  ;;  %s466_s25 = int_to_ptr.vmem [resolvable:$true] %s465_s25 }
  0x1b   : > { %s6342_s27 = smov [#allocation2]   ;;  %s6102_s22 = scalar_lea.vmem %s466_s25, 1024 }
  0x1c   : > { %p6505_p13 = pnand %p5979_p11, %p5956_p12  ;;  %s440_s26 = sshll.u32 %s6342_s27, 4  ;;  %s441_s26 = int_to_ptr.vmem [resolvable:$true] %s440_s26 }
  0x1d   : > { %p6103_p1 = scmp.ne.s32.totalorder %s466_s25, %s6102_s22  ;;  %p6110_p5 = scmp.lt.s32.totalorder %s466_s25, %s466_s25 }
  0x1e   : > { %p6093_p0 = pneg %p6505_p13  ;;  %p6111_p6 = scmp.lt.s32.totalorder %s6102_s22, %s6102_s22 }
  0x20   : > { %p6105_p2 = pnand %p6103_p1, %p6093_p0  ;;  %p6112_p7 = por %p6111_p6, %p6110_p5 }
  0x22   : > { %p6106_p3 = pneg %p6105_p2 }
  0x24   : > { %p6113_p9 = pnand %p6112_p7, %p6106_p3 }
  0x26   : > { %6116 = shalt.err (!%p6113_p9)
}
  0x27   : > { %s8215_s18 = smov 64   ;;  %s8216_s16 = smov 4  }
  0x28   : > { %5962 = dma.hbm_to_vmem [thread:$0]  (!%p6505_p13), %s8198_s7, 1024, %s466_s25, [#allocation6], %s8215_s18, %s8215_s18, %s8216_s16  }
  0x29   : > { %s6128_s30 = scalar_lea.vmem %s441_s26, 64  ;;  %p6136_p3 = scmp.lt.s32.totalorder %s441_s26, %s441_s26 }
  0x2a   : > { %p6129_p12 = scmp.ne.s32.totalorder %s441_s26, %s6128_s30  ;;  %p6137_p5 = scmp.lt.s32.totalorder %s6128_s30, %s6128_s30 }
  0x2c   : > { %p6131_p1 = pnand %p6129_p12, %p6093_p0  ;;  %p6138_p6 = por %p6137_p5, %p6136_p3 }
  0x2e   : > { %p6132_p2 = pneg %p6131_p1 }
  0x30   : > { %p6139_p7 = pnand %p6138_p6, %p6132_p2 }
  0x32   : > { %6142 = shalt.err (!%p6139_p7)
}
  0x33   : > { %s8239_s1 = sld [smem:[#allocation41_spill]]  ;;  %s6345_s20 = smov [#allocation7]  }
  0x34   : > { %s481_s25 = sshll.u32 %s6345_s20, 4  ;;  %s6346_s27 = smov [#allocation8]   ;;  %s482_s25 = int_to_ptr.vmem [resolvable:$true] %s481_s25 }
  0x35   : > { %s497_s18 = sshll.u32 %s6346_s27, 4  ;;  %s6154_s16 = scalar_lea.vmem %s482_s25, 1024  ;;  %s498_s18 = int_to_ptr.vmem [resolvable:$true] %s497_s18 }
  0x36   : > { %p6155_p9 = scmp.ne.s32.totalorder %s482_s25, %s6154_s16  ;;  %p6162_p2 = scmp.lt.s32.totalorder %s482_s25, %s482_s25 }
  0x37   : > { %p6163_p3 = scmp.lt.s32.totalorder %s6154_s16, %s6154_s16 }
  0x38   : > { %p6157_p12 = pnand %p6155_p9, %p6093_p0 }
  0x39   : > { %5959 = dma.hbm_to_vmem [thread:$0]  (!%p6505_p13), %s8239_s1, 64, %s441_s26, [#allocation3]  }
  0x3a   : > { %p6158_p1 = pneg %p6157_p12  ;;  %p6164_p5 = por %p6163_p3, %p6162_p2 }
  0x3c   : > { %p6165_p6 = pnand %p6164_p5, %p6158_p1 }
  0x3e   : > { %6168 = shalt.err (!%p6165_p6)
}
  0x3f   : > { %s8240_s23 = smov 4   ;;  %s8241_s26 = smov 64  }
  0x40   : > { %5965 = dma.hbm_to_vmem [thread:$0]  (!%p6505_p13), %s8200_s9, 1024, %s482_s25, [#allocation6], %s8241_s26, %s8241_s26, %s8240_s23  }
  0x41   : > { %s6180_s20 = scalar_lea.vmem %s498_s18, 24576  ;;  %p6188_p2 = scmp.lt.s32.totalorder %s498_s18, %s498_s18 }
  0x42   : > { %p6181_p7 = scmp.ne.s32.totalorder %s498_s18, %s6180_s20  ;;  %p6189_p1 = scmp.lt.s32.totalorder %s6180_s20, %s6180_s20 }
  0x44   : > { %p6183_p9 = pnand %p6181_p7, %p6093_p0  ;;  %p6190_p3 = por %p6189_p1, %p6188_p2 }
  0x46   : > { %p6184_p12 = pneg %p6183_p9 }
  0x48   : > { %p6191_p5 = pnand %p6190_p3, %p6184_p12 }
  0x4a   : > { %6194 = shalt.err (!%p6191_p5)
}
  0x4b   : > { %s6347_s16 = smov 512   ;;  %s6348_s27 = smov 32  }
  0x4c   : > { %5968 = dma.hbm_to_vmem [thread:$0]  (!%p6505_p13), %s8202_s11, 24576, %s498_s18, [#allocation9], %s6347_s16, %s6347_s16, %s6348_s27  }
  0x4d   : > { %531 = sbr.rel (%p6496_p10) target bundleno = 1678 (0x68e), region = 72 }
  0x52   : > { %6298 = dma.done.wait (%p5979_p11), [#allocation3], 64  }
  0x53   : > { %6300 = vsyncadd (%p5979_p11), [#allocation3], 4294967232 }
  0x54   : > { %6302 = dma.done.wait (%p5979_p11), [#allocation6], 2048  }
  0x55   : > { %6304 = vsyncadd (%p5979_p11), [#allocation6], 4294965248 }
  0x56   : > { %6306 = dma.done.wait (%p5979_p11), [#allocation9], 24576  }
  0x57   : > { %6308 = vsyncadd (%p5979_p11), [#allocation9], 4294942720  ;;  %p608_p10 = scmp.lt.s32.totalorder %s6331_s21, 1  ;;  %vm712_vm0 = vcmask 1043456   ;;  %vm687_vm1 = vcmask 64512   ;;  %v6058_v7 = vld [vmem:[%s8194_s3 + $0x38] sm:$0xff]  }
  0x58   : > { %v639_v0 = vld [vmem:[#allocation2] sm:$0xf]  ;;  %v6059_v8 = vld [vmem:[%s8194_s3 + $0x30] sm:$0xff]   ;;  %5789 = vmatprep.subr.bf16.mxu1 %v6058_v7  ;;  %v6060_v9 = vld [vmem:[%s8194_s3 + $0x28] sm:$0xff]   ;;  %s5695_s22 = sshll.u32 %s6331_s21, 13 }
  0x59   : > { %s609_s1 = scalar_select %p608_p10, %s6331_s21, 1  ;;  %5933 = vmatprep.subr.msk.bf16.mxu0 %vm712_vm0, %v639_v0  ;;  %v714_v1 = vsel %vm712_vm0, %v639_v0, 0  ;;  %5790 = vmatpush3.bf16.msra.mxu1 %v6058_v7  ;;  %v6061_v11 = vld [vmem:[%s8194_s3 + $0x20] sm:$0xff]   ;;  %v6062_v13 = vld [vmem:[%s8194_s3 + $0x18] sm:$0xff]   ;;  %v6063_v15 = vld [vmem:[%s8194_s3 + $0x10] sm:$0xff]  }
  0x5a   : > { %5772 = vmatpush3.bf16.msra.mxu0 %v714_v1  ;;  %5791 = vmatprep.subr.bf16.mxu1 %v6059_v8  ;;  %v6064_v16 = vld [vmem:[%s8194_s3 + $0x8] sm:$0xff]   ;;  %v6065_v17 = vld [vmem:[%s8194_s3] sm:$0xff]   ;;  %v6066_v18 = vld [vmem:[%s8196_s5 + $0x38] sm:$0xff]   ;;  %s8033_s27 = scalar_lea.hbm %s8204_s13, %s5695_s22 }
  0x5b   : > { %s5630_s17 = sshll.u32 %s609_s1, 6  ;;  %v6067_v19 = vld [vmem:[%s8196_s5 + $0x30] sm:$0xff]   ;;  %5821 = vmatprep.subr.bf16.mxu0 %v6066_v18  ;;  %v6068_v20 = vld [vmem:[%s8196_s5 + $0x28] sm:$0xff]   ;;  %v6069_v21 = vld [vmem:[%s8196_s5 + $0x20] sm:$0xff]  }
  0x5c   : > { %s6568_s25 = scalar_lea.vmem %s8191_s0, %s5630_s17  ;;  %v6070_v22 = vld [vmem:[%s8196_s5 + $0x18] sm:$0xff]   ;;  %v5310_v25 = vld [vmem:[%s8193_s2] ss:$0 sm:$0xff]  ;;  %s7276_s17 = sand.u32 1, %s6323_s19  }
  0x5d   : > { %v6050_v2 = vld [vmem:[%s6568_s25] sm:$0xff]   ;;  %v6051_v3 = vld [vmem:[%s6568_s25 + $0x8] sm:$0xff]   ;;  %v6052_v4 = vld [vmem:[%s6568_s25 + $0x10] sm:$0xff]   ;;  %5792 = vmatpush3.bf16.msra.mxu1 %v6059_v8  ;;  %s5305_s29 = sshll.u32 %s7276_s17, 9 }
  0x5e   : > { %5773 = vmatprep.mubr.msk.bf16.mxu0 %vm687_vm1, %v6050_v2  ;;  %v6053_v5 = vld [vmem:[%s6568_s25 + $0x18] sm:$0xff]   ;;  %v6054_v6 = vld [vmem:[%s6568_s25 + $0x20] sm:$0xff]   ;;  %v6055_v10 = vld [vmem:[%s6568_s25 + $0x28] sm:$0xff]   ;;  %5793 = vmatprep.subr.bf16.mxu1 %v6060_v9  ;;  %s7303_s18 = scalar_lea.vmem [#allocation10], %s5305_s29  ;;  %s6351_s29 = smov [#allocation10]  }
  0x5f   : > { %5774 = vmatmul.mubr.msk.bf16.vlgmr.msra.gmra.mxu0 %vm687_vm1, %v6051_v3  ;;  %v6056_v12 = vld [vmem:[%s6568_s25 + $0x30] sm:$0xff]   ;;  %v6057_v14 = vld [vmem:[%s6568_s25 + $0x38] sm:$0xff]   ;;  %s5075_s20 = sshll.u32 %s7303_s18, 4  ;;  %s6199_s23 = sshll.u32 %s6351_s29, 4  ;;  %s8035_s20 = int_to_ptr.vmem [resolvable:$true] %s5075_s20  ;;  %s6200_s23 = int_to_ptr.vmem [resolvable:$false] %s6199_s23 }
  0x60   : > { %5777 = vmatprep.mubr.msk.bf16.mxu0 %vm687_vm1, %v6052_v4  ;;  %5822 = vmatpush3.bf16.msra.mxu0 %v6066_v18  ;;  %v6073_v18 = vld [vmem:[%s8196_s5] sm:$0xff]   ;;  %s6195_s1 = scalar_lea.vmem %s8035_s20, 8192  ;;  %s6201_s26 = scalar_lea.vmem %s6200_s23, 16384 }
  0x61   : > { %5794 = vmatpush3.bf16.msra.mxu1 %v6060_v9  ;;  %5823 = vmatprep.subr.bf16.mxu0 %v6067_v19  ;;  %p6196_p11 = scmp.ne.s32.totalorder %s8035_s20, %s6195_s1  ;;  %p6202_p6 = scmp.lt.s32.totalorder %s8035_s20, %s6200_s23 }
  0x62   : > { %5795 = vmatprep.subr.bf16.mxu1 %v6061_v11  ;;  %p6203_p7 = scmp.lt.s32.totalorder %s6201_s26, %s6195_s1 }
  0x63   : > { %p6197_p13 = pnand %p6196_p11, %p6479_p4 }
  0x64   : > { %5824 = vmatpush3.bf16.msra.mxu0 %v6067_v19  ;;  %v6074_v19 = vld [vmem:[#allocation5 + $0x38] sm:$0xff]   ;;  %p6204_p9 = por %p6203_p7, %p6202_p6 }
  0x65   : > { %5796 = vmatpush3.bf16.msra.mxu1 %v6061_v11  ;;  %5825 = vmatprep.subr.bf16.mxu0 %v6068_v20  ;;  %p6198_p0 = pneg %p6197_p13 }
  0x66   : > { %5797 = vmatprep.subr.bf16.mxu1 %v6062_v13 }
  0x67   : > { %5778 = vmatmul.mubr.msk.bf16.gmra.mxu0 %vm687_vm1, %v6053_v5  ;;  %p6205_p12 = pnand %p6204_p9, %p6198_p0 }
  0x68   : > { %5781 = vmatprep.mubr.msk.bf16.mxu0 %vm687_vm1, %v6054_v6  ;;  %5826 = vmatpush3.bf16.msra.mxu0 %v6068_v20  ;;  %v6075_v20 = vld [vmem:[#allocation5 + $0x30] sm:$0xff]  }
  0x69   : > { %5798 = vmatpush3.bf16.msra.mxu1 %v6062_v13  ;;  %5827 = vmatprep.subr.bf16.mxu0 %v6069_v21 }
  0x6a   : > { %5799 = vmatprep.subr.bf16.mxu1 %v6063_v15 }
  0x6c   : > { %5828 = vmatpush3.bf16.msra.mxu0 %v6069_v21  ;;  %v6076_v21 = vld [vmem:[#allocation5 + $0x28] sm:$0xff]  }
  0x6d   : > { %5800 = vmatpush3.bf16.msra.mxu1 %v6063_v15  ;;  %5829 = vmatprep.subr.bf16.mxu0 %v6070_v22 }
  0x6e   : > { %5801 = vmatprep.subr.bf16.mxu1 %v6064_v16 }
  0x6f   : > { %5782 = vmatmul.mubr.msk.bf16.gmra.mxu0 %vm687_vm1, %v6055_v10 }
  0x70   : > { %5785 = vmatprep.mubr.msk.bf16.mxu0 %vm687_vm1, %v6056_v12  ;;  %5830 = vmatpush3.bf16.msra.mxu0 %v6070_v22  ;;  %v6077_v22 = vld [vmem:[#allocation5 + $0x20] sm:$0xff]  }
  0x71   : > { %5802 = vmatpush3.bf16.msra.mxu1 %v6064_v16  ;;  %v6071_v16 = vld [vmem:[%s8196_s5 + $0x10] sm:$0xff]  }
  0x72   : > { %5803 = vmatprep.subr.bf16.mxu1 %v6065_v17  ;;  %5831 = vmatprep.subr.bf16.mxu0 %v6071_v16 }
  0x74   : > { %5832 = vmatpush3.bf16.msra.mxu0 %v6071_v16 }
  0x75   : > { %5804 = vmatpush3.bf16.msra.mxu1 %v6065_v17  ;;  %v6072_v17 = vld [vmem:[%s8196_s5 + $0x8] sm:$0xff]  }
  0x76   : > { %5833 = vmatprep.subr.bf16.mxu0 %v6072_v17  ;;  %5853 = vmatprep.subr.bf16.mxu1 %v6074_v19 }
  0x77   : > { %5786 = vmatmul.mubr.msk.bf16.gmra.mxu0 %vm687_vm1, %v6057_v14 }
  0x78   : > { %5834 = vmatpush3.bf16.msra.mxu0 %v6072_v17  ;;  %v6079_v17 = vld [vmem:[#allocation5 + $0x10] sm:$0xff]  }
  0x79   : > { %5835 = vmatprep.subr.bf16.mxu0 %v6073_v18 }
  0x7c   : > { %5836 = vmatpush3.bf16.msra.mxu0 %v6073_v18  ;;  %v6080_v18 = vld [vmem:[#allocation5 + $0x8] sm:$0xff]  }
 0x11f   : > { %v5775_v23 = vpop.f32.mrf.mxu0 }
 0x120   : > { %v759_v29 = vadd.f32 %v5775_v23, %v5310_v25  ;;  %v6078_v23 = vld [vmem:[#allocation5 + $0x18] sm:$0xff]  }
 0x121   : > { %v750_v24 = vpop.f32.mrf.mxu0 }
 0x122   : > { %v751_v27 = vadd.f32 %v5310_v25, %v750_v24  ;;  %v815_v36 = vmax.f32 %v759_v29, 0.0 }
 0x123   : > { %v5776_v26 = vpop.f32.mrf.mxu0 }
 0x124   : > { %v762_v28 = vadd.f32 %v5776_v26, %v5310_v25  ;;  %v813_v34 = vmax.f32 %v751_v27, 0.0  ;;  %v5327_v26 = vld [vmem:[%s8195_s4] ss:$0 sm:$0xff] }
 0x125   : > { %v753_v30 = vpop.f32.mrf.mxu0 }
 0x126   : > { %v754_v31 = vadd.f32 %v5310_v25, %v753_v30  ;;  %v816_v32 = vmax.f32 %v762_v28, 0.0 }
 0x127   : > { %v5779_v33 = vpop.f32.mrf.mxu0 }
 0x128   : > { %v814_v35 = vmax.f32 %v754_v31, 0.0  ;;  %v775_v37 = vadd.f32 %v5779_v33, %v5310_v25  ;;  %v830_v41 = vpack.c.bf16 %v816_v32, %v815_v36 }
 0x129   : > { %v766_v38 = vpop.f32.mrf.mxu0 }
 0x12a   : > { %v767_v39 = vadd.f32 %v5310_v25, %v766_v38  ;;  %v829_v40 = vpack.c.bf16 %v814_v35, %v813_v34  ;;  %v819_v44 = vmax.f32 %v775_v37, 0.0 }
 0x12b   : > { %v5780_v42 = vpop.f32.mrf.mxu0 }
 0x12c   : > { %v778_v43 = vadd.f32 %v5780_v42, %v5310_v25  ;;  %5805 = vmatprep.mubr.bf16.mxu1 %v829_v40  ;;  %v817_v46 = vmax.f32 %v767_v39, 0.0 }
 0x12d   : > { %v769_v45 = vpop.f32.mrf.mxu0  ;;  %5806 = vmatmul.mubr.bf16.vlgmr.msra.gmra.mxu1 %v830_v41 }
 0x12e   : > { %v820_v47 = vmax.f32 %v778_v43, 0.0  ;;  %v770_v48 = vadd.f32 %v5310_v25, %v769_v45  ;;  %5854 = vmatpush3.bf16.msra.mxu1 %v6074_v19  ;;  %v6081_v19 = vld [vmem:[#allocation5] sm:$0xff]  }
 0x12f   : > { %v5783_v49 = vpop.f32.mrf.mxu0  ;;  %5855 = vmatprep.subr.bf16.mxu1 %v6075_v20 }
 0x130   : > { %v818_v50 = vmax.f32 %v770_v48, 0.0  ;;  %v832_v51 = vpack.c.bf16 %v820_v47, %v819_v44  ;;  %v791_v52 = vadd.f32 %v5783_v49, %v5310_v25 }
 0x131   : > { %v782_v53 = vpop.f32.mrf.mxu0 }
 0x132   : > { %v783_v54 = vadd.f32 %v5310_v25, %v782_v53  ;;  %v831_v55 = vpack.c.bf16 %v818_v50, %v817_v46  ;;  %v823_v58 = vmax.f32 %v791_v52, 0.0  ;;  %5856 = vmatpush3.bf16.msra.mxu1 %v6075_v20  ;;  %v1709_v20 = vld [vmem:[#allocation8 + $0x1c0] sm:$0xff] }
 0x133   : > { %v5784_v56 = vpop.f32.mrf.mxu0  ;;  %5857 = vmatprep.subr.bf16.mxu1 %v6076_v21 }
 0x134   : > { %v794_v57 = vadd.f32 %v5784_v56, %v5310_v25  ;;  %5809 = vmatprep.mubr.bf16.mxu1 %v831_v55  ;;  %v821_v60 = vmax.f32 %v783_v54, 0.0 }
 0x135   : > { %v785_v59 = vpop.f32.mrf.mxu0  ;;  %5810 = vmatmul.mubr.bf16.gmra.mxu1 %v832_v51 }
 0x136   : > { %v824_v61 = vmax.f32 %v794_v57, 0.0  ;;  %v786_v62 = vadd.f32 %v5310_v25, %v785_v59  ;;  %5858 = vmatpush3.bf16.msra.mxu1 %v6076_v21  ;;  %v1713_v21 = vld [vmem:[#allocation8 + $0x1e0] sm:$0xff] }
 0x137   : > { %v5787_v63 = vpop.f32.mrf.mxu0  ;;  %5859 = vmatprep.subr.bf16.mxu1 %v6077_v22 }
 0x138   : > { %v822_v0 = vmax.f32 %v786_v62, 0.0  ;;  %v834_v1 = vpack.c.bf16 %v824_v61, %v823_v58  ;;  %v807_v2 = vadd.f32 %v5787_v63, %v5310_v25 }
 0x139   : > { %v798_v3 = vpop.f32.mrf.mxu0 }
 0x13a   : > { %v799_v4 = vadd.f32 %v5310_v25, %v798_v3  ;;  %v833_v5 = vpack.c.bf16 %v822_v0, %v821_v60  ;;  %v827_v8 = vmax.f32 %v807_v2, 0.0  ;;  %5860 = vmatpush3.bf16.msra.mxu1 %v6077_v22  ;;  %v5419_v22 = vcombine.low %v1709_v20, %v1713_v21 }
 0x13b   : > { %v5788_v6 = vpop.f32.mrf.mxu0  ;;  %5861 = vmatprep.subr.bf16.mxu1 %v6078_v23 }
 0x13c   : > { %v810_v7 = vadd.f32 %v5788_v6, %v5310_v25  ;;  %5813 = vmatprep.mubr.bf16.mxu1 %v833_v5  ;;  %v825_v10 = vmax.f32 %v799_v4, 0.0 }
 0x13d   : > { %v801_v9 = vpop.f32.mrf.mxu0  ;;  %5814 = vmatmul.mubr.bf16.gmra.mxu1 %v834_v1 }
 0x13e   : > { %v828_v11 = vmax.f32 %v810_v7, 0.0  ;;  %v802_v12 = vadd.f32 %v5310_v25, %v801_v9  ;;  %5862 = vmatpush3.bf16.msra.mxu1 %v6078_v23  ;;  %v5420_v23 = vcombine.high %v1709_v20, %v1713_v21 }
 0x13f   : > { %5863 = vmatprep.subr.bf16.mxu1 %v6079_v17 }
 0x140   : > { %v826_v13 = vmax.f32 %v802_v12, 0.0  ;;  %v836_v14 = vpack.c.bf16 %v828_v11, %v827_v8 }
 0x142   : > { %v835_v15 = vpack.c.bf16 %v826_v13, %v825_v10  ;;  %5864 = vmatpush3.bf16.msra.mxu1 %v6079_v17  ;;  %v1705_v17 = vld [vmem:[#allocation8 + $0x1a0] sm:$0xff] }
 0x143   : > { %5865 = vmatprep.subr.bf16.mxu1 %v6080_v18 }
 0x144   : > { %5817 = vmatprep.mubr.bf16.mxu1 %v835_v15 }
 0x145   : > { %5818 = vmatmul.mubr.bf16.gmra.mxu1 %v836_v14 }
 0x146   : > { %5866 = vmatpush3.bf16.msra.mxu1 %v6080_v18 }
 0x147   : > { %5867 = vmatprep.subr.bf16.mxu1 %v6081_v19 }
 0x14a   : > { %5868 = vmatpush3.bf16.msra.mxu1 %v6081_v19 }
 0x14b   : > { %2847 = vmatprep.subr.bf16.mxu1 %v5420_v23  ;;  %v1697_v23 = vld [vmem:[#allocation8 + $0x160] sm:$0xff] }
 0x1ed   : > { %v5807_v24 = vpop.f32.mrf.mxu1 }
 0x1ee   : > { %v6644_v30 = vadd.f32 %v5807_v24, %v5327_v26  ;;  %v6082_v24 = vld [vmem:[#allocation7 + $0x38] sm:$0xff]  }
 0x1ef   : > { %v942_v25 = vpop.f32.mrf.mxu1  ;;  %5885 = vmatprep.subr.bf16.mxu0 %v6082_v24 }
 0x1f0   : > { %v6640_v28 = vadd.f32 %v5327_v26, %v942_v25  ;;  %v1007_v37 = vmax.f32 %v6644_v30, 0.0  ;;  %v6083_v25 = vld [vmem:[#allocation7 + $0x30] sm:$0xff]  }
 0x1f1   : > { %v5808_v27 = vpop.f32.mrf.mxu1 }
 0x1f2   : > { %v6642_v29 = vadd.f32 %v5808_v27, %v5327_v26  ;;  %v1005_v35 = vmax.f32 %v6640_v28, 0.0  ;;  %v6085_v27 = vld [vmem:[#allocation7 + $0x20] sm:$0xff]  }
 0x1f3   : > { %v945_v31 = vpop.f32.mrf.mxu1 }
 0x1f4   : > { %v6646_v32 = vadd.f32 %v5327_v26, %v945_v31  ;;  %v1008_v33 = vmax.f32 %v6642_v29, 0.0  ;;  %v6086_v31 = vld [vmem:[#allocation7 + $0x18] sm:$0xff]  }
 0x1f5   : > { %v5811_v34 = vpop.f32.mrf.mxu1 }
 0x1f6   : > { %v1006_v36 = vmax.f32 %v6646_v32, 0.0  ;;  %v1022_v40 = vpack.c.bf16 %v1008_v33, %v1007_v37  ;;  %v6664_v44 = vadd.f32 %v5811_v34, %v5327_v26 }
 0x1f7   : > { %v958_v38 = vpop.f32.mrf.mxu1 }
 0x1f8   : > { %v1021_v39 = vpack.c.bf16 %v1006_v36, %v1005_v35  ;;  %v6660_v42 = vadd.f32 %v5327_v26, %v958_v38  ;;  %v1011_v51 = vmax.f32 %v6664_v44, 0.0  ;;  %v6723_v38 = vld [vmem:[%s8197_s6] ss:$0 sm:$0xff] }
 0x1f9   : > { %v5812_v41 = vpop.f32.mrf.mxu1 }
 0x1fa   : > { %v6662_v43 = vadd.f32 %v5812_v41, %v5327_v26  ;;  %5837 = vmatprep.mubr.bf16.mxu0 %v1021_v39  ;;  %v1009_v49 = vmax.f32 %v6660_v42, 0.0 }
 0x1fb   : > { %v961_v45 = vpop.f32.mrf.mxu1  ;;  %5838 = vmatmul.mubr.bf16.vlgmr.msra.gmra.mxu0 %v1022_v40 }
 0x1fc   : > { %v6666_v46 = vadd.f32 %v5327_v26, %v961_v45  ;;  %v1012_v47 = vmax.f32 %v6662_v43, 0.0  ;;  %5886 = vmatpush3.bf16.msra.mxu0 %v6082_v24 }
 0x1fd   : > { %v5815_v48 = vpop.f32.mrf.mxu1  ;;  %5887 = vmatprep.subr.bf16.mxu0 %v6083_v25 }
 0x1fe   : > { %v1010_v50 = vmax.f32 %v6666_v46, 0.0  ;;  %v6672_v52 = vadd.f32 %v5815_v48, %v5327_v26  ;;  %v1024_v56 = vpack.c.bf16 %v1012_v47, %v1011_v51 }
 0x1ff   : > { %v974_v53 = vpop.f32.mrf.mxu1 }
 0x200   : > { %v6674_v54 = vadd.f32 %v5327_v26, %v974_v53  ;;  %v1023_v55 = vpack.c.bf16 %v1010_v50, %v1009_v49  ;;  %v1015_v59 = vmax.f32 %v6672_v52, 0.0  ;;  %5888 = vmatpush3.bf16.msra.mxu0 %v6083_v25 }
 0x201   : > { %v5816_v57 = vpop.f32.mrf.mxu1 }
 0x202   : > { %v6684_v58 = vadd.f32 %v5816_v57, %v5327_v26  ;;  %5841 = vmatprep.mubr.bf16.mxu0 %v1023_v55  ;;  %v1013_v61 = vmax.f32 %v6674_v54, 0.0 }
 0x203   : > { %v977_v60 = vpop.f32.mrf.mxu1  ;;  %5842 = vmatmul.mubr.bf16.gmra.mxu0 %v1024_v56 }
 0x204   : > { %v1016_v62 = vmax.f32 %v6684_v58, 0.0  ;;  %v6689_v63 = vadd.f32 %v5327_v26, %v977_v60 }
 0x205   : > { %v5819_v0 = vpop.f32.mrf.mxu1 }
 0x206   : > { %v1014_v1 = vmax.f32 %v6689_v63, 0.0  ;;  %v1026_v2 = vpack.c.bf16 %v1016_v62, %v1015_v59  ;;  %v6696_v3 = vadd.f32 %v5819_v0, %v5327_v26 }
 0x207   : > { %v990_v4 = vpop.f32.mrf.mxu1 }
 0x208   : > { %v6698_v5 = vadd.f32 %v5327_v26, %v990_v4  ;;  %v1025_v6 = vpack.c.bf16 %v1014_v1, %v1013_v61  ;;  %v1019_v9 = vmax.f32 %v6696_v3, 0.0 }
 0x209   : > { %v5820_v7 = vpop.f32.mrf.mxu1 }
 0x20a   : > { %v6704_v8 = vadd.f32 %v5820_v7, %v5327_v26  ;;  %5845 = vmatprep.mubr.bf16.mxu0 %v1025_v6  ;;  %v1017_v11 = vmax.f32 %v6698_v5, 0.0 }
 0x20b   : > { %v993_v10 = vpop.f32.mrf.mxu1  ;;  %5846 = vmatmul.mubr.bf16.gmra.mxu0 %v1026_v2 }
 0x20c   : > { %v1020_v12 = vmax.f32 %v6704_v8, 0.0  ;;  %v6709_v13 = vadd.f32 %v5327_v26, %v993_v10  ;;  %v6084_v26 = vld [vmem:[#allocation7 + $0x28] sm:$0xff]  }
 0x20d   : > { %5889 = vmatprep.subr.bf16.mxu0 %v6084_v26 }
 0x20e   : > { %v1018_v14 = vmax.f32 %v6709_v13, 0.0  ;;  %v1028_v15 = vpack.c.bf16 %v1020_v12, %v1019_v9  ;;  %5890 = vmatpush3.bf16.msra.mxu0 %v6084_v26  ;;  %v1773_v13 = vld [vmem:[#allocation8 + $0x3c0] sm:$0xff] }
 0x20f   : > { %5891 = vmatprep.subr.bf16.mxu0 %v6085_v27 }
 0x210   : > { %v1027_v16 = vpack.c.bf16 %v1018_v14, %v1017_v11 }
 0x212   : > { %5849 = vmatprep.mubr.bf16.mxu0 %v1027_v16  ;;  %5892 = vmatpush3.bf16.msra.mxu0 %v6085_v27  ;;  %v1701_v16 = vld [vmem:[#allocation8 + $0x180] sm:$0xff] }
 0x213   : > { %5850 = vmatmul.mubr.bf16.gmra.mxu0 %v1028_v15  ;;  %5893 = vmatprep.subr.bf16.mxu0 %v6086_v31  ;;  %v5412_v19 = vcombine.high %v1701_v16, %v1705_v17  ;;  %v5411_v27 = vcombine.low %v1701_v16, %v1705_v17 }
 0x216   : > { %5894 = vmatpush3.bf16.msra.mxu0 %v6086_v31 }
 0x2bb   : > { %v5839_v34 = vpop.f32.mrf.mxu0 }
 0x2bc   : > { %v1143_v41 = vadd.f32 %v5839_v34, %v6723_v38 }
 0x2bd   : > { %v1134_v39 = vpop.f32.mrf.mxu0 }
 0x2be   : > { %v1135_v40 = vadd.f32 %v6723_v38, %v1134_v39  ;;  %v1199_v60 = vmax.f32 %v1143_v41, 0.0 }
 0x2bf   : > { %v5840_v45 = vpop.f32.mrf.mxu0 }
 0x2c0   : > { %v1146_v48 = vadd.f32 %v5840_v45, %v6723_v38  ;;  %v1197_v55 = vmax.f32 %v1135_v40, 0.0  ;;  %v6744_v18 = vadd.f32 %v1199_v60, %v1007_v37  ;;  %v1693_v37 = vld [vmem:[#allocation8 + $0x140] sm:$0xff] }
 0x2c1   : > { %v1137_v53 = vpop.f32.mrf.mxu0  ;;  %v5404_v39 = vcombine.high %v1693_v37, %v1697_v23  ;;  %v5403_v46 = vcombine.low %v1693_v37, %v1697_v23  ;;  %v1677_v60 = vld [vmem:[#allocation8 + $0xc0] sm:$0xff] }
 0x2c2   : > { %v1200_v56 = vmax.f32 %v1146_v48, 0.0  ;;  %v1138_v57 = vadd.f32 %v6723_v38, %v1137_v53  ;;  %v6735_v7 = vadd.f32 %v1197_v55, %v1005_v35  ;;  %v1685_v48 = vld [vmem:[#allocation8 + $0x100] sm:$0xff] }
 0x2c3   : > { %v5843_v0 = vpop.f32.mrf.mxu0 }
 0x2c4   : > { %v1198_v2 = vmax.f32 %v1138_v57, 0.0  ;;  %v6731_v4 = vadd.f32 %v1200_v56, %v1008_v33  ;;  %v1159_v29 = vadd.f32 %v5843_v0, %v6723_v38  ;;  %v1681_v0 = vld [vmem:[#allocation8 + $0xe0] sm:$0xff] }
 0x2c5   : > { %v1150_v6 = vpop.f32.mrf.mxu0  ;;  %v5387_v63 = vcombine.low %v1677_v60, %v1681_v0 }
 0x2c6   : > { %v6739_v10 = vadd.f32 %v1198_v2, %v1006_v36  ;;  %v1151_v15 = vadd.f32 %v6723_v38, %v1150_v6  ;;  %v6754_v32 = vpack.c.bf16 %v6731_v4, %v6744_v18  ;;  %v1203_v24 = vmax.f32 %v1159_v29, 0.0 }
 0x2c7   : > { %v5844_v33 = vpop.f32.mrf.mxu0 }
 0x2c8   : > { %v6749_v28 = vpack.c.bf16 %v6739_v10, %v6735_v7  ;;  %v1162_v35 = vadd.f32 %v5844_v33, %v6723_v38  ;;  %v1201_v20 = vmax.f32 %v1151_v15, 0.0  ;;  %v6774_v43 = vadd.f32 %v1203_v24, %v1011_v51 }
 0x2c9   : > { %v1153_v36 = vpop.f32.mrf.mxu0  ;;  %v5388_v33 = vcombine.high %v1677_v60, %v1681_v0 }
 0x2ca   : > { %v1204_v21 = vmax.f32 %v1162_v35, 0.0  ;;  %v1154_v30 = vadd.f32 %v6723_v38, %v1153_v36  ;;  %5869 = vmatprep.mubr.bf16.mxu1 %v6749_v28  ;;  %v6765_v40 = vadd.f32 %v1201_v20, %v1009_v49  ;;  %v1669_v20 = vld [vmem:[#allocation8 + $0x80] sm:$0xff] }
 0x2cb   : > { %v5847_v25 = vpop.f32.mrf.mxu0  ;;  %5870 = vmatmul.mubr.bf16.vlgmr.msra.gmra.mxu1 %v6754_v32 }
 0x2cc   : > { %v1202_v26 = vmax.f32 %v1154_v30, 0.0  ;;  %2848 = vmatpush1.bf16.msra.mxu1 %v5419_v22  ;;  %v6761_v31 = vadd.f32 %v1204_v21, %v1012_v47  ;;  %v1689_v22 = vld [vmem:[#allocation8 + $0x120] sm:$0xff]  ;;  %v1175_v47 = vadd.f32 %v5847_v25, %v6723_v38 }
 0x2cd   : > { %v1166_v34 = vpop.f32.mrf.mxu0  ;;  %2849 = vmatprep.subr.bf16.mxu1 %v5412_v19  ;;  %v5396_v44 = vcombine.high %v1685_v48, %v1689_v22  ;;  %v5395_v16 = vcombine.low %v1685_v48, %v1689_v22  ;;  %v1673_v21 = vld [vmem:[#allocation8 + $0xa0] sm:$0xff] }
 0x2ce   : > { %v6769_v41 = vadd.f32 %v1202_v26, %v1010_v50  ;;  %v1167_v45 = vadd.f32 %v6723_v38, %v1166_v34  ;;  %v6784_v50 = vpack.c.bf16 %v6761_v31, %v6774_v43  ;;  %v1207_v2 = vmax.f32 %v1175_v47, 0.0  ;;  %v1661_v25 = vld [vmem:[#allocation8 + $0x40] sm:$0xff] }
 0x2cf   : > { %v5848_v53 = vpop.f32.mrf.mxu0  ;;  %v5380_v52 = vcombine.high %v1669_v20, %v1673_v21  ;;  %v1665_v26 = vld [vmem:[#allocation8 + $0x60] sm:$0xff] }
 0x2d0   : > { %v6779_v42 = vpack.c.bf16 %v6769_v41, %v6765_v40  ;;  %v1178_v49 = vadd.f32 %v5848_v53, %v6723_v38  ;;  %2850 = vmatpush1.bf16.msra.mxu1 %v5411_v27  ;;  %v1205_v51 = vmax.f32 %v1167_v45, 0.0  ;;  %v6804_v58 = vadd.f32 %v1207_v2, %v1015_v59  ;;  %v1653_v47 = vld [vmem:[#allocation8] sm:$0xff] }
 0x2d1   : > { %v1169_v55 = vpop.f32.mrf.mxu0  ;;  %2851 = vmatprep.subr.bf16.mxu1 %v5404_v39  ;;  %v5379_v39 = vcombine.low %v1669_v20, %v1673_v21  ;;  %v5372_v48 = vcombine.high %v1661_v25, %v1665_v26  ;;  %v1657_v53 = vld [vmem:[#allocation8 + $0x20] sm:$0xff] }
 0x2d2   : > { %v1208_v56 = vmax.f32 %v1178_v49, 0.0  ;;  %v1170_v57 = vadd.f32 %v6723_v38, %v1169_v55  ;;  %5873 = vmatprep.mubr.bf16.mxu1 %v6779_v42  ;;  %v6795_v35 = vadd.f32 %v1205_v51, %v1013_v61  ;;  %v5363_v3 = vcombine.low %v1653_v47, %v1657_v53  ;;  %v1769_v55 = vld [vmem:[#allocation8 + $0x3a0] sm:$0xff] }
 0x2d3   : > { %v5851_v6 = vpop.f32.mrf.mxu0  ;;  %5874 = vmatmul.mubr.bf16.gmra.mxu1 %v6784_v50  ;;  %v1749_v2 = vld [vmem:[#allocation8 + $0x300] sm:$0xff] }
 0x2d4   : > { %v1206_v15 = vmax.f32 %v1170_v57, 0.0  ;;  %2852 = vmatpush1.bf16.msra.mxu1 %v5403_v46  ;;  %v6791_v17 = vadd.f32 %v1208_v56, %v1016_v62  ;;  %v1191_v62 = vadd.f32 %v5851_v6, %v6723_v38  ;;  %v1765_v46 = vld [vmem:[#allocation8 + $0x380] sm:$0xff] }
 0x2d5   : > { %v1182_v29 = vpop.f32.mrf.mxu0  ;;  %2853 = vmatprep.subr.bf16.mxu1 %v5396_v44  ;;  %v5476_v51 = vcombine.high %v1765_v46, %v1769_v55  ;;  %v1757_v56 = vld [vmem:[#allocation8 + $0x340] sm:$0xff]  ;;  %v5475_v60 = vcombine.low %v1765_v46, %v1769_v55  ;;  %v6848_v55 = vld [vmem:[%s8199_s8] ss:$0 sm:$0xff] }
 0x2d6   : > { %v6799_v36 = vadd.f32 %v1206_v15, %v1014_v1  ;;  %v1183_v19 = vadd.f32 %v6723_v38, %v1182_v29  ;;  %v6814_v1 = vpack.c.bf16 %v6791_v17, %v6804_v58  ;;  %v1211_v27 = vmax.f32 %v1191_v62, 0.0  ;;  %v1761_v57 = vld [vmem:[#allocation8 + $0x360] sm:$0xff] }
 0x2d7   : > { %v5852_v30 = vpop.f32.mrf.mxu0  ;;  %v5468_v0 = vcombine.high %v1757_v56, %v1761_v57  ;;  %v1753_v6 = vld [vmem:[#allocation8 + $0x320] sm:$0xff]  ;;  %v5467_v15 = vcombine.low %v1757_v56, %v1761_v57 }
 0x2d8   : > { %v6809_v54 = vpack.c.bf16 %v6799_v36, %v6795_v35  ;;  %v1194_v61 = vadd.f32 %v5852_v30, %v6723_v38  ;;  %2854 = vmatpush1.bf16.msra.mxu1 %v5395_v16  ;;  %v1209_v59 = vmax.f32 %v1183_v19, 0.0  ;;  %v6833_v49 = vadd.f32 %v1211_v27, %v1019_v9  ;;  %v1745_v19 = vld [vmem:[#allocation8 + $0x2e0] sm:$0xff] }
 0x2d9   : > { %v1185_v37 = vpop.f32.mrf.mxu0  ;;  %2855 = vmatprep.subr.bf16.mxu1 %v5388_v33  ;;  %v5460_v16 = vcombine.high %v1749_v2, %v1753_v6  ;;  %v5459_v29 = vcombine.low %v1749_v2, %v1753_v6  ;;  %v1741_v33 = vld [vmem:[#allocation8 + $0x2c0] sm:$0xff] }
 0x2da   : > { %v1212_v23 = vmax.f32 %v1194_v61, 0.0  ;;  %v1186_v24 = vadd.f32 %v6723_v38, %v1185_v37  ;;  %5877 = vmatprep.mubr.bf16.mxu1 %v6809_v54  ;;  %v6825_v22 = vadd.f32 %v1209_v59, %v1017_v11  ;;  %v5364_v11 = vcombine.high %v1653_v47, %v1657_v53  ;;  %v1733_v62 = vld [vmem:[#allocation8 + $0x280] sm:$0xff]  ;;  %v6087_v61 = vld [vmem:[#allocation7 + $0x10] sm:$0xff]  }
 0x2db   : > { %5878 = vmatmul.mubr.bf16.gmra.mxu1 %v6814_v1  ;;  %v5452_v20 = vcombine.high %v1741_v33, %v1745_v19  ;;  %v5451_v21 = vcombine.low %v1741_v33, %v1745_v19  ;;  %v1737_v30 = vld [vmem:[#allocation8 + $0x2a0] sm:$0xff]  ;;  %5895 = vmatprep.subr.bf16.mxu0 %v6087_v61 }
 0x2dc   : > { %v1210_v34 = vmax.f32 %v1186_v24, 0.0  ;;  %2856 = vmatpush1.bf16.msra.mxu1 %v5387_v63  ;;  %v6821_v45 = vadd.f32 %v1212_v23, %v1020_v12  ;;  %v5371_v12 = vcombine.low %v1661_v25, %v1665_v26  ;;  %v5444_v63 = vcombine.high %v1733_v62, %v1737_v30  ;;  %5896 = vmatpush3.bf16.msra.mxu0 %v6087_v61  ;;  %v1729_v59 = vld [vmem:[#allocation8 + $0x260] sm:$0xff]  ;;  %v6088_v23 = vld [vmem:[#allocation7 + $0x8] sm:$0xff]  }
 0x2dd   : > { %2857 = vmatprep.subr.bf16.mxu1 %v5380_v52  ;;  %v5443_v37 = vcombine.low %v1733_v62, %v1737_v30  ;;  %v1725_v52 = vld [vmem:[#allocation8 + $0x240] sm:$0xff]  ;;  %5897 = vmatprep.subr.bf16.mxu0 %v6088_v23 }
 0x2de   : > { %v6829_v38 = vadd.f32 %v1210_v34, %v1018_v14  ;;  %v6841_v5 = vpack.c.bf16 %v6821_v45, %v6833_v49  ;;  %v1777_v14 = vld [vmem:[#allocation8 + $0x3e0] sm:$0xff]  ;;  %v5436_v24 = vcombine.high %v1725_v52, %v1729_v59  ;;  %v5435_v25 = vcombine.low %v1725_v52, %v1729_v59 }
 0x2df   : > { %v5484_v9 = vcombine.high %v1773_v13, %v1777_v14  ;;  %v5483_v44 = vcombine.low %v1773_v13, %v1777_v14  ;;  %v1717_v26 = vld [vmem:[#allocation8 + $0x200] sm:$0xff]  ;;  %v1842_v14 = vld [vmem:[#allocation8 + $0x5e8] sm:$0xff] }
 0x2e0   : > { %v6837_v8 = vpack.c.bf16 %v6829_v38, %v6825_v22  ;;  %2858 = vmatpush1.bf16.msra.mxu1 %v5379_v39  ;;  %5898 = vmatpush3.bf16.msra.mxu0 %v6088_v23  ;;  %v1721_v27 = vld [vmem:[#allocation8 + $0x220] sm:$0xff]  ;;  %v1830_v23 = vld [vmem:[#allocation8 + $0x588] sm:$0xff] }
 0x2e1   : > { %2859 = vmatprep.subr.bf16.mxu1 %v5372_v48  ;;  %v6089_v34 = vld [vmem:[#allocation7] sm:$0xff]   ;;  %v5428_v39 = vcombine.high %v1717_v26, %v1721_v27  ;;  %v5427_v48 = vcombine.low %v1717_v26, %v1721_v27 }
 0x2e2   : > { %5881 = vmatprep.mubr.bf16.mxu1 %v6837_v8  ;;  %5899 = vmatprep.subr.bf16.mxu0 %v6089_v34  ;;  %v1837_v47 = vld [vmem:[#allocation8 + $0x5c0] sm:$0xff] }
 0x2e3   : > { %5882 = vmatmul.mubr.bf16.gmra.mxu1 %v6841_v5  ;;  %v1841_v53 = vld [vmem:[#allocation8 + $0x5e0] sm:$0xff] }
 0x2e4   : > { %2860 = vmatpush1.bf16.msra.mxu1 %v5371_v12  ;;  %5900 = vmatpush3.bf16.msra.mxu0 %v6089_v34  ;;  %v1838_v12 = vld [vmem:[#allocation8 + $0x5c8] sm:$0xff]  ;;  %v5548_v13 = vcombine.high %v1837_v47, %v1841_v53  ;;  %v1829_v61 = vld [vmem:[#allocation8 + $0x580] sm:$0xff] }
 0x2e5   : > { %2861 = vmatprep.subr.bf16.mxu1 %v5364_v11  ;;  %v5547_v11 = vcombine.low %v1837_v47, %v1841_v53  ;;  %v1825_v47 = vld [vmem:[#allocation8 + $0x560] sm:$0xff] }
 0x2e6   : > { %2960 = vmatprep.subr.bf16.mxu0 %v5548_v13  ;;  %v1822_v13 = vld [vmem:[#allocation8 + $0x548] sm:$0xff] }
 0x2e8   : > { %2862 = vmatpush1.bf16.msra.mxu1 %v5363_v3  ;;  %v5549_v3 = vcombine.low %v1838_v12, %v1842_v14 }
 0x2e9   : > { %2863 = vmatprep.subr.bf16.mxu1 %v5484_v9  ;;  %v5550_v9 = vcombine.high %v1838_v12, %v1842_v14  ;;  %v1826_v14 = vld [vmem:[#allocation8 + $0x568] sm:$0xff] }
 0x2ec   : > { %2864 = vmatpush2.bf16.msra.mxu1 %v5483_v44 }
 0x2ed   : > { %2865 = vmatprep.subr.bf16.mxu1 %v5476_v51 }
 0x2f0   : > { %2866 = vmatpush2.bf16.msra.mxu1 %v5475_v60 }
 0x2f1   : > { %2867 = vmatprep.subr.bf16.mxu1 %v5468_v0 }
 0x2f4   : > { %2868 = vmatpush2.bf16.msra.mxu1 %v5467_v15 }
 0x2f5   : > { %2869 = vmatprep.subr.bf16.mxu1 %v5460_v16 }
 0x2f8   : > { %2870 = vmatpush2.bf16.msra.mxu1 %v5459_v29 }
 0x2f9   : > { %2871 = vmatprep.subr.bf16.mxu1 %v5452_v20 }
 0x2fc   : > { %2872 = vmatpush2.bf16.msra.mxu1 %v5451_v21 }
 0x2fd   : > { %2873 = vmatprep.subr.bf16.mxu1 %v5444_v63  ;;  %v1833_v63 = vld [vmem:[#allocation8 + $0x5a0] sm:$0xff] }
 0x2fe   : > { %v5540_v26 = vcombine.high %v1829_v61, %v1833_v63 }
 0x300   : > { %2874 = vmatpush2.bf16.msra.mxu1 %v5443_v37 }
 0x301   : > { %2875 = vmatprep.subr.bf16.mxu1 %v5436_v24 }
 0x304   : > { %2876 = vmatpush2.bf16.msra.mxu1 %v5435_v25 }
 0x305   : > { %2877 = vmatprep.subr.bf16.mxu1 %v5428_v39 }
 0x308   : > { %2878 = vmatpush2.bf16.msra.mxu1 %v5427_v48  ;;  %v1821_v48 = vld [vmem:[#allocation8 + $0x540] sm:$0xff] }
 0x309   : > { %3186 = vmatprep.subr.bf16.mxu1 %v5550_v9 }
 0x38b   : > { %v5871_v46 = vpop.f32.mrf.mxu1 }
 0x38c   : > { %v1351_v56 = vadd.f32 %v5871_v46, %v6848_v55  ;;  %v5539_v46 = vcombine.low %v1829_v61, %v1833_v63 }
 0x38d   : > { %v1342_v44 = vpop.f32.mrf.mxu1 }
 0x38e   : > { %v1343_v51 = vadd.f32 %v6848_v55, %v1342_v44  ;;  %v1407_v16 = vmax.f32 %v1351_v56, 0.0 }
 0x38f   : > { %v5872_v57 = vpop.f32.mrf.mxu1 }
 0x390   : > { %v1354_v60 = vadd.f32 %v5872_v57, %v6848_v55  ;;  %v1405_v2 = vmax.f32 %v1343_v51, 0.0  ;;  %v6865_v37 = vadd.f32 %v1407_v16, %v6744_v18  ;;  %v5532_v57 = vcombine.high %v1821_v48, %v1825_v47 }
 0x391   : > { %v1345_v0 = vpop.f32.mrf.mxu1 }
 0x392   : > { %v1408_v6 = vmax.f32 %v1354_v60, 0.0  ;;  %v1346_v15 = vadd.f32 %v6848_v55, %v1345_v0  ;;  %v6858_v21 = vadd.f32 %v1405_v2, %v6735_v7 }
 0x393   : > { %v5875_v29 = vpop.f32.mrf.mxu1 }
 0x394   : > { %v1406_v33 = vmax.f32 %v1346_v15, 0.0  ;;  %v6855_v19 = vadd.f32 %v1408_v6, %v6731_v4  ;;  %v1367_v52 = vadd.f32 %v5875_v29, %v6848_v55  ;;  %v1834_v4 = vld [vmem:[#allocation8 + $0x5a8] sm:$0xff]  ;;  %v5534_v6 = vcombine.high %v1822_v13, %v1826_v14  ;;  %v1817_v15 = vld [vmem:[#allocation8 + $0x520] sm:$0xff] }
 0x395   : > { %v1358_v20 = vpop.f32.mrf.mxu1  ;;  %v5542_v39 = vcombine.high %v1830_v23, %v1834_v4  ;;  %v5541_v56 = vcombine.low %v1830_v23, %v1834_v4  ;;  %v1814_v29 = vld [vmem:[#allocation8 + $0x508] sm:$0xff] }
 0x396   : > { %v6861_v62 = vadd.f32 %v1406_v33, %v6739_v10  ;;  %v1359_v30 = vadd.f32 %v6848_v55, %v1358_v20  ;;  %v6875_v10 = vpack.c.bf16 %v6855_v19, %v6865_v37  ;;  %v1411_v53 = vmax.f32 %v1367_v52, 0.0  ;;  %v1818_v33 = vld [vmem:[#allocation8 + $0x528] sm:$0xff] }
 0x397   : > { %v5876_v59 = vpop.f32.mrf.mxu1  ;;  %v5531_v20 = vcombine.low %v1821_v48, %v1825_v47  ;;  %v5526_v4 = vcombine.high %v1814_v29, %v1818_v33 }
 0x398   : > { %v6870_v24 = vpack.c.bf16 %v6861_v62, %v6858_v21  ;;  %v1370_v7 = vadd.f32 %v5876_v59, %v6848_v55  ;;  %v1409_v27 = vmax.f32 %v1359_v30, 0.0 }
 0x399   : > { %v1361_v25 = vpop.f32.mrf.mxu1 }
 0x39a   : > { %v1412_v18 = vmax.f32 %v1370_v7, 0.0  ;;  %v1362_v34 = vadd.f32 %v6848_v55, %v1361_v25  ;;  %5901 = vmatprep.mubr.bf16.mxu0 %v6870_v24  ;;  %2879 = vmatprep.mubr.bf16.mxu1 %v6870_v24  ;;  %v6887_v60 = vadd.f32 %v1409_v27, %v6765_v40  ;;  %v1805_v7 = vld [vmem:[#allocation8 + $0x4c0] sm:$0xff] }
 0x39b   : > { %v5879_v12 = vpop.f32.mrf.mxu1  ;;  %5902 = vmatmul.mubr.bf16.vlgmr.msra.gmra.mxu0 %v6875_v10  ;;  %2880 = vmatmul.mubr.bf16.vlgmr.msra.gmra.mxu1 %v6749_v28  ;;  %v1809_v25 = vld [vmem:[#allocation8 + $0x4e0] sm:$0xff] }
 0x39c   : > { %v1410_v9 = vmax.f32 %v1362_v34, 0.0  ;;  %2889 = vmatprep.mubr.bf16.mxu1 %v6875_v10  ;;  %2961 = vmatpush1.bf16.msra.mxu0 %v5547_v11  ;;  %v6884_v44 = vadd.f32 %v1412_v18, %v6761_v31  ;;  %v1813_v11 = vld [vmem:[#allocation8 + $0x500] sm:$0xff]  ;;  %v6894_v31 = vadd.f32 %v1411_v53, %v6774_v43  ;;  %v5533_v43 = vcombine.low %v1822_v13, %v1826_v14  ;;  %v1806_v18 = vld [vmem:[#allocation8 + $0x4c8] sm:$0xff] }
 0x39d   : > { %v1374_v51 = vpop.f32.mrf.mxu1  ;;  %3187 = vmatpush1.bf16.msra.mxu1 %v5549_v3  ;;  %2962 = vmatprep.subr.bf16.mxu0 %v5540_v26  ;;  %v1383_v3 = vadd.f32 %v5879_v12, %v6848_v55  ;;  %v5524_v63 = vcombine.high %v1813_v11, %v1817_v15  ;;  %v1810_v34 = vld [vmem:[#allocation8 + $0x4e8] sm:$0xff]  ;;  %v5523_v48 = vcombine.low %v1813_v11, %v1817_v15 }
 0x39e   : > { %v6890_v0 = vadd.f32 %v1410_v9, %v6769_v41  ;;  %v1375_v2 = vadd.f32 %v6848_v55, %v1374_v51  ;;  %3188 = vmatprep.subr.bf16.mxu1 %v5542_v39  ;;  %v6904_v30 = vpack.c.bf16 %v6884_v44, %v6894_v31  ;;  %v5525_v12 = vcombine.low %v1814_v29, %v1818_v33 }
 0x39f   : > { %v5880_v16 = vpop.f32.mrf.mxu1  ;;  %v1415_v26 = vmax.f32 %v1383_v3, 0.0  ;;  %v5516_v13 = vcombine.high %v1805_v7, %v1809_v25  ;;  %v5518_v51 = vcombine.high %v1806_v18, %v1810_v34 }
 0x3a0   : > { %v6899_v40 = vpack.c.bf16 %v6890_v0, %v6887_v60  ;;  %v1386_v41 = vadd.f32 %v5880_v16, %v6848_v55  ;;  %2963 = vmatpush1.bf16.msra.mxu0 %v5539_v46  ;;  %v1413_v52 = vmax.f32 %v1375_v2, 0.0 }
 0x3a1   : > { %v1377_v61 = vpop.f32.mrf.mxu1  ;;  %3189 = vmatpush1.bf16.msra.mxu1 %v5541_v56  ;;  %2964 = vmatprep.subr.bf16.mxu0 %v5532_v57  ;;  %v6922_v56 = vadd.f32 %v1415_v26, %v6804_v58  ;;  %v5517_v58 = vcombine.low %v1806_v18, %v1810_v34  ;;  %v1790_v26 = vld [vmem:[#allocation8 + $0x448] sm:$0xff] }
 0x3a2   : > { %v1416_v59 = vmax.f32 %v1386_v41, 0.0  ;;  %v1378_v23 = vadd.f32 %v6848_v55, %v1377_v61  ;;  %5905 = vmatprep.mubr.bf16.mxu0 %v6899_v40  ;;  %3190 = vmatprep.subr.bf16.mxu1 %v5534_v6  ;;  %v6915_v14 = vadd.f32 %v1413_v52, %v6795_v35  ;;  %v5515_v6 = vcombine.low %v1805_v7, %v1809_v25  ;;  %v1802_v52 = vld [vmem:[#allocation8 + $0x4a8] sm:$0xff]  ;;  %v1789_v7 = vld [vmem:[#allocation8 + $0x440] sm:$0xff] }
 0x3a3   : > { %v5883_v27 = vpop.f32.mrf.mxu1  ;;  %5906 = vmatmul.mubr.bf16.gmra.mxu0 %v6904_v30  ;;  %2890 = vmatmul.mubr.bf16.gmra.mxu1 %v6754_v32  ;;  %v1793_v25 = vld [vmem:[#allocation8 + $0x460] sm:$0xff]  ;;  %v1794_v18 = vld [vmem:[#allocation8 + $0x468] sm:$0xff] }
 0x3a4   : > { %v1414_v39 = vmax.f32 %v1378_v23, 0.0  ;;  %2899 = vmatprep.mubr.bf16.mxu1 %v6899_v40  ;;  %2965 = vmatpush1.bf16.msra.mxu0 %v5531_v20  ;;  %v6912_v47 = vadd.f32 %v1416_v59, %v6791_v17  ;;  %v1399_v17 = vadd.f32 %v5883_v27, %v6848_v55  ;;  %v5500_v27 = vcombine.high %v1789_v7, %v1793_v25 }
 0x3a5   : > { %v1390_v53 = vpop.f32.mrf.mxu1  ;;  %3191 = vmatpush1.bf16.msra.mxu1 %v5533_v43  ;;  %2966 = vmatprep.subr.bf16.mxu0 %v5524_v63  ;;  %v5499_v34 = vcombine.low %v1789_v7, %v1793_v25 }
 0x3a6   : > { %v6918_v9 = vadd.f32 %v1414_v39, %v6799_v36  ;;  %v1391_v46 = vadd.f32 %v6848_v55, %v1390_v53  ;;  %3192 = vmatprep.subr.bf16.mxu1 %v5526_v4  ;;  %v6932_v36 = vpack.c.bf16 %v6912_v47, %v6922_v56  ;;  %v1419_v29 = vmax.f32 %v1399_v17, 0.0  ;;  %v1781_v53 = vld [vmem:[#allocation8 + $0x400] sm:$0xff] }
 0x3a7   : > { %v5884_v57 = vpop.f32.mrf.mxu1  ;;  %v5501_v39 = vcombine.low %v1790_v26, %v1794_v18 }
 0x3a8   : > { %v6927_v2 = vpack.c.bf16 %v6918_v9, %v6915_v14  ;;  %v1402_v35 = vadd.f32 %v5884_v57, %v6848_v55  ;;  %2967 = vmatpush1.bf16.msra.mxu0 %v5523_v48  ;;  %v1417_v15 = vmax.f32 %v1391_v46, 0.0  ;;  %v6949_v61 = vadd.f32 %v1419_v29, %v6833_v49  ;;  %v1798_v49 = vld [vmem:[#allocation8 + $0x488] sm:$0xff]  ;;  %v1843_v29 = vld [vmem:[#allocation8 + $0x5f0] sm:$0xff] }
 0x3a9   : > { %v1393_v11 = vpop.f32.mrf.mxu1  ;;  %3193 = vmatpush1.bf16.msra.mxu1 %v5525_v12  ;;  %2968 = vmatprep.subr.bf16.mxu0 %v5516_v13  ;;  %v5509_v23 = vcombine.low %v1798_v49, %v1802_v52  ;;  %v5510_v4 = vcombine.high %v1798_v49, %v1802_v52  ;;  %v5502_v48 = vcombine.high %v1790_v26, %v1794_v18  ;;  %v1785_v12 = vld [vmem:[#allocation8 + $0x420] sm:$0xff]  ;;  %v1782_v13 = vld [vmem:[#allocation8 + $0x408] sm:$0xff] }
 0x3aa   : > { %v1420_v3 = vmax.f32 %v1402_v35, 0.0  ;;  %v1394_v16 = vadd.f32 %v6848_v55, %v1393_v11  ;;  %5909 = vmatprep.mubr.bf16.mxu0 %v6927_v2  ;;  %3194 = vmatprep.subr.bf16.mxu1 %v5518_v51  ;;  %v6943_v20 = vadd.f32 %v1417_v15, %v6825_v22  ;;  %v1801_v22 = vld [vmem:[#allocation8 + $0x4a0] sm:$0xff]  ;;  %v5492_v46 = vcombine.high %v1781_v53, %v1785_v12  ;;  %v1786_v51 = vld [vmem:[#allocation8 + $0x428] sm:$0xff] }
 0x3ab   : > { %5910 = vmatmul.mubr.bf16.gmra.mxu0 %v6932_v36  ;;  %2900 = vmatmul.mubr.bf16.gmra.mxu1 %v6779_v42  ;;  %v5491_v17 = vcombine.low %v1781_v53, %v1785_v12  ;;  %v5493_v57 = vcombine.low %v1782_v13, %v1786_v51  ;;  %v5494_v35 = vcombine.high %v1782_v13, %v1786_v51  ;;  %v1714_v11 = vld [vmem:[#allocation8 + $0x1e8] sm:$0xff]  ;;  %v8222_v15 = vmov 0   ;;  %v1835_v51 = vld [vmem:[#allocation8 + $0x5b0] sm:$0xff] }
 0x3ac   : > { %v1418_v33 = vmax.f32 %v1394_v16, 0.0  ;;  %2909 = vmatprep.mubr.bf16.mxu1 %v6904_v30  ;;  %2969 = vmatpush1.bf16.msra.mxu0 %v5515_v6  ;;  %v6940_v41 = vadd.f32 %v1420_v3, %v6821_v45  ;;  %v1797_v45 = vld [vmem:[#allocation8 + $0x480] sm:$0xff]  ;;  %v1710_v6 = vld [vmem:[#allocation8 + $0x1c8] sm:$0xff]  ;;  %v1839_v16 = vld [vmem:[#allocation8 + $0x5d0] sm:$0xff] }
 0x3ad   : > { %3195 = vmatpush1.bf16.msra.mxu1 %v5517_v58  ;;  %v5507_v59 = vcombine.low %v1797_v45, %v1801_v22  ;;  %v5422_v58 = vcombine.high %v1710_v6, %v1714_v11  ;;  %v5421_v3 = vcombine.low %v1710_v6, %v1714_v11  ;;  %v1694_v11 = vld [vmem:[#allocation8 + $0x148] sm:$0xff] }
 0x3ae   : > { %v6946_v55 = vadd.f32 %v1418_v33, %v6829_v38  ;;  %v6957_v63 = vpack.c.bf16 %v6940_v41, %v6949_v61  ;;  %v5508_v38 = vcombine.high %v1797_v45, %v1801_v22  ;;  %3196 = vmatprep.subr.bf16.mxu1 %v5510_v4  ;;  %v5551_v33 = vcombine.low %v1839_v16, %v1843_v29 }
 0x3af   : > { %v5552_v45 = vcombine.high %v1839_v16, %v1843_v29 }
 0x3b0   : > { %v6953_v43 = vpack.c.bf16 %v6946_v55, %v6943_v20  ;;  %2970 = vmatprep.subr.bf16.mxu0 %v5508_v38  ;;  %v6975_v38 = vld [vmem:[%s8201_s10] ss:$0 sm:$0xff] }
 0x3b1   : > { %2971 = vmatpush1.bf16.msra.mxu0 %v5507_v59  ;;  %3197 = vmatpush1.bf16.msra.mxu1 %v5509_v23 }
 0x3b2   : > { %5913 = vmatprep.mubr.bf16.mxu0 %v6953_v43  ;;  %2972 = vmatprep.subr.bf16.mxu0 %v5500_v27 }
 0x3b3   : > { %5914 = vmatmul.mubr.bf16.gmra.mxu0 %v6957_v63  ;;  %2910 = vmatmul.mubr.bf16.gmra.mxu1 %v6784_v50 }
 0x3b4   : > { %2919 = vmatprep.mubr.bf16.mxu1 %v6927_v2  ;;  %3198 = vmatprep.subr.bf16.mxu1 %v5502_v48 }
 0x3b5   : > { %2973 = vmatpush1.bf16.msra.mxu0 %v5499_v34  ;;  %3199 = vmatpush1.bf16.msra.mxu1 %v5501_v39  ;;  %v1702_v34 = vld [vmem:[#allocation8 + $0x188] sm:$0xff] }
 0x3b6   : > { %2974 = vmatprep.subr.bf16.mxu0 %v5492_v46  ;;  %3200 = vmatprep.subr.bf16.mxu1 %v5494_v35  ;;  %v1706_v39 = vld [vmem:[#allocation8 + $0x1a8] sm:$0xff]  ;;  %v1831_v46 = vld [vmem:[#allocation8 + $0x590] sm:$0xff] }
 0x3b7   : > { %2992 = vmatprep.mubr.bf16.mxu0 %v8222_v15  ;;  %v5414_v35 = vcombine.high %v1702_v34, %v1706_v39  ;;  %v5544_v29 = vcombine.high %v1831_v46, %v1835_v51 }
 0x3b9   : > { %2975 = vmatpush1.bf16.msra.mxu0 %v5491_v17  ;;  %3201 = vmatpush1.bf16.msra.mxu1 %v5493_v57 }
 0x3ba   : > { %3073 = vmatprep.subr.bf16.mxu0 %v5422_v58  ;;  %3412 = vmatprep.subr.bf16.mxu1 %v5552_v45  ;;  %v1698_v58 = vld [vmem:[#allocation8 + $0x168] sm:$0xff] }
 0x3bb   : > { %2920 = vmatmul.mubr.bf16.gmra.mxu1 %v6809_v54 }
 0x3bc   : > { %2929 = vmatprep.mubr.bf16.mxu1 %v6932_v36 }
 0x3c3   : > { %2930 = vmatmul.mubr.bf16.gmra.mxu1 %v6814_v1 }
 0x3c4   : > { %2939 = vmatprep.mubr.bf16.mxu1 %v6953_v43 }
 0x3cb   : > { %2940 = vmatmul.mubr.bf16.gmra.mxu1 %v6837_v8 }
 0x3cc   : > { %2949 = vmatprep.mubr.bf16.mxu1 %v6957_v63 }
 0x3d3   : > { %2950 = vmatmul.mubr.bf16.gmra.mxu1 %v6841_v5 }
 0x3d4   : > { %3218 = vmatprep.mubr.bf16.mxu1 %v8222_v15 }
 0x45b   : > { %v5903_v22 = vpop.f32.mrf.mxu0 }
 0x45c   : > { %v1559_v48 = vadd.f32 %v5903_v22, %v6975_v38  ;;  %v5406_v22 = vcombine.high %v1694_v11, %v1698_v58 }
 0x45d   : > { %v1550_v49 = vpop.f32.mrf.mxu0 }
 0x45e   : > { %v1551_v52 = vadd.f32 %v6975_v38, %v1550_v49  ;;  %v1615_v16 = vmax.f32 %v1559_v48, 0.0  ;;  %v1815_v48 = vld [vmem:[#allocation8 + $0x510] sm:$0xff] }
 0x45f   : > { %v5904_v59 = vpop.f32.mrf.mxu0 }
 0x460   : > { %v1613_v4 = vmax.f32 %v1551_v52, 0.0  ;;  %v1562_v26 = vadd.f32 %v5904_v59, %v6975_v38  ;;  %v1686_v52 = vld [vmem:[#allocation8 + $0x108] sm:$0xff] }
 0x461   : > { %v1553_v23 = vpop.f32.mrf.mxu0  ;;  %v1690_v59 = vld [vmem:[#allocation8 + $0x128] sm:$0xff] }
 0x462   : > { %v1554_v7 = vadd.f32 %v6975_v38, %v1553_v23  ;;  %v1629_v53 = vadd.f32 %v1613_v4, %v6858_v21  ;;  %v1616_v17 = vmax.f32 %v1562_v26, 0.0  ;;  %v5413_v21 = vcombine.low %v1702_v34, %v1706_v39  ;;  %v1827_v26 = vld [vmem:[#allocation8 + $0x570] sm:$0xff] }
 0x463   : > { %v6979_v25 = vpop.f32.mrf.mxu0  ;;  %v5543_v23 = vcombine.low %v1831_v46, %v1835_v51  ;;  %v1631_v4 = vadd.f32 %v1615_v16, %v6865_v37  ;;  %v5398_v39 = vcombine.high %v1686_v52, %v1690_v59  ;;  %v5397_v51 = vcombine.low %v1686_v52, %v1690_v59 }
 0x464   : > { %v1614_v27 = vmax.f32 %v1554_v7, 0.0  ;;  %v1823_v7 = vld [vmem:[#allocation8 + $0x550] sm:$0xff] }
 0x465   : > { %v1566_v18 = vpop.f32.mrf.mxu0  ;;  %v5536_v46 = vcombine.high %v1823_v7, %v1827_v26 }
 0x466   : > { %v1630_v12 = vadd.f32 %v1614_v27, %v6861_v62  ;;  %v1632_v62 = vadd.f32 %v1616_v17, %v6855_v19  ;;  %v5405_v19 = vcombine.low %v1694_v11, %v1698_v58  ;;  %v1678_v17 = vld [vmem:[#allocation8 + $0xc8] sm:$0xff] }
 0x467   : > { %v5908_v13 = vpop.f32.mrf.mxu0 }
 0x468   : > { %v6985_v57 = vpack.c.bf16 %v1630_v12, %v1629_v53  ;;  %v6997_v27 = vpack.c.bf16 %v1632_v62, %v1631_v4  ;;  %v1819_v53 = vld [vmem:[#allocation8 + $0x530] sm:$0xff]  ;;  %v1575_v62 = vadd.f32 %v6979_v25, %v6975_v38 }
 0x469   : > { %v1569_v6 = vpop.f32.mrf.mxu0 }
 0x46a   : > { %8242 = vst [vmem:[#allocation26_spill] sm:$0xff] %v6985_v57  ;;  %2993 = vmatmul.mubr.bf16.vlgmr.msra.gmra.mxu0 %v6985_v57  ;;  %3219 = vmatmul.mubr.bf16.vlgmr.msra.gmra.mxu1 %v6985_v57  ;;  %v1570_v45 = vadd.f32 %v6975_v38, %v1569_v6  ;;  %v1578_v6 = vadd.f32 %v5908_v13, %v6975_v38  ;;  %v1807_v13 = vld [vmem:[#allocation8 + $0x4d0] sm:$0xff] }
 0x46b   : > { %3074 = vmatpush1.bf16.msra.mxu0 %v5421_v3  ;;  %3002 = vmatprep.mubr.bf16.mxu0 %v8222_v15  ;;  %v6993_v49 = vpop.f32.mrf.mxu0  ;;  %v1567_v3 = vadd.f32 %v6975_v38, %v1566_v18  ;;  %v5535_v18 = vcombine.low %v1823_v7, %v1827_v26  ;;  %v1666_v7 = vld [vmem:[#allocation8 + $0x68] sm:$0xff]  ;;  %v5527_v26 = vcombine.low %v1815_v48, %v1819_v53 }
 0x46c   : > { %3075 = vmatprep.subr.bf16.mxu0 %v5414_v35  ;;  %3228 = vmatprep.mubr.bf16.mxu1 %v8222_v15  ;;  %v1618_v34 = vmax.f32 %v1570_v45, 0.0  ;;  %v5528_v35 = vcombine.high %v1815_v48, %v1819_v53  ;;  %v1620_v52 = vmax.f32 %v1578_v6, 0.0  ;;  %v1654_v48 = vld [vmem:[#allocation8 + $0x8] sm:$0xff] }
 0x46d   : > { %3413 = vmatpush1.bf16.msra.mxu1 %v5551_v33  ;;  %v1582_v12 = vpop.f32.mrf.mxu0  ;;  %v1682_v33 = vld [vmem:[#allocation8 + $0xe8] sm:$0xff]  ;;  %v1617_v37 = vmax.f32 %v1567_v3, 0.0 }
 0x46e   : > { %3414 = vmatprep.subr.bf16.mxu1 %v5544_v29  ;;  %v1634_v11 = vadd.f32 %v1618_v34, %v6890_v0  ;;  %v5390_v58 = vcombine.high %v1678_v17, %v1682_v33  ;;  %v1670_v29 = vld [vmem:[#allocation8 + $0x88] sm:$0xff]  ;;  %v1811_v0 = vld [vmem:[#allocation8 + $0x4f0] sm:$0xff]  ;;  %v1636_v34 = vadd.f32 %v1620_v52, %v6884_v44 }
 0x46f   : > { %3076 = vmatpush1.bf16.msra.mxu0 %v5413_v21  ;;  %v7005_v16 = vpop.f32.mrf.mxu0  ;;  %v1674_v21 = vld [vmem:[#allocation8 + $0xa8] sm:$0xff]  ;;  %v1633_v45 = vadd.f32 %v1617_v37, %v6887_v60  ;;  %v5520_v60 = vcombine.high %v1807_v13, %v1811_v0 }
 0x470   : > { %3077 = vmatprep.subr.bf16.mxu0 %v5406_v22  ;;  %v5389_v22 = vcombine.low %v1678_v17, %v1682_v33  ;;  %v1662_v3 = vld [vmem:[#allocation8 + $0x48] sm:$0xff]  ;;  %v5381_v25 = vcombine.low %v1670_v29, %v1674_v21 }
 0x471   : > { %3415 = vmatpush1.bf16.msra.mxu1 %v5543_v23  ;;  %v7010_v59 = vpack.c.bf16 %v1634_v11, %v1633_v45  ;;  %v5382_v23 = vcombine.high %v1670_v29, %v1674_v21  ;;  %v1585_v4 = vpop.f32.mrf.mxu0  ;;  %v5374_v17 = vcombine.high %v1662_v3, %v1666_v7  ;;  %v1658_v53 = vld [vmem:[#allocation8 + $0x28] sm:$0xff]  ;;  %v5373_v44 = vcombine.low %v1662_v3, %v1666_v7  ;;  %v1791_v29 = vld [vmem:[#allocation8 + $0x450] sm:$0xff] }
 0x472   : > { %3003 = vmatmul.mubr.bf16.gmra.mxu0 %v6997_v27  ;;  %3229 = vmatmul.mubr.bf16.gmra.mxu1 %v6997_v27  ;;  %v1795_v21 = vld [vmem:[#allocation8 + $0x470] sm:$0xff]  ;;  %v1774_v45 = vld [vmem:[#allocation8 + $0x3c8] sm:$0xff] }
 0x473   : > { %3078 = vmatpush1.bf16.msra.mxu0 %v5405_v19  ;;  %3012 = vmatprep.mubr.bf16.mxu0 %v8222_v15  ;;  %v1619_v19 = vmax.f32 %v1575_v62, 0.0  ;;  %v7018_v33 = vpop.f32.mrf.mxu0  ;;  %v5504_v52 = vcombine.high %v1791_v29, %v1795_v21 }
 0x474   : > { %3079 = vmatprep.subr.bf16.mxu0 %v5398_v39  ;;  %3238 = vmatprep.mubr.bf16.mxu1 %v8222_v15  ;;  %v1586_v39 = vadd.f32 %v6975_v38, %v1585_v4 }
 0x475   : > { %3416 = vmatprep.subr.bf16.mxu1 %v5536_v46  ;;  %v5519_v46 = vcombine.low %v1807_v13, %v1811_v0  ;;  %v1635_v37 = vadd.f32 %v1619_v19, %v6894_v31  ;;  %v1598_v62 = vpop.f32.mrf.mxu0  ;;  %v5365_v0 = vcombine.low %v1654_v48, %v1658_v53  ;;  %v1770_v19 = vld [vmem:[#allocation8 + $0x3a8] sm:$0xff] }
 0x476   : > { %3417 = vmatpush1.bf16.msra.mxu1 %v5535_v18  ;;  %v1583_v18 = vadd.f32 %v6975_v38, %v1582_v12  ;;  %v1622_v11 = vmax.f32 %v1586_v39, 0.0  ;;  %v1787_v39 = vld [vmem:[#allocation8 + $0x430] sm:$0xff] }
 0x477   : > { %3080 = vmatpush1.bf16.msra.mxu0 %v5397_v51  ;;  %3418 = vmatprep.subr.bf16.mxu1 %v5528_v35  ;;  %v1799_v51 = vld [vmem:[#allocation8 + $0x490] sm:$0xff]  ;;  %v7022_v6 = vpack.c.bf16 %v1636_v34, %v1635_v37  ;;  %v5916_v7 = vpop.f32.mrf.mxu0  ;;  %v1762_v37 = vld [vmem:[#allocation8 + $0x368] sm:$0xff] }
 0x478   : > { %3081 = vmatprep.subr.bf16.mxu0 %v5390_v58  ;;  %v1803_v35 = vld [vmem:[#allocation8 + $0x4b0] sm:$0xff]  ;;  %v5366_v58 = vcombine.high %v1654_v48, %v1658_v53  ;;  %v1621_v31 = vmax.f32 %v1583_v18, 0.0  ;;  %v1638_v4 = vadd.f32 %v1622_v11, %v6918_v9  ;;  %v5503_v18 = vcombine.low %v1791_v29, %v1795_v21  ;;  %v1754_v29 = vld [vmem:[#allocation8 + $0x328] sm:$0xff] }
 0x479   : > { %v5512_v13 = vcombine.high %v1799_v51, %v1803_v35  ;;  %v5511_v12 = vcombine.low %v1799_v51, %v1803_v35  ;;  %v1601_v53 = vpop.f32.mrf.mxu0 }
 0x47a   : > { %3013 = vmatmul.mubr.bf16.gmra.mxu0 %v7010_v59  ;;  %3239 = vmatmul.mubr.bf16.gmra.mxu1 %v7010_v59 }
 0x47b   : > { %3082 = vmatpush1.bf16.msra.mxu0 %v5389_v22  ;;  %3022 = vmatprep.mubr.bf16.mxu0 %v8222_v15  ;;  %v1778_v22 = vld [vmem:[#allocation8 + $0x3e8] sm:$0xff] }
 0x47c   : > { %3083 = vmatprep.subr.bf16.mxu0 %v5382_v23  ;;  %3248 = vmatprep.mubr.bf16.mxu1 %v8222_v15  ;;  %v1594_v23 = vadd.f32 %v7005_v16, %v6975_v38  ;;  %v5486_v3 = vcombine.high %v1774_v45, %v1778_v22  ;;  %v5485_v34 = vcombine.low %v1774_v45, %v1778_v22  ;;  %v1783_v16 = vld [vmem:[#allocation8 + $0x410] sm:$0xff] }
 0x47d   : > { %3419 = vmatpush1.bf16.msra.mxu1 %v5527_v26  ;;  %v1766_v26 = vld [vmem:[#allocation8 + $0x388] sm:$0xff]  ;;  %v5495_v21 = vcombine.low %v1783_v16, %v1787_v39  ;;  %v1599_v22 = vadd.f32 %v6975_v38, %v1598_v62 }
 0x47e   : > { %3420 = vmatprep.subr.bf16.mxu1 %v5520_v60  ;;  %v1591_v60 = vadd.f32 %v6993_v49, %v6975_v38  ;;  %v1624_v9 = vmax.f32 %v1594_v23, 0.0  ;;  %v5478_v48 = vcombine.high %v1766_v26, %v1770_v19  ;;  %v5477_v49 = vcombine.low %v1766_v26, %v1770_v19  ;;  %v1742_v23 = vld [vmem:[#allocation8 + $0x2c8] sm:$0xff] }
 0x47f   : > { %3084 = vmatpush1.bf16.msra.mxu0 %v5381_v25  ;;  %v1637_v25 = vadd.f32 %v1621_v31, %v6915_v14  ;;  %v5496_v14 = vcombine.high %v1783_v16, %v1787_v39  ;;  %v7046_v31 = vld [vmem:[#allocation8 + $0x5f8] sm:$0xff]  ;;  %v1625_v62 = vmax.f32 %v1599_v22, 0.0  ;;  %v1610_v26 = vadd.f32 %v5916_v7, %v6975_v38  ;;  %v1726_v7 = vld [vmem:[#allocation8 + $0x248] sm:$0xff] }
 0x480   : > { %3085 = vmatprep.subr.bf16.mxu0 %v5374_v17  ;;  %v1623_v51 = vmax.f32 %v1591_v60, 0.0  ;;  %v1640_v35 = vadd.f32 %v1624_v9, %v6912_v47  ;;  %v1607_v16 = vadd.f32 %v7018_v33, %v6975_v38  ;;  %v1718_v33 = vld [vmem:[#allocation8 + $0x208] sm:$0xff]  ;;  %v1832_v22 = vld [vmem:[#allocation8 + $0x598] sm:$0xff] }
 0x481   : > { %3421 = vmatpush1.bf16.msra.mxu1 %v5519_v46  ;;  %v7034_v17 = vpack.c.bf16 %v1638_v4, %v1637_v25  ;;  %v1758_v46 = vld [vmem:[#allocation8 + $0x348] sm:$0xff]  ;;  %v1641_v39 = vadd.f32 %v1625_v62, %v6943_v20 }
 0x482   : > { %3023 = vmatmul.mubr.bf16.gmra.mxu0 %v7022_v6  ;;  %3249 = vmatmul.mubr.bf16.gmra.mxu1 %v7022_v6  ;;  %v5470_v11 = vcombine.high %v1758_v46, %v1762_v37  ;;  %v1639_v45 = vadd.f32 %v1623_v51, %v6922_v56  ;;  %v5469_v47 = vcombine.low %v1758_v46, %v1762_v37  ;;  %v1746_v4 = vld [vmem:[#allocation8 + $0x2e8] sm:$0xff]  ;;  %v1627_v37 = vmax.f32 %v1607_v16, 0.0 }
 0x483   : > { %3086 = vmatpush1.bf16.msra.mxu0 %v5373_v44  ;;  %3032 = vmatprep.mubr.bf16.mxu0 %v8222_v15  ;;  %v1602_v44 = vadd.f32 %v6975_v38, %v1601_v53  ;;  %v5454_v60 = vcombine.high %v1742_v23, %v1746_v4  ;;  %v1734_v25 = vld [vmem:[#allocation8 + $0x288] sm:$0xff]  ;;  %v5453_v9 = vcombine.low %v1742_v23, %v1746_v4  ;;  %v1699_v23 = vld [vmem:[#allocation8 + $0x170] sm:$0xff] }
 0x484   : > { %3087 = vmatprep.subr.bf16.mxu0 %v5366_v58  ;;  %3258 = vmatprep.mubr.bf16.mxu1 %v8222_v15  ;;  %v1750_v58 = vld [vmem:[#allocation8 + $0x308] sm:$0xff] }
 0x485   : > { %3422 = vmatprep.subr.bf16.mxu1 %v5512_v13  ;;  %v7044_v13 = vld [vmem:[#allocation8 + $0x5d8] sm:$0xff]  ;;  %v1730_v46 = vld [vmem:[#allocation8 + $0x268] sm:$0xff] }
 0x486   : > { %3423 = vmatpush1.bf16.msra.mxu1 %v5511_v12  ;;  %v7048_v12 = vpack.c.bf16 %v1640_v35, %v1639_v45  ;;  %v7052_v56 = vcombine.high %v7044_v13, %v7046_v31  ;;  %v5438_v38 = vcombine.high %v1726_v7, %v1730_v46  ;;  %v1722_v51 = vld [vmem:[#allocation8 + $0x228] sm:$0xff]  ;;  %v7080_v4 = vcombine.low %v7044_v13, %v7046_v31  ;;  %v1824_v31 = vld [vmem:[#allocation8 + $0x558] sm:$0xff] }
 0x487   : > { %3088 = vmatpush1.bf16.msra.mxu0 %v5365_v0  ;;  %3424 = vmatprep.subr.bf16.mxu1 %v5504_v52  ;;  %v1626_v0 = vmax.f32 %v1602_v44, 0.0  ;;  %v5462_v52 = vcombine.high %v1750_v58, %v1754_v29  ;;  %v5430_v44 = vcombine.high %v1718_v33, %v1722_v51 }
 0x488   : > { %3089 = vmatprep.subr.bf16.mxu0 %v5486_v3  ;;  %v5461_v3 = vcombine.low %v1750_v58, %v1754_v29  ;;  %v1715_v58 = vld [vmem:[#allocation8 + $0x1f0] sm:$0xff] }
 0x489   : > { %v1642_v19 = vadd.f32 %v1626_v0, %v6946_v55 }
 0x48a   : > { %3033 = vmatmul.mubr.bf16.gmra.mxu0 %v7034_v17  ;;  %3259 = vmatmul.mubr.bf16.gmra.mxu1 %v7034_v17 }
 0x48b   : > { %3090 = vmatpush2.bf16.msra.mxu0 %v5485_v34  ;;  %3042 = vmatprep.mubr.bf16.mxu0 %v8222_v15  ;;  %v1738_v34 = vld [vmem:[#allocation8 + $0x2a8] sm:$0xff]  ;;  %v7064_v53 = vpack.c.bf16 %v1642_v19, %v1641_v39 }
 0x48c   : > { %3091 = vmatprep.subr.bf16.mxu0 %v5478_v48  ;;  %3268 = vmatprep.mubr.bf16.mxu1 %v8222_v15  ;;  %v1628_v48 = vmax.f32 %v1610_v26, 0.0  ;;  %v5446_v55 = vcombine.high %v1734_v25, %v1738_v34  ;;  %v7087_v26 = vpop.f32.mrf.mxu1 }
 0x48d   : > { %3425 = vmatpush1.bf16.msra.mxu1 %v5503_v18  ;;  %v5445_v18 = vcombine.low %v1734_v25, %v1738_v34  ;;  %v1691_v25 = vld [vmem:[#allocation8 + $0x130] sm:$0xff]  ;;  %v1828_v34 = vld [vmem:[#allocation8 + $0x578] sm:$0xff] }
 0x48e   : > { %3426 = vmatprep.subr.bf16.mxu1 %v5496_v14  ;;  %v1644_v20 = vadd.f32 %v1628_v48, %v6940_v41  ;;  %v1643_v14 = vadd.f32 %v1627_v37, %v6949_v61  ;;  %v5429_v41 = vcombine.low %v1718_v33, %v1722_v51  ;;  %v1703_v61 = vld [vmem:[#allocation8 + $0x190] sm:$0xff]  ;;  %v7094_v39 = vpop.f32.mrf.mxu1  ;;  %v1816_v48 = vld [vmem:[#allocation8 + $0x518] sm:$0xff]  ;;  %v7097_v37 = vcombine.high %v1824_v31, %v1828_v34 }
 0x48f   : > { %3092 = vmatpush2.bf16.msra.mxu0 %v5477_v49  ;;  %v5437_v49 = vcombine.low %v1726_v7, %v1730_v46  ;;  %v1679_v7 = vld [vmem:[#allocation8 + $0xd0] sm:$0xff] }
 0x490   : > { %3093 = vmatprep.subr.bf16.mxu0 %v5470_v11  ;;  %v7072_v35 = vpack.c.bf16 %v1644_v20, %v1643_v14  ;;  %v1711_v11 = vld [vmem:[#allocation8 + $0x1d0] sm:$0xff]  ;;  %v7106_v33 = vpop.f32.mrf.mxu1 }
 0x491   : > { %3427 = vmatpush1.bf16.msra.mxu1 %v5495_v21  ;;  %v5424_v29 = vcombine.high %v1711_v11, %v1715_v58  ;;  %v1707_v21 = vld [vmem:[#allocation8 + $0x1b0] sm:$0xff]  ;;  %v5423_v45 = vcombine.low %v1711_v11, %v1715_v58  ;;  %v1808_v11 = vld [vmem:[#allocation8 + $0x4d8] sm:$0xff] }
 0x492   : > { %3043 = vmatmul.mubr.bf16.gmra.mxu0 %v7048_v12  ;;  %3269 = vmatmul.mubr.bf16.gmra.mxu1 %v7048_v12  ;;  %v5416_v0 = vcombine.high %v1703_v61, %v1707_v21  ;;  %v1683_v46 = vld [vmem:[#allocation8 + $0xf0] sm:$0xff]  ;;  %v1812_v58 = vld [vmem:[#allocation8 + $0x4f8] sm:$0xff] }
 0x493   : > { %3094 = vmatpush2.bf16.msra.mxu0 %v5469_v47  ;;  %3052 = vmatprep.mubr.bf16.mxu0 %v8222_v15  ;;  %v1836_v47 = vld [vmem:[#allocation8 + $0x5b8] sm:$0xff]  ;;  %v5392_v51 = vcombine.high %v1679_v7, %v1683_v46  ;;  %v1671_v14 = vld [vmem:[#allocation8 + $0x90] sm:$0xff] }
 0x494   : > { %3095 = vmatprep.subr.bf16.mxu0 %v5462_v52  ;;  %3278 = vmatprep.mubr.bf16.mxu1 %v8222_v15  ;;  %v1695_v52 = vld [vmem:[#allocation8 + $0x150] sm:$0xff]  ;;  %v7084_v62 = vcombine.high %v1832_v22, %v1836_v47  ;;  %v7091_v13 = vcombine.low %v1832_v22, %v1836_v47  ;;  %v7118_v22 = vcombine.high %v1808_v11, %v1812_v58 }
 0x495   : > { %5917 = vmatprep.subr.bf16.mxu1 %v7052_v56  ;;  %v5408_v19 = vcombine.high %v1695_v52, %v1699_v23  ;;  %v5407_v16 = vcombine.low %v1695_v52, %v1699_v23  ;;  %v1655_v23 = vld [vmem:[#allocation8 + $0x10] sm:$0xff] }
 0x497   : > { %3096 = vmatpush2.bf16.msra.mxu0 %v5461_v3  ;;  %v5415_v3 = vcombine.low %v1703_v61, %v1707_v21  ;;  %v1663_v61 = vld [vmem:[#allocation8 + $0x50] sm:$0xff] }
 0x498   : > { %3097 = vmatprep.subr.bf16.mxu0 %v5454_v60  ;;  %v1687_v60 = vld [vmem:[#allocation8 + $0x110] sm:$0xff] }
 0x499   : > { %v5399_v20 = vcombine.low %v1687_v60, %v1691_v25  ;;  %v1667_v21 = vld [vmem:[#allocation8 + $0x70] sm:$0xff] }
 0x49a   : > { %3053 = vmatmul.mubr.bf16.gmra.mxu0 %v7064_v53  ;;  %3279 = vmatmul.mubr.bf16.gmra.mxu1 %v7064_v53  ;;  %v5376_v52 = vcombine.high %v1663_v61, %v1667_v21 }
 0x49b   : > { %3098 = vmatpush2.bf16.msra.mxu0 %v5453_v9  ;;  %3062 = vmatprep.mubr.bf16.mxu0 %v8222_v15  ;;  %v5400_v9 = vcombine.high %v1687_v60, %v1691_v25  ;;  %v1800_v60 = vld [vmem:[#allocation8 + $0x498] sm:$0xff] }
 0x49c   : > { %3099 = vmatprep.subr.bf16.mxu0 %v5446_v55  ;;  %3288 = vmatprep.mubr.bf16.mxu1 %v8222_v15  ;;  %v1820_v55 = vld [vmem:[#allocation8 + $0x538] sm:$0xff] }
 0x49d   : > { %v1804_v25 = vld [vmem:[#allocation8 + $0x4b8] sm:$0xff] }
 0x49f   : > { %3100 = vmatpush2.bf16.msra.mxu0 %v5445_v18  ;;  %v7101_v18 = vcombine.low %v1824_v31, %v1828_v34  ;;  %v5375_v31 = vcombine.low %v1663_v61, %v1667_v21  ;;  %v1784_v61 = vld [vmem:[#allocation8 + $0x418] sm:$0xff] }
 0x4a0   : > { %3101 = vmatprep.subr.bf16.mxu0 %v5438_v38  ;;  %v7104_v38 = vcombine.high %v1816_v48, %v1820_v55  ;;  %v1788_v21 = vld [vmem:[#allocation8 + $0x438] sm:$0xff] }
 0x4a2   : > { %3063 = vmatmul.mubr.bf16.gmra.mxu0 %v7072_v35  ;;  %3289 = vmatmul.mubr.bf16.gmra.mxu1 %v7072_v35 }
 0x4a3   : > { %3102 = vmatpush2.bf16.msra.mxu0 %v5437_v49  ;;  %3105 = vmatprep.mubr.bf16.mxu0 %v6870_v24  ;;  %v1675_v49 = vld [vmem:[#allocation8 + $0xb0] sm:$0xff] }
 0x4a4   : > { %3103 = vmatprep.subr.bf16.mxu0 %v5430_v44  ;;  %3444 = vmatprep.mubr.bf16.mxu1 %v8222_v15  ;;  %v5391_v44 = vcombine.low %v1679_v7, %v1683_v46  ;;  %v5383_v47 = vcombine.low %v1671_v14, %v1675_v49  ;;  %v1779_v7 = vld [vmem:[#allocation8 + $0x3f0] sm:$0xff]  ;;  %v7131_v46 = vcombine.high %v1800_v60, %v1804_v25 }
 0x4a7   : > { %3104 = vmatpush2.bf16.msra.mxu0 %v5429_v41  ;;  %v7112_v41 = vpop.f32.mrf.mxu1 }
 0x4a8   : > { %3299 = vmatprep.subr.bf16.mxu0 %v5424_v29  ;;  %v5384_v29 = vcombine.high %v1671_v14, %v1675_v49 }
 0x4aa   : > { %3106 = vmatmul.mubr.bf16.vlgmr.msra.gmra.mxu0 %v6749_v28  ;;  %3445 = vmatmul.mubr.bf16.vlgmr.msra.gmra.mxu1 %v6985_v57 }
 0x4ab   : > { %3300 = vmatpush1.bf16.msra.mxu0 %v5423_v45  ;;  %3115 = vmatprep.mubr.bf16.mxu0 %v6875_v10  ;;  %v7114_v45 = vcombine.low %v1816_v48, %v1820_v55  ;;  %v1796_v48 = vld [vmem:[#allocation8 + $0x478] sm:$0xff]  ;;  %v1775_v55 = vld [vmem:[#allocation8 + $0x3d0] sm:$0xff] }
 0x4ac   : > { %3301 = vmatprep.subr.bf16.mxu0 %v5416_v0  ;;  %3454 = vmatprep.mubr.bf16.mxu1 %v8222_v15  ;;  %v7121_v0 = vpop.f32.mrf.mxu1 }
 0x4ad   : > { %5925 = vmatpush1.bf16.msra.mxu1 %v7080_v4 }
 0x4ae   : > { %5918 = vmatprep.subr.bf16.mxu1 %v7084_v62  ;;  %v7128_v34 = vpop.f32.mrf.mxu1 }
 0x4af   : > { %3302 = vmatpush1.bf16.msra.mxu0 %v5415_v3  ;;  %v1659_v3 = vld [vmem:[#allocation8 + $0x30] sm:$0xff] }
 0x4b0   : > { %3303 = vmatprep.subr.bf16.mxu0 %v5408_v19  ;;  %v7125_v19 = vcombine.low %v1808_v11, %v1812_v58  ;;  %v7140_v49 = vpop.f32.mrf.mxu1  ;;  %v1767_v11 = vld [vmem:[#allocation8 + $0x390] sm:$0xff] }
 0x4b1   : > { %5926 = vmatpush1.bf16.msra.mxu1 %v7091_v13  ;;  %v1771_v58 = vld [vmem:[#allocation8 + $0x3b0] sm:$0xff] }
 0x4b2   : > { %3116 = vmatmul.mubr.bf16.gmra.mxu0 %v6754_v32  ;;  %3455 = vmatmul.mubr.bf16.gmra.mxu1 %v6997_v27 }
 0x4b3   : > { %3304 = vmatpush1.bf16.msra.mxu0 %v5407_v16  ;;  %3125 = vmatprep.mubr.bf16.mxu0 %v6899_v40  ;;  %v5368_v16 = vcombine.high %v1655_v23, %v1659_v3 }
 0x4b4   : > { %3305 = vmatprep.subr.bf16.mxu0 %v5400_v9  ;;  %3464 = vmatprep.mubr.bf16.mxu1 %v8222_v15  ;;  %v1792_v9 = vld [vmem:[#allocation8 + $0x458] sm:$0xff] }
 0x4b5   : > { %5919 = vmatprep.subr.bf16.mxu1 %v7097_v37  ;;  %v7138_v14 = vcombine.high %v1792_v9, %v1796_v48 }
 0x4b6   : > { %5927 = vmatpush1.bf16.msra.mxu1 %v7101_v18 }
 0x4b7   : > { %3306 = vmatpush1.bf16.msra.mxu0 %v5399_v20  ;;  %5920 = vmatprep.subr.bf16.mxu1 %v7104_v38  ;;  %v7135_v20 = vcombine.low %v1800_v60, %v1804_v25  ;;  %8243 = vst [vmem:[#allocation27_spill] sm:$0xff] %v7138_v14  ;;  %v7148_v60 = vcombine.low %v1792_v9, %v1796_v48 }
 0x4b8   : > { %3307 = vmatprep.subr.bf16.mxu0 %v5392_v51  ;;  %v5367_v51 = vcombine.low %v1655_v23, %v1659_v3  ;;  %v1759_v23 = vld [vmem:[#allocation8 + $0x350] sm:$0xff]  ;;  %v7152_v25 = vcombine.high %v1784_v61, %v1788_v21  ;;  %v7159_v9 = vcombine.low %v1784_v61, %v1788_v21 }
 0x4b9   : > { %v1763_v3 = vld [vmem:[#allocation8 + $0x370] sm:$0xff]  ;;  %8244 = vst [vmem:[#allocation28_spill] sm:$0xff] %v7148_v60 }
 0x4ba   : > { %3126 = vmatmul.mubr.bf16.gmra.mxu0 %v6779_v42  ;;  %3465 = vmatmul.mubr.bf16.gmra.mxu1 %v7010_v59  ;;  %8245 = vst [vmem:[#allocation29_spill] sm:$0xff] %v7152_v25  ;;  %8246 = vst [vmem:[#allocation30_spill] sm:$0xff] %v7159_v9  ;;  %v5471_v48 = vcombine.low %v1759_v23, %v1763_v3 }
 0x4bb   : > { %3308 = vmatpush1.bf16.msra.mxu0 %v5391_v44  ;;  %3135 = vmatprep.mubr.bf16.mxu0 %v6904_v30  ;;  %v5488_v44 = vcombine.high %v1775_v55, %v1779_v7 }
 0x4bc   : > { %3309 = vmatprep.subr.bf16.mxu0 %v5384_v29  ;;  %3474 = vmatprep.mubr.bf16.mxu1 %v8222_v15  ;;  %v5487_v29 = vcombine.low %v1775_v55, %v1779_v7  ;;  %v5472_v55 = vcombine.high %v1759_v23, %v1763_v3  ;;  %v1751_v7 = vld [vmem:[#allocation8 + $0x310] sm:$0xff] }
 0x4bd   : > { %5928 = vmatpush1.bf16.msra.mxu1 %v7114_v45  ;;  %v1735_v23 = vld [vmem:[#allocation8 + $0x290] sm:$0xff] }
 0x4be   : > { %5921 = vmatprep.subr.bf16.mxu1 %v7118_v22  ;;  %v1739_v3 = vld [vmem:[#allocation8 + $0x2b0] sm:$0xff] }
 0x4bf   : > { %3310 = vmatpush1.bf16.msra.mxu0 %v5383_v47  ;;  %v7146_v47 = vpop.f32.mrf.mxu1  ;;  %v5448_v57 = vcombine.high %v1735_v23, %v1739_v3 }
 0x4c0   : > { %3311 = vmatprep.subr.bf16.mxu0 %v5376_v52  ;;  %v5480_v52 = vcombine.high %v1767_v11, %v1771_v58 }
 0x4c1   : > { %5929 = vmatpush1.bf16.msra.mxu1 %v7125_v19 }
 0x4c2   : > { %3136 = vmatmul.mubr.bf16.gmra.mxu0 %v6784_v50  ;;  %3475 = vmatmul.mubr.bf16.gmra.mxu1 %v7022_v6 }
 0x4c3   : > { %3312 = vmatpush1.bf16.msra.mxu0 %v5375_v31  ;;  %3145 = vmatprep.mubr.bf16.mxu0 %v6927_v2  ;;  %v5479_v31 = vcombine.low %v1767_v11, %v1771_v58  ;;  %v1743_v58 = vld [vmem:[#allocation8 + $0x2d0] sm:$0xff] }
 0x4c4   : > { %3313 = vmatprep.subr.bf16.mxu0 %v5368_v16  ;;  %3484 = vmatprep.mubr.bf16.mxu1 %v8222_v15  ;;  %v7155_v16 = vpop.f32.mrf.mxu1 }
 0x4c5   : > { %5922 = vmatprep.subr.bf16.mxu1 %v7131_v46 }
 0x4c6   : > { %5930 = vmatpush1.bf16.msra.mxu1 %v7135_v20 }
 0x4c7   : > { %3314 = vmatpush1.bf16.msra.mxu0 %v5367_v51  ;;  %5923 = vmatprep.subr.bf16.mxu1 %v7138_v14  ;;  %v1755_v51 = vld [vmem:[#allocation8 + $0x330] sm:$0xff]  ;;  %v1716_v14 = vld [vmem:[#allocation8 + $0x1f8] sm:$0xff] }
 0x4c8   : > { %3315 = vmatprep.subr.bf16.mxu0 %v5488_v44  ;;  %v7162_v44 = vpop.f32.mrf.mxu1  ;;  %v5464_v11 = vcombine.high %v1751_v7, %v1755_v51  ;;  %v5463_v61 = vcombine.low %v1751_v7, %v1755_v51  ;;  %v5447_v7 = vcombine.low %v1735_v23, %v1739_v3 }
 0x4ca   : > { %3146 = vmatmul.mubr.bf16.gmra.mxu0 %v6809_v54  ;;  %3485 = vmatmul.mubr.bf16.gmra.mxu1 %v7034_v17  ;;  %v7168_v21 = vpop.f32.mrf.mxu1 }
 0x4cb   : > { %3316 = vmatpush2.bf16.msra.mxu0 %v5487_v29  ;;  %3155 = vmatprep.mubr.bf16.mxu0 %v6932_v36  ;;  %v1747_v29 = vld [vmem:[#allocation8 + $0x2f0] sm:$0xff] }
 0x4cc   : > { %3317 = vmatprep.subr.bf16.mxu0 %v5480_v52  ;;  %3494 = vmatprep.mubr.bf16.mxu1 %v8222_v15  ;;  %v5456_v52 = vcombine.high %v1743_v58, %v1747_v29 }
 0x4cd   : > { %5931 = vmatpush1.bf16.msra.mxu1 %v7148_v60  ;;  %v1712_v60 = vld [vmem:[#allocation8 + $0x1d8] sm:$0xff] }
 0x4ce   : > { %5924 = vmatprep.subr.bf16.mxu1 %v7152_v25  ;;  %v1731_v25 = vld [vmem:[#allocation8 + $0x270] sm:$0xff]  ;;  %v5426_v3 = vcombine.high %v1712_v60, %v1716_v14 }
 0x4cf   : > { %3318 = vmatpush2.bf16.msra.mxu0 %v5479_v31  ;;  %v5455_v31 = vcombine.low %v1743_v58, %v1747_v29  ;;  %v1723_v58 = vld [vmem:[#allocation8 + $0x230] sm:$0xff] }
 0x4d0   : > { %3319 = vmatprep.subr.bf16.mxu0 %v5472_v55  ;;  %v7171_v55 = vpop.f32.mrf.mxu1 }
 0x4d1   : > { %5932 = vmatpush1.bf16.msra.mxu1 %v7159_v9  ;;  %v1727_v9 = vld [vmem:[#allocation8 + $0x250] sm:$0xff] }
 0x4d2   : > { %3156 = vmatmul.mubr.bf16.gmra.mxu0 %v6814_v1  ;;  %3495 = vmatmul.mubr.bf16.gmra.mxu1 %v7048_v12  ;;  %v7176_v51 = vpop.f32.mrf.mxu1  ;;  %v5439_v29 = vcombine.low %v1727_v9, %v1731_v25 }
 0x4d3   : > { %3320 = vmatpush2.bf16.msra.mxu0 %v5471_v48  ;;  %3165 = vmatprep.mubr.bf16.mxu0 %v6953_v43  ;;  %8247 = vst [vmem:[#allocation31_spill] sm:$0xff] %v7176_v51  ;;  %v5440_v48 = vcombine.high %v1727_v9, %v1731_v25  ;;  %v1704_v25 = vld [vmem:[#allocation8 + $0x198] sm:$0xff] }
 0x4d4   : > { %3321 = vmatprep.subr.bf16.mxu0 %v5464_v11  ;;  %3504 = vmatprep.mubr.bf16.mxu1 %v8222_v15  ;;  %v1719_v11 = vld [vmem:[#allocation8 + $0x210] sm:$0xff]  ;;  %v1708_v9 = vld [vmem:[#allocation8 + $0x1b8] sm:$0xff] }
 0x4d5   : > { %v1700_v51 = vld [vmem:[#allocation8 + $0x178] sm:$0xff] }
 0x4d7   : > { %3322 = vmatpush2.bf16.msra.mxu0 %v5463_v61  ;;  %v7179_v61 = vpop.f32.mrf.mxu1 }
 0x4d8   : > { %3323 = vmatprep.subr.bf16.mxu0 %v5456_v52  ;;  %8248 = vst [vmem:[#allocation32_spill] sm:$0xff] %v7179_v61  ;;  %v5432_v52 = vcombine.high %v1719_v11, %v1723_v58  ;;  %v1696_v61 = vld [vmem:[#allocation8 + $0x158] sm:$0xff] }
 0x4d9   : > { %v7184_v23 = vpop.f32.mrf.mxu1 }
 0x4da   : > { %3166 = vmatmul.mubr.bf16.gmra.mxu0 %v6837_v8  ;;  %3505 = vmatmul.mubr.bf16.gmra.mxu1 %v7064_v53 }
 0x4db   : > { %3324 = vmatpush2.bf16.msra.mxu0 %v5455_v31  ;;  %3175 = vmatprep.mubr.bf16.mxu0 %v6957_v63  ;;  %v5425_v31 = vcombine.low %v1712_v60, %v1716_v14  ;;  %v1688_v14 = vld [vmem:[#allocation8 + $0x118] sm:$0xff] }
 0x4dc   : > { %3325 = vmatprep.subr.bf16.mxu0 %v5448_v57  ;;  %3514 = vmatprep.mubr.bf16.mxu1 %v8222_v15  ;;  %v5431_v57 = vcombine.low %v1719_v11, %v1723_v58  ;;  %v5417_v11 = vcombine.low %v1704_v25, %v1708_v9  ;;  %v1692_v60 = vld [vmem:[#allocation8 + $0x138] sm:$0xff] }
 0x4df   : > { %3326 = vmatpush2.bf16.msra.mxu0 %v5447_v7  ;;  %v7187_v7 = vpop.f32.mrf.mxu1 }
 0x4e0   : > { %3327 = vmatprep.subr.bf16.mxu0 %v5440_v48  ;;  %8249 = vst [vmem:[#allocation33_spill] sm:$0xff] %v7187_v7  ;;  %v5418_v48 = vcombine.high %v1704_v25, %v1708_v9  ;;  %v1680_v7 = vld [vmem:[#allocation8 + $0xd8] sm:$0xff]  ;;  %v5401_v25 = vcombine.low %v1688_v14, %v1692_v60 }
 0x4e1   : > { %v7192_v58 = vpop.f32.mrf.mxu1 }
 0x4e2   : > { %3176 = vmatmul.mubr.bf16.gmra.mxu0 %v6841_v5  ;;  %3515 = vmatmul.mubr.bf16.gmra.mxu1 %v7072_v35 }
 0x4e3   : > { %3328 = vmatpush2.bf16.msra.mxu0 %v5439_v29  ;;  %3331 = vmatprep.mubr.bf16.mxu0 %v6870_v24  ;;  %v5410_v29 = vcombine.high %v1696_v61, %v1700_v51 }
 0x4e4   : > { %3329 = vmatprep.subr.bf16.mxu0 %v5432_v52  ;;  %3680 = vmatprep.mubr.bf16.mxu1 %v8222_v15  ;;  %v5409_v52 = vcombine.low %v1696_v61, %v1700_v51  ;;  %v1672_v51 = vld [vmem:[#allocation8 + $0x98] sm:$0xff] }
 0x4e5   : > { %v1676_v61 = vld [vmem:[#allocation8 + $0xb8] sm:$0xff] }
 0x4e7   : > { %3330 = vmatpush2.bf16.msra.mxu0 %v5431_v57  ;;  %v7195_v57 = vpop.f32.mrf.mxu1 }
 0x4e8   : > { %3525 = vmatprep.subr.bf16.mxu0 %v5426_v3  ;;  %8250 = vst [vmem:[#allocation34_spill] sm:$0xff] %v7195_v57  ;;  %v5402_v3 = vcombine.high %v1688_v14, %v1692_v60  ;;  %v1664_v57 = vld [vmem:[#allocation8 + $0x58] sm:$0xff]  ;;  %v5385_v14 = vcombine.low %v1672_v51, %v1676_v61 }
 0x4e9   : > { %v7200_v9 = vpop.f32.mrf.mxu1 }
 0x4ea   : > { %3332 = vmatmul.mubr.bf16.vlgmr.msra.gmra.mxu0 %v6749_v28  ;;  %3681 = vmatmul.mubr.bf16.vlgmr.msra.gmra.mxu1 %v6997_v27  ;;  %v1684_v27 = vld [vmem:[#allocation8 + $0xf8] sm:$0xff] }
 0x4eb   : > { %3526 = vmatpush1.bf16.msra.mxu0 %v5425_v31  ;;  %3341 = vmatprep.mubr.bf16.mxu0 %v6875_v10  ;;  %v5394_v31 = vcombine.high %v1680_v7, %v1684_v27 }
 0x4ec   : > { %3527 = vmatprep.subr.bf16.mxu0 %v5418_v48  ;;  %3690 = vmatprep.mubr.bf16.mxu1 %v8222_v15  ;;  %v5393_v48 = vcombine.low %v1680_v7, %v1684_v27  ;;  %v1656_v7 = vld [vmem:[#allocation8 + $0x18] sm:$0xff] }
 0x4ef   : > { %3528 = vmatpush1.bf16.msra.mxu0 %v5417_v11  ;;  %v7203_v11 = vpop.f32.mrf.mxu1 }
 0x4f0   : > { %3529 = vmatprep.subr.bf16.mxu0 %v5410_v29  ;;  %8251 = vst [vmem:[#allocation35_spill] sm:$0xff] %v7203_v11  ;;  %v5386_v29 = vcombine.high %v1672_v51, %v1676_v61  ;;  %v1776_v11 = vld [vmem:[#allocation8 + $0x3d8] sm:$0xff] }
 0x4f1   : > { %v7208_v60 = vpop.f32.mrf.mxu1 }
 0x4f2   : > { %3342 = vmatmul.mubr.bf16.gmra.mxu0 %v6754_v32  ;;  %3691 = vmatmul.mubr.bf16.gmra.mxu1 %v7010_v59  ;;  %v1668_v59 = vld [vmem:[#allocation8 + $0x78] sm:$0xff] }
 0x4f3   : > { %3530 = vmatpush1.bf16.msra.mxu0 %v5409_v52  ;;  %3351 = vmatprep.mubr.bf16.mxu0 %v6899_v40  ;;  %v5378_v52 = vcombine.high %v1664_v57, %v1668_v59  ;;  %v5377_v27 = vcombine.low %v1664_v57, %v1668_v59  ;;  %v1768_v57 = vld [vmem:[#allocation8 + $0x398] sm:$0xff] }
 0x4f4   : > { %3531 = vmatprep.subr.bf16.mxu0 %v5402_v3  ;;  %3700 = vmatprep.mubr.bf16.mxu1 %v8222_v15  ;;  %v1660_v3 = vld [vmem:[#allocation8 + $0x38] sm:$0xff] }
 0x4f5   : > { %v5369_v51 = vcombine.low %v1656_v7, %v1660_v3 }
 0x4f7   : > { %3532 = vmatpush1.bf16.msra.mxu0 %v5401_v25  ;;  %v7211_v25 = vpop.f32.mrf.mxu1 }
 0x4f8   : > { %3533 = vmatprep.subr.bf16.mxu0 %v5394_v31  ;;  %8252 = vst [vmem:[#allocation36_spill] sm:$0xff] %v7211_v25  ;;  %v5370_v31 = vcombine.high %v1656_v7, %v1660_v3  ;;  %v1760_v25 = vld [vmem:[#allocation8 + $0x358] sm:$0xff] }
 0x4f9   : > { %v7216_v61 = vpop.f32.mrf.mxu1 }
 0x4fa   : > { %3352 = vmatmul.mubr.bf16.gmra.mxu0 %v6779_v42  ;;  %3701 = vmatmul.mubr.bf16.gmra.mxu1 %v7022_v6  ;;  %v1780_v6 = vld [vmem:[#allocation8 + $0x3f8] sm:$0xff] }
 0x4fb   : > { %3534 = vmatpush1.bf16.msra.mxu0 %v5393_v48  ;;  %3361 = vmatprep.mubr.bf16.mxu0 %v6904_v30  ;;  %v5490_v48 = vcombine.high %v1776_v11, %v1780_v6  ;;  %v5489_v59 = vcombine.low %v1776_v11, %v1780_v6  ;;  %v1752_v11 = vld [vmem:[#allocation8 + $0x318] sm:$0xff] }
 0x4fc   : > { %3535 = vmatprep.subr.bf16.mxu0 %v5386_v29  ;;  %3710 = vmatprep.mubr.bf16.mxu1 %v8222_v15  ;;  %v1772_v29 = vld [vmem:[#allocation8 + $0x3b8] sm:$0xff] }
 0x4fd   : > { %v5481_v7 = vcombine.low %v1768_v57, %v1772_v29 }
 0x4ff   : > { %3536 = vmatpush1.bf16.msra.mxu0 %v5385_v14  ;;  %v7219_v14 = vpop.f32.mrf.mxu1 }
 0x500   : > { %3537 = vmatprep.subr.bf16.mxu0 %v5378_v52  ;;  %8253 = vst [vmem:[#allocation37_spill] sm:$0xff] %v7219_v14  ;;  %v5482_v52 = vcombine.high %v1768_v57, %v1772_v29  ;;  %v1744_v14 = vld [vmem:[#allocation8 + $0x2d8] sm:$0xff] }
 0x501   : > { %v7224_v3 = vpop.f32.mrf.mxu1 }
 0x502   : > { %3362 = vmatmul.mubr.bf16.gmra.mxu0 %v6784_v50  ;;  %3711 = vmatmul.mubr.bf16.gmra.mxu1 %v7034_v17  ;;  %v1764_v17 = vld [vmem:[#allocation8 + $0x378] sm:$0xff] }
 0x503   : > { %3538 = vmatpush1.bf16.msra.mxu0 %v5377_v27  ;;  %3371 = vmatprep.mubr.bf16.mxu0 %v6927_v2  ;;  %v5474_v27 = vcombine.high %v1760_v25, %v1764_v17  ;;  %v5473_v6 = vcombine.low %v1760_v25, %v1764_v17  ;;  %v1736_v25 = vld [vmem:[#allocation8 + $0x298] sm:$0xff] }
 0x504   : > { %3539 = vmatprep.subr.bf16.mxu0 %v5370_v31  ;;  %3720 = vmatprep.mubr.bf16.mxu1 %v8222_v15  ;;  %v1756_v31 = vld [vmem:[#allocation8 + $0x338] sm:$0xff] }
 0x505   : > { %v5465_v57 = vcombine.low %v1752_v11, %v1756_v31 }
 0x507   : > { %3540 = vmatpush1.bf16.msra.mxu0 %v5369_v51  ;;  %v7227_v51 = vpop.f32.mrf.mxu1 }
 0x508   : > { %3541 = vmatprep.subr.bf16.mxu0 %v5490_v48  ;;  %8254 = vst [vmem:[#allocation38_spill] sm:$0xff] %v7227_v51  ;;  %v5466_v48 = vcombine.high %v1752_v11, %v1756_v31  ;;  %v1847_v51 = vlaneseq }
 0x509   : > { %v7232_v29 = vpop.f32.mrf.mxu1 }
 0x50a   : > { %3372 = vmatmul.mubr.bf16.gmra.mxu0 %v6809_v54  ;;  %3721 = vmatmul.mubr.bf16.gmra.mxu1 %v7048_v12  ;;  %v1748_v12 = vld [vmem:[#allocation8 + $0x2f8] sm:$0xff] }
 0x50b   : > { %3542 = vmatpush2.bf16.msra.mxu0 %v5489_v59  ;;  %3381 = vmatprep.mubr.bf16.mxu0 %v6932_v36  ;;  %v5458_v59 = vcombine.high %v1744_v14, %v1748_v12  ;;  %v5457_v17 = vcombine.low %v1744_v14, %v1748_v12  ;;  %v7242_v14 = vshrl.u32 %v1847_v51, 7  ;;  %v1720_v12 = vld [vmem:[#allocation8 + $0x218] sm:$0xff] }
 0x50c   : > { %3543 = vmatprep.subr.bf16.mxu0 %v5482_v52  ;;  %3730 = vmatprep.mubr.bf16.mxu1 %v8222_v15  ;;  %v1740_v52 = vld [vmem:[#allocation8 + $0x2b8] sm:$0xff] }
 0x50d   : > { %v5449_v11 = vcombine.low %v1736_v25, %v1740_v52  ;;  %v1853_v51 = vsub.s32 1, %v7242_v14 }
 0x50f   : > { %3544 = vmatpush2.bf16.msra.mxu0 %v5481_v7  ;;  %v7235_v7 = vpop.f32.mrf.mxu1 }
 0x510   : > { %3545 = vmatprep.subr.bf16.mxu0 %v5474_v27  ;;  %8255 = vst [vmem:[#allocation39_spill] sm:$0xff] %v7235_v7  ;;  %v5450_v27 = vcombine.high %v1736_v25, %v1740_v52  ;;  %v7250_v25 = vld [vmem:[%s8203_s12] sm:$0xff] }
 0x511   : > { %v7240_v31 = vpop.f32.mrf.mxu1 }
 0x512   : > { %3382 = vmatmul.mubr.bf16.gmra.mxu0 %v6814_v1  ;;  %3731 = vmatmul.mubr.bf16.gmra.mxu1 %v7064_v53  ;;  %v1728_v53 = vld [vmem:[#allocation8 + $0x258] sm:$0xff] }
 0x513   : > { %3546 = vmatpush2.bf16.msra.mxu0 %v5473_v6  ;;  %3391 = vmatprep.mubr.bf16.mxu0 %v6953_v43  ;;  %v1732_v6 = vld [vmem:[#allocation8 + $0x278] sm:$0xff] }
 0x514   : > { %3547 = vmatprep.subr.bf16.mxu0 %v5466_v48  ;;  %3740 = vmatprep.mubr.bf16.mxu1 %v8222_v15  ;;  %v5442_v48 = vcombine.high %v1728_v53, %v1732_v6  ;;  %v7244_v15 = vpop.f32.mrf.mxu1 }
 0x517   : > { %3548 = vmatpush2.bf16.msra.mxu0 %v5465_v57  ;;  %v1724_v57 = vld [vmem:[#allocation8 + $0x238] sm:$0xff] }
 0x518   : > { %3549 = vmatprep.subr.bf16.mxu0 %v5458_v59  ;;  %v5441_v59 = vcombine.low %v1728_v53, %v1732_v6  ;;  %v5434_v7 = vcombine.high %v1720_v12, %v1724_v57  ;;  %v5433_v52 = vcombine.low %v1720_v12, %v1724_v57  ;;  %v7261_v53 = vrot.slane %v7250_v25, %v1853_v51 }
 0x51a   : > { %3392 = vmatmul.mubr.bf16.gmra.mxu0 %v6837_v8  ;;  %3741 = vmatmul.mubr.bf16.gmra.mxu1 %v7072_v35  ;;  %v1849_v35 = vsub.s32 0, %v7242_v14 }
 0x51b   : > { %3550 = vmatpush2.bf16.msra.mxu0 %v5457_v17  ;;  %3401 = vmatprep.mubr.bf16.mxu0 %v6957_v63  ;;  %v7255_v17 = vpop.f32.mrf.mxu1 }
 0x51c   : > { %3551 = vmatprep.subr.bf16.mxu0 %v5450_v27  ;;  %v7258_v27 = vrot.slane %v7250_v25, %v1849_v35 }
 0x51d   : > { %v7263_v6 = vpop.f32.mrf.mxu1 }
 0x51f   : > { %3552 = vmatpush2.bf16.msra.mxu0 %v5449_v11  ;;  %v2882_v11 = vadd.f32 %v7087_v26, %v7258_v27  ;;  %v2886_v26 = vadd.f32 %v7106_v33, %v7258_v27 }
 0x520   : > { %3553 = vmatprep.subr.bf16.mxu0 %v5442_v48 }
 0x522   : > { %3402 = vmatmul.mubr.bf16.gmra.mxu0 %v6841_v5 }
 0x523   : > { %3554 = vmatpush2.bf16.msra.mxu0 %v5441_v59  ;;  %3557 = vmatprep.mubr.bf16.mxu0 %v6870_v24 }
 0x524   : > { %3555 = vmatprep.subr.bf16.mxu0 %v5434_v7  ;;  %v2884_v7 = vadd.f32 %v7094_v39, %v7261_v53 }
 0x527   : > { %3556 = vmatpush2.bf16.msra.mxu0 %v5433_v52 }
 0x528   : > { %3638 = vmatprep.subr.bf16.mxu0 %v7052_v56 }
 0x52a   : > { %v2994_v24 = vpop.f32.mrf.mxu0  ;;  %v7268_v48 = vpop.f32.mrf.mxu1  ;;  %3558 = vmatmul.mubr.bf16.vlgmr.msra.gmra.mxu0 %v6749_v28 }
 0x52b   : > { %v2995_v12 = vadd.f32 %v2994_v24, %v2882_v11  ;;  %3639 = vmatpush1.bf16.msra.mxu0 %v7080_v4  ;;  %3567 = vmatprep.mubr.bf16.mxu0 %v6875_v10  ;;  %v2888_v10 = vadd.f32 %v7112_v41, %v7261_v53  ;;  %v2894_v41 = vadd.f32 %v7128_v34, %v7261_v53 }
 0x52c   : > { %v2996_v56 = vpop.f32.mrf.mxu0  ;;  %v7278_v57 = vpop.f32.mrf.mxu1  ;;  %3640 = vmatprep.subr.bf16.mxu0 %v7084_v62  ;;  %v2892_v62 = vadd.f32 %v7121_v0, %v7258_v27 }
 0x52d   : > { %vm3751_vm2 = vcmp.ge.f32.partialorder %v2995_v12, 0.0  ;;  %v3879_v28 = vmul.f32 0.2, %v2995_v12  ;;  %v2997_v59 = vadd.f32 %v2996_v56, %v2884_v7 }
 0x52e   : > { %v2998_v39 = vpop.f32.mrf.mxu0  ;;  %v7284_v35 = vpop.f32.mrf.mxu1 }
 0x52f   : > { %8256 = vst [vmem:[#allocation40_spill] sm:$0xff] %v7284_v35  ;;  %vm3752_vm3 = vcmp.ge.f32.partialorder %v2997_v59, 0.0  ;;  %v3880_v4 = vmul.f32 0.2, %v2997_v59  ;;  %v2999_v51 = vadd.f32 %v2998_v39, %v2886_v26  ;;  %3641 = vmatpush1.bf16.msra.mxu0 %v7091_v13  ;;  %v4007_v52 = vsel %vm3751_vm2, %v2995_v12, %v3879_v28 }
 0x530   : > { %v3000_v33 = vpop.f32.mrf.mxu0  ;;  %v7291_v11 = vpop.f32.mrf.mxu1  ;;  %3642 = vmatprep.subr.bf16.mxu0 %v7097_v37  ;;  %v2896_v37 = vadd.f32 %v7140_v49, %v7258_v27 }
 0x531   : > { %v4008_v24 = vsel %vm3752_vm3, %v2997_v59, %v3880_v4  ;;  %vm3759_vm4 = vcmp.ge.f32.partialorder %v2999_v51, 0.0  ;;  %v3887_v7 = vmul.f32 0.2, %v2999_v51  ;;  %v3001_v56 = vadd.f32 %v3000_v33, %v2888_v10 }
 0x532   : > { %v5631_v35 = vpack.c.bf16 %v4008_v24, %v4007_v52  ;;  %v3004_v26 = vpop.f32.mrf.mxu0  ;;  %v7296_v39 = vpop.f32.mrf.mxu1  ;;  %3568 = vmatmul.mubr.bf16.gmra.mxu0 %v6754_v32 }
 0x533   : > { %v4015_v13 = vsel %vm3759_vm4, %v2999_v51, %v3887_v7  ;;  %vm3760_vm5 = vcmp.ge.f32.partialorder %v3001_v56, 0.0  ;;  %v3888_v0 = vmul.f32 0.2, %v3001_v56  ;;  %v3005_v12 = vadd.f32 %v3004_v26, %v2892_v62  ;;  %3577 = vmatprep.mubr.bf16.mxu0 %v6899_v40  ;;  %3643 = vmatpush1.bf16.msra.mxu0 %v7101_v18 }
 0x534   : > { %4519 = vst [vmem:[%s7303_s18] sm:$0xff] %v5631_v35  ;;  %v4590_v34 = vmax.f32 %v4007_v52, %v4015_v13  ;;  %v4819_v28 = vadd.f32 %v4015_v13, %v4007_v52  ;;  %v3006_v59 = vpop.f32.mrf.mxu0  ;;  %v7306_v10 = vpop.f32.mrf.mxu1  ;;  %3644 = vmatprep.subr.bf16.mxu0 %v7104_v38  ;;  %v2898_v18 = vadd.f32 %v7146_v47, %v7261_v53 }
 0x535   : > { %v4016_v32 = vsel %vm3760_vm5, %v3001_v56, %v3888_v0  ;;  %vm3767_vm6 = vcmp.ge.f32.partialorder %v3005_v12, 0.0  ;;  %v3895_v40 = vmul.f32 0.2, %v3005_v12  ;;  %v3007_v4 = vadd.f32 %v3006_v59, %v2894_v41 }
 0x536   : > { %v5635_v49 = vpack.c.bf16 %v4016_v32, %v4015_v13  ;;  %v4611_v51 = vmax.f32 %v4008_v24, %v4016_v32  ;;  %v4840_v62 = vadd.f32 %v4016_v32, %v4008_v24  ;;  %v3008_v33 = vpop.f32.mrf.mxu0  ;;  %v7311_v35 = vpop.f32.mrf.mxu1  ;;  %v2902_v38 = vadd.f32 %v7155_v16, %v7258_v27 }
 0x537   : > { %v4023_v52 = vsel %vm3767_vm6, %v3005_v12, %v3895_v40  ;;  %vm3768_vm7 = vcmp.ge.f32.partialorder %v3007_v4, 0.0  ;;  %v3896_v7 = vmul.f32 0.2, %v3007_v4  ;;  %v3009_v26 = vadd.f32 %v3008_v33, %v2896_v37  ;;  %3645 = vmatpush1.bf16.msra.mxu0 %v7114_v45 }
 0x538   : > { %4523 = vst [vmem:[%s7303_s18 + $0x20] sm:$0xff] %v5635_v49  ;;  %v4591_v56 = vmax.f32 %v4590_v34, %v4023_v52  ;;  %v4820_v41 = vadd.f32 %v4819_v28, %v4023_v52  ;;  %v3010_v0 = vpop.f32.mrf.mxu0  ;;  %v7317_v47 = vpop.f32.mrf.mxu1  ;;  %3646 = vmatprep.subr.bf16.mxu0 %v7118_v22  ;;  %v2904_v37 = vadd.f32 %v7162_v44, %v7261_v53 }
 0x539   : > { %v4024_v24 = vsel %vm3768_vm7, %v3007_v4, %v3896_v7  ;;  %vm3775_vm8 = vcmp.ge.f32.partialorder %v3009_v26, 0.0  ;;  %v3903_v13 = vmul.f32 0.2, %v3009_v26  ;;  %v3011_v12 = vadd.f32 %v3010_v0, %v2898_v18 }
 0x53a   : > { %v5639_v45 = vpack.c.bf16 %v4024_v24, %v4023_v52  ;;  %v4612_v59 = vmax.f32 %v4611_v51, %v4024_v24  ;;  %v4841_v32 = vadd.f32 %v4840_v62, %v4024_v24  ;;  %v3014_v16 = vpop.f32.mrf.mxu0  ;;  %v7322_v40 = vpop.f32.mrf.mxu1  ;;  %3578 = vmatmul.mubr.bf16.gmra.mxu0 %v6779_v42  ;;  %v2906_v4 = vadd.f32 %v7168_v21, %v7258_v27 }
 0x53b   : > { %v4031_v34 = vsel %vm3775_vm8, %v3009_v26, %v3903_v13  ;;  %vm3776_vm9 = vcmp.ge.f32.partialorder %v3011_v12, 0.0  ;;  %v3904_v28 = vmul.f32 0.2, %v3011_v12  ;;  %v3015_v22 = vadd.f32 %v3014_v16, %v2902_v38  ;;  %3587 = vmatprep.mubr.bf16.mxu0 %v6904_v30  ;;  %3647 = vmatpush1.bf16.msra.mxu0 %v7125_v19  ;;  %v8259_v16 = vld [vmem:[#allocation32_spill] sm:$0xff] }
 0x53c   : > { %4527 = vst [vmem:[%s7303_s18 + $0x40] sm:$0xff] %v5639_v45  ;;  %v4592_v44 = vmax.f32 %v4591_v56, %v4031_v34  ;;  %v4821_v18 = vadd.f32 %v4820_v41, %v4031_v34  ;;  %v3016_v49 = vpop.f32.mrf.mxu0  ;;  %v7330_v51 = vpop.f32.mrf.mxu1  ;;  %3648 = vmatprep.subr.bf16.mxu0 %v7131_v46  ;;  %v2908_v30 = vadd.f32 %v7171_v55, %v7261_v53  ;;  %v8257_v46 = vld [vmem:[#allocation31_spill] sm:$0xff] }
 0x53d   : > { %v4032_v42 = vsel %vm3776_vm9, %v3011_v12, %v3904_v28  ;;  %vm3783_vm10 = vcmp.ge.f32.partialorder %v3015_v22, 0.0  ;;  %v3911_v62 = vmul.f32 0.2, %v3015_v22  ;;  %v3017_v33 = vadd.f32 %v3016_v49, %v2904_v37  ;;  %v8258_v37 = vld [vmem:[#allocation27_spill] sm:$0xff] }
 0x53e   : > { %v5643_v19 = vpack.c.bf16 %v4032_v42, %v4031_v34  ;;  %v4613_v52 = vmax.f32 %v4612_v59, %v4032_v42  ;;  %v4842_v7 = vadd.f32 %v4841_v32, %v4032_v42  ;;  %v3018_v21 = vpop.f32.mrf.mxu0  ;;  %v7335_v26 = vpop.f32.mrf.mxu1  ;;  %v2912_v0 = vadd.f32 %v8257_v46, %v7258_v27 }
 0x53f   : > { %v4039_v38 = vsel %vm3783_vm10, %v3015_v22, %v3911_v62  ;;  %vm3784_vm11 = vcmp.ge.f32.partialorder %v3017_v33, 0.0  ;;  %v3912_v56 = vmul.f32 0.2, %v3017_v33  ;;  %v3019_v41 = vadd.f32 %v3018_v21, %v2906_v4  ;;  %3649 = vmatpush1.bf16.msra.mxu0 %v7135_v20  ;;  %v8260_v62 = vld [vmem:[#allocation28_spill] sm:$0xff]  ;;  %v8261_v21 = vld [vmem:[#allocation29_spill] sm:$0xff] }
 0x540   : > { %4531 = vst [vmem:[%s7303_s18 + $0x60] sm:$0xff] %v5643_v19  ;;  %v4593_v24 = vmax.f32 %v4592_v44, %v4039_v38  ;;  %v4822_v13 = vadd.f32 %v4821_v18, %v4039_v38  ;;  %v3020_v12 = vpop.f32.mrf.mxu0  ;;  %v7341_v55 = vpop.f32.mrf.mxu1  ;;  %3650 = vmatprep.subr.bf16.mxu0 %v8258_v37  ;;  %v2914_v34 = vadd.f32 %v8259_v16, %v7261_v53 }
 0x541   : > { %v4040_v45 = vsel %vm3784_vm11, %v3017_v33, %v3912_v56  ;;  %vm3791_vm12 = vcmp.ge.f32.partialorder %v3019_v41, 0.0  ;;  %v3919_v59 = vmul.f32 0.2, %v3019_v41  ;;  %v3021_v32 = vadd.f32 %v3020_v12, %v2908_v30 }
 0x542   : > { %v5647_v20 = vpack.c.bf16 %v4040_v45, %v4039_v38  ;;  %v4614_v28 = vmax.f32 %v4613_v52, %v4040_v45  ;;  %v4843_v22 = vadd.f32 %v4842_v7, %v4040_v45  ;;  %v3024_v4 = vpop.f32.mrf.mxu0  ;;  %v7346_v49 = vpop.f32.mrf.mxu1  ;;  %3588 = vmatmul.mubr.bf16.gmra.mxu0 %v6784_v50  ;;  %v2916_v33 = vadd.f32 %v7184_v23, %v7258_v27 }
 0x543   : > { %v4047_v44 = vsel %vm3791_vm12, %v3019_v41, %v3919_v59  ;;  %vm3792_vm13 = vcmp.ge.f32.partialorder %v3021_v32, 0.0  ;;  %v3920_v18 = vmul.f32 0.2, %v3021_v32  ;;  %v3025_v42 = vadd.f32 %v3024_v4, %v2912_v0  ;;  %3597 = vmatprep.mubr.bf16.mxu0 %v6927_v2  ;;  %3651 = vmatpush1.bf16.msra.mxu0 %v8260_v62  ;;  %v8262_v2 = vld [vmem:[#allocation33_spill] sm:$0xff]  ;;  %v8263_v59 = vld [vmem:[#allocation30_spill] sm:$0xff] }
 0x544   : > { %4535 = vst [vmem:[%s7303_s18 + $0x80] sm:$0xff] %v5647_v20  ;;  %v4594_v30 = vmax.f32 %v4593_v24, %v4047_v44  ;;  %v4823_v19 = vadd.f32 %v4822_v13, %v4047_v44  ;;  %v3026_v52 = vpop.f32.mrf.mxu0  ;;  %v7354_v7 = vpop.f32.mrf.mxu1  ;;  %3652 = vmatprep.subr.bf16.mxu0 %v8261_v21  ;;  %v2918_v41 = vadd.f32 %v8262_v2, %v7261_v53 }
 0x545   : > { %v4048_v50 = vsel %vm3792_vm13, %v3021_v32, %v3920_v18  ;;  %vm3799_vm14 = vcmp.ge.f32.partialorder %v3025_v42, 0.0  ;;  %v3927_v38 = vmul.f32 0.2, %v3025_v42  ;;  %v3027_v56 = vadd.f32 %v3026_v52, %v2914_v34  ;;  %v8264_v18 = vld [vmem:[#allocation34_spill] sm:$0xff] }
 0x546   : > { %v5651_v46 = vpack.c.bf16 %v4048_v50, %v4047_v44  ;;  %v4615_v0 = vmax.f32 %v4614_v28, %v4048_v50  ;;  %v4844_v12 = vadd.f32 %v4843_v22, %v4048_v50  ;;  %v3028_v23 = vpop.f32.mrf.mxu0  ;;  %v7359_v37 = vpop.f32.mrf.mxu1  ;;  %v2922_v32 = vadd.f32 %v7192_v58, %v7258_v27 }
 0x547   : > { %v4055_v24 = vsel %vm3799_vm14, %v3025_v42, %v3927_v38  ;;  %vm3800_vm15 = vcmp.ge.f32.partialorder %v3027_v56, 0.0  ;;  %v3928_v13 = vmul.f32 0.2, %v3027_v56  ;;  %v3029_v45 = vadd.f32 %v3028_v23, %v2916_v33  ;;  %3653 = vmatpush1.bf16.msra.mxu0 %v8263_v59  ;;  %v8265_v23 = vld [vmem:[#allocation35_spill] sm:$0xff] }
 0x548   : > { %4539 = vst [vmem:[%s7303_s18 + $0xa0] sm:$0xff] %v5651_v46  ;;  %v4595_v16 = vmax.f32 %v4594_v30, %v4055_v24  ;;  %v4824_v34 = vadd.f32 %v4823_v19, %v4055_v24  ;;  %v3030_v20 = vpop.f32.mrf.mxu0  ;;  %v7365_v4 = vpop.f32.mrf.mxu1  ;;  %v2924_v42 = vadd.f32 %v8264_v18, %v7261_v53  ;;  %v2926_v38 = vadd.f32 %v7200_v9, %v7258_v27 }
 0x549   : > { %v4056_v28 = vsel %vm3800_vm15, %v3027_v56, %v3928_v13  ;;  %vm3807_vm0 = vcmp.ge.f32.partialorder %v3029_v45, 0.0  ;;  %v3935_v22 = vmul.f32 0.2, %v3029_v45  ;;  %v3031_v44 = vadd.f32 %v3030_v20, %v2918_v41 }
 0x54a   : > { %v5655_v62 = vpack.c.bf16 %v4056_v28, %v4055_v24  ;;  %v4616_v33 = vmax.f32 %v4615_v0, %v4056_v28  ;;  %v4845_v52 = vadd.f32 %v4844_v12, %v4056_v28  ;;  %v3034_v21 = vpop.f32.mrf.mxu0  ;;  %v7369_v50 = vpop.f32.mrf.mxu1  ;;  %3598 = vmatmul.mubr.bf16.gmra.mxu0 %v6809_v54  ;;  %v2928_v24 = vadd.f32 %v8265_v23, %v7261_v53 }
 0x54b   : > { %v4063_v58 = vsel %vm3807_vm0, %v3029_v45, %v3935_v22  ;;  %vm3808_vm1 = vcmp.ge.f32.partialorder %v3031_v44, 0.0  ;;  %v3936_v30 = vmul.f32 0.2, %v3031_v44  ;;  %v3035_v19 = vadd.f32 %v3034_v21, %v2922_v32  ;;  %3607 = vmatprep.mubr.bf16.mxu0 %v6932_v36 }
 0x54c   : > { %4543 = vst [vmem:[%s7303_s18 + $0xc0] sm:$0xff] %v5655_v62  ;;  %v4596_v56 = vmax.f32 %v4595_v16, %v4063_v58  ;;  %v4825_v2 = vadd.f32 %v4824_v34, %v4063_v58  ;;  %v3036_v41 = vpop.f32.mrf.mxu0  ;;  %v7376_v46 = vpop.f32.mrf.mxu1  ;;  %v2932_v20 = vadd.f32 %v7208_v60, %v7258_v27 }
 0x54d   : > { %v4064_v0 = vsel %vm3808_vm1, %v3031_v44, %v3936_v30  ;;  %vm3815_vm2 = vcmp.ge.f32.partialorder %v3035_v19, 0.0  ;;  %v3943_v12 = vmul.f32 0.2, %v3035_v19  ;;  %v3037_v54 = vadd.f32 %v3036_v41, %v2924_v42 }
 0x54e   : > { %v5659_v13 = vpack.c.bf16 %v4064_v0, %v4063_v58  ;;  %v4617_v45 = vmax.f32 %v4616_v33, %v4064_v0  ;;  %v4846_v36 = vadd.f32 %v4845_v52, %v4064_v0  ;;  %v3038_v59 = vpop.f32.mrf.mxu0  ;;  %v7380_v32 = vpop.f32.mrf.mxu1  ;;  %v8266_v52 = vld [vmem:[#allocation36_spill] sm:$0xff]  ;;  %v2936_v0 = vadd.f32 %v7216_v61, %v7258_v27 }
 0x54f   : > { %v4071_v9 = vsel %vm3815_vm2, %v3035_v19, %v3943_v12  ;;  %vm3816_vm3 = vcmp.ge.f32.partialorder %v3037_v54, 0.0  ;;  %v3944_v16 = vmul.f32 0.2, %v3037_v54  ;;  %v3039_v34 = vadd.f32 %v3038_v59, %v2926_v38 }
 0x550   : > { %4547 = vst [vmem:[%s7303_s18 + $0xe0] sm:$0xff] %v5659_v13  ;;  %v4597_v28 = vmax.f32 %v4596_v56, %v4071_v9  ;;  %v4826_v22 = vadd.f32 %v4825_v2, %v4071_v9  ;;  %v3040_v44 = vpop.f32.mrf.mxu0  ;;  %v7385_v18 = vpop.f32.mrf.mxu1  ;;  %v2934_v21 = vadd.f32 %v8266_v52, %v7261_v53 }
 0x551   : > { %v4072_v42 = vsel %vm3816_vm3, %v3037_v54, %v3944_v16  ;;  %vm3823_vm4 = vcmp.ge.f32.partialorder %v3039_v34, 0.0  ;;  %v3951_v62 = vmul.f32 0.2, %v3039_v34  ;;  %v3041_v33 = vadd.f32 %v3040_v44, %v2928_v24 }
 0x552   : > { %v5663_v58 = vpack.c.bf16 %v4072_v42, %v4071_v9  ;;  %v4618_v30 = vmax.f32 %v4617_v45, %v4072_v42  ;;  %v4847_v19 = vadd.f32 %v4846_v36, %v4072_v42  ;;  %v3044_v38 = vpop.f32.mrf.mxu0  ;;  %v7389_v41 = vpop.f32.mrf.mxu1  ;;  %3608 = vmatmul.mubr.bf16.gmra.mxu0 %v6814_v1  ;;  %v8267_v36 = vld [vmem:[#allocation37_spill] sm:$0xff]  ;;  %v2942_v44 = vadd.f32 %v7224_v3, %v7258_v27 }
 0x553   : > { %v4079_v60 = vsel %vm3823_vm4, %v3039_v34, %v3951_v62  ;;  %vm3824_vm5 = vcmp.ge.f32.partialorder %v3041_v33, 0.0  ;;  %v3952_v56 = vmul.f32 0.2, %v3041_v33  ;;  %v3045_v2 = vadd.f32 %v3044_v38, %v2932_v20  ;;  %3617 = vmatprep.mubr.bf16.mxu0 %v6953_v43 }
 0x554   : > { %4551 = vst [vmem:[%s7303_s18 + $0x100] sm:$0xff] %v5663_v58  ;;  %v4598_v12 = vmax.f32 %v4597_v28, %v4079_v60  ;;  %v4827_v54 = vadd.f32 %v4826_v22, %v4079_v60  ;;  %v3046_v23 = vpop.f32.mrf.mxu0  ;;  %v7396_v24 = vpop.f32.mrf.mxu1  ;;  %v2938_v59 = vadd.f32 %v8267_v36, %v7261_v53 }
 0x555   : > { %v4080_v13 = vsel %vm3824_vm5, %v3041_v33, %v3952_v56  ;;  %vm3831_vm6 = vcmp.ge.f32.partialorder %v3045_v2, 0.0  ;;  %v3959_v45 = vmul.f32 0.2, %v3045_v2  ;;  %v3047_v1 = vadd.f32 %v3046_v23, %v2934_v21 }
 0x556   : > { %v5667_v9 = vpack.c.bf16 %v4080_v13, %v4079_v60  ;;  %v4619_v16 = vmax.f32 %v4618_v30, %v4080_v13  ;;  %v4848_v43 = vadd.f32 %v4847_v19, %v4080_v13  ;;  %v3048_v34 = vpop.f32.mrf.mxu0  ;;  %v7400_v20 = vpop.f32.mrf.mxu1  ;;  %v8268_v19 = vld [vmem:[#allocation38_spill] sm:$0xff]  ;;  %v2946_v13 = vadd.f32 %v7232_v29, %v7258_v27 }
 0x557   : > { %v4087_v61 = vsel %vm3831_vm6, %v3045_v2, %v3959_v45  ;;  %vm3832_vm7 = vcmp.ge.f32.partialorder %v3047_v1, 0.0  ;;  %v3960_v28 = vmul.f32 0.2, %v3047_v1  ;;  %v3049_v22 = vadd.f32 %v3048_v34, %v2936_v0  ;;  %v8269_v45 = vld [vmem:[#allocation39_spill] sm:$0xff] }
 0x558   : > { %4555 = vst [vmem:[%s7303_s18 + $0x120] sm:$0xff] %v5667_v9  ;;  %v4599_v42 = vmax.f32 %v4598_v12, %v4087_v61  ;;  %v4828_v62 = vadd.f32 %v4827_v54, %v4087_v61  ;;  %v3050_v33 = vpop.f32.mrf.mxu0  ;;  %v7405_v52 = vpop.f32.mrf.mxu1  ;;  %v2944_v38 = vadd.f32 %v8268_v19, %v7261_v53 }
 0x559   : > { %v4088_v21 = vsel %vm3832_vm7, %v3047_v1, %v3960_v28  ;;  %vm3839_vm8 = vcmp.ge.f32.partialorder %v3049_v22, 0.0  ;;  %v3967_v58 = vmul.f32 0.2, %v3049_v22  ;;  %v3051_v30 = vadd.f32 %v3050_v33, %v2938_v59 }
 0x55a   : > { %v5671_v60 = vpack.c.bf16 %v4088_v21, %v4087_v61  ;;  %v4620_v56 = vmax.f32 %v4619_v16, %v4088_v21  ;;  %v4849_v2 = vadd.f32 %v4848_v43, %v4088_v21  ;;  %v3054_v0 = vpop.f32.mrf.mxu0  ;;  %v7409_v23 = vpop.f32.mrf.mxu1  ;;  %3618 = vmatmul.mubr.bf16.gmra.mxu0 %v6837_v8  ;;  %v2948_v1 = vadd.f32 %v8269_v45, %v7261_v53 }
 0x55b   : > { %v4095_v3 = vsel %vm3839_vm8, %v3049_v22, %v3967_v58  ;;  %vm3840_vm9 = vcmp.ge.f32.partialorder %v3051_v30, 0.0  ;;  %v3968_v12 = vmul.f32 0.2, %v3051_v30  ;;  %v3055_v54 = vadd.f32 %v3054_v0, %v2942_v44  ;;  %3627 = vmatprep.mubr.bf16.mxu0 %v6957_v63 }
 0x55c   : > { %4559 = vst [vmem:[%s7303_s18 + $0x140] sm:$0xff] %v5671_v60  ;;  %v4600_v36 = vmax.f32 %v4599_v42, %v4095_v3  ;;  %v4829_v59 = vadd.f32 %v4828_v62, %v4095_v3  ;;  %v3056_v9 = vpop.f32.mrf.mxu0  ;;  %v7418_v16 = vpop.f32.mrf.mxu1  ;;  %v2952_v63 = vadd.f32 %v7240_v31, %v7258_v27  ;;  %v2954_v21 = vadd.f32 %v7244_v15, %v7261_v53 }
 0x55d   : > { %v4096_v43 = vsel %vm3840_vm9, %v3051_v30, %v3968_v12  ;;  %vm3847_vm10 = vcmp.ge.f32.partialorder %v3055_v54, 0.0  ;;  %v3975_v8 = vmul.f32 0.2, %v3055_v54  ;;  %v3057_v34 = vadd.f32 %v3056_v9, %v2944_v38 }
 0x55e   : > { %v5675_v61 = vpack.c.bf16 %v4096_v43, %v4095_v3  ;;  %v4621_v28 = vmax.f32 %v4620_v56, %v4096_v43  ;;  %v4850_v29 = vadd.f32 %v4849_v2, %v4096_v43  ;;  %v3058_v22 = vpop.f32.mrf.mxu0  ;;  %v7422_v44 = vpop.f32.mrf.mxu1  ;;  %v2956_v58 = vadd.f32 %v7255_v17, %v7258_v27 }
 0x55f   : > { %v4103_v33 = vsel %vm3847_vm10, %v3055_v54, %v3975_v8  ;;  %vm3848_vm11 = vcmp.ge.f32.partialorder %v3057_v34, 0.0  ;;  %v3976_v42 = vmul.f32 0.2, %v3057_v34  ;;  %v3059_v62 = vadd.f32 %v3058_v22, %v2946_v13 }
 0x560   : > { %4563 = vst [vmem:[%s7303_s18 + $0x160] sm:$0xff] %v5675_v61  ;;  %v4601_v30 = vmax.f32 %v4600_v36, %v4103_v33  ;;  %v4830_v19 = vadd.f32 %v4829_v59, %v4103_v33  ;;  %v3060_v31 = vpop.f32.mrf.mxu0  ;;  %v7429_v38 = vpop.f32.mrf.mxu1  ;;  %v1857_v15 = vsub.s32 2, %v7242_v14  ;;  %v8270_v36 = vmov 0  }
 0x561   : > { %v4104_v60 = vsel %vm3848_vm11, %v3057_v34, %v3976_v42  ;;  %vm3855_vm12 = vcmp.ge.f32.partialorder %v3059_v62, 0.0  ;;  %v3983_v56 = vmul.f32 0.2, %v3059_v62  ;;  %v3061_v2 = vadd.f32 %v3060_v31, %v2948_v1 }
 0x562   : > { %v5679_v0 = vpack.c.bf16 %v4104_v60, %v4103_v33  ;;  %v4622_v3 = vmax.f32 %v4621_v28, %v4104_v60  ;;  %v4851_v12 = vadd.f32 %v4850_v29, %v4104_v60  ;;  %v3064_v54 = vpop.f32.mrf.mxu0  ;;  %v7431_v13 = vpop.f32.mrf.mxu1  ;;  %3628 = vmatmul.mubr.bf16.gmra.mxu0 %v6841_v5  ;;  %v2958_v59 = vadd.f32 %v7263_v6, %v7261_v53 }
 0x563   : > { %v4111_v17 = vsel %vm3855_vm12, %v3059_v62, %v3983_v56  ;;  %vm3856_vm13 = vcmp.ge.f32.partialorder %v3061_v2, 0.0  ;;  %v3984_v27 = vmul.f32 0.2, %v3061_v2  ;;  %v3065_v45 = vadd.f32 %v3064_v54, %v2952_v63  ;;  %3670 = vmatprep.mubr.bf16.mxu0 %v8270_v36 }
 0x564   : > { %4567 = vst [vmem:[%s7303_s18 + $0x180] sm:$0xff] %v5679_v0  ;;  %v4602_v1 = vmax.f32 %v4601_v30, %v4111_v17  ;;  %v4831_v9 = vadd.f32 %v4830_v19, %v4111_v17  ;;  %v3066_v43 = vpop.f32.mrf.mxu0  ;;  %v7439_v8 = vpop.f32.mrf.mxu1  ;;  %v1861_v5 = vsub.s32 3, %v7242_v14  ;;  %v7445_v53 = vrot.slane %v7250_v25, %v1857_v15 }
 0x565   : > { %v4112_v34 = vsel %vm3856_vm13, %v3061_v2, %v3984_v27  ;;  %vm3863_vm14 = vcmp.ge.f32.partialorder %v3065_v45, 0.0  ;;  %v3991_v61 = vmul.f32 0.2, %v3065_v45  ;;  %v3067_v28 = vadd.f32 %v3066_v43, %v2954_v21 }
 0x566   : > { %v5683_v29 = vpack.c.bf16 %v4112_v34, %v4111_v17  ;;  %v4623_v63 = vmax.f32 %v4622_v3, %v4112_v34  ;;  %v4852_v22 = vadd.f32 %v4851_v12, %v4112_v34  ;;  %v3068_v33 = vpop.f32.mrf.mxu0  ;;  %v7442_v42 = vpop.f32.mrf.mxu1  ;;  %v7451_v21 = vrot.slane %v7250_v25, %v1861_v5 }
 0x567   : > { %v4119_v6 = vsel %vm3863_vm14, %v3065_v45, %v3991_v61  ;;  %vm3864_vm15 = vcmp.ge.f32.partialorder %v3067_v28, 0.0  ;;  %v3992_v62 = vmul.f32 0.2, %v3067_v28  ;;  %v3069_v30 = vadd.f32 %v3068_v33, %v2956_v58  ;;  %v8271_v58 = vld [vmem:[#allocation26_spill] sm:$0xff] }
 0x568   : > { %4571 = vst [vmem:[%s7303_s18 + $0x1a0] sm:$0xff] %v5683_v29  ;;  %v4603_v19 = vmax.f32 %v4602_v1, %v4119_v6  ;;  %v4832_v31 = vadd.f32 %v4831_v9, %v4119_v6  ;;  %v3070_v60 = vpop.f32.mrf.mxu0  ;;  %v7448_v56 = vpop.f32.mrf.mxu1 }
 0x569   : > { %v4120_v2 = vsel %vm3864_vm15, %v3067_v28, %v3992_v62  ;;  %vm3871_vm0 = vcmp.ge.f32.partialorder %v3069_v30, 0.0  ;;  %v3999_v0 = vmul.f32 0.2, %v3069_v30  ;;  %v3071_v3 = vadd.f32 %v3070_v60, %v2958_v59 }
 0x56a   : > { %v5687_v12 = vpack.c.bf16 %v4120_v2, %v4119_v6  ;;  %v4624_v54 = vmax.f32 %v4623_v63, %v4120_v2  ;;  %v4853_v15 = vadd.f32 %v4852_v22, %v4120_v2  ;;  %v3107_v17 = vpop.f32.mrf.mxu0  ;;  %v7453_v27 = vpop.f32.mrf.mxu1  ;;  %3671 = vmatmul.mubr.bf16.vlgmr.msra.gmra.mxu0 %v8271_v58 }
 0x56b   : > { %v4127_v45 = vsel %vm3871_vm0, %v3069_v30, %v3999_v0  ;;  %vm3872_vm1 = vcmp.ge.f32.partialorder %v3071_v3, 0.0  ;;  %v4000_v36 = vmul.f32 0.2, %v3071_v3  ;;  %v3108_v1 = vadd.f32 %v3107_v17, %v7445_v53 }
 0x56c   : > { %4575 = vst [vmem:[%s7303_s18 + $0x1c0] sm:$0xff] %v5687_v12  ;;  %v4604_v25 = vmax.f32 %v4603_v19, %v4127_v45  ;;  %v4833_v9 = vadd.f32 %v4832_v31, %v4127_v45  ;;  %v3109_v43 = vpop.f32.mrf.mxu0  ;;  %v7458_v5 = vpop.f32.mrf.mxu1 }
 0x56d   : > { %v4128_v59 = vsel %vm3872_vm1, %v3071_v3, %v4000_v36  ;;  %v3221_v34 = vadd.f32 %v7268_v48, %v3108_v1  ;;  %v3110_v61 = vadd.f32 %v3109_v43, %v7451_v21  ;;  %v8272_v36 = vld [vmem:[#allocation40_spill] sm:$0xff] }
 0x56e   : > { %v4605_v28 = vrot.slane %v4604_v25, 4  ;;  %v4834_v29 = vrot.slane %v4833_v9, 4  ;;  %v5691_v63 = vpack.c.bf16 %v4128_v59, %v4127_v45  ;;  %v4625_v22 = vmax.f32 %v4624_v54, %v4128_v59  ;;  %v3111_v33 = vpop.f32.mrf.mxu0  ;;  %v7462_v6 = vpop.f32.mrf.mxu1 }
 0x56f   : > { %v4854_v62 = vadd.f32 %v4853_v15, %v4128_v59  ;;  %vm3753_vm2 = vcmp.ge.f32.partialorder %v3221_v34, 0.0  ;;  %v3881_v30 = vmul.f32 0.2, %v3221_v34  ;;  %v3223_v19 = vadd.f32 %v7278_v57, %v3110_v61 }
 0x570   : > { %v4606_v31 = vmax.f32 %v4604_v25, %v4605_v28  ;;  %v4835_v60 = vadd.f32 %v4834_v29, %v4833_v9  ;;  %4579 = vst [vmem:[%s7303_s18 + $0x1e0] sm:$0xff] %v5691_v63  ;;  %v4626_v2 = vrot.slane %v4625_v22, 4  ;;  %v3112_v48 = vadd.f32 %v3111_v33, %v7445_v53  ;;  %v3113_v0 = vpop.f32.mrf.mxu0  ;;  %v7467_v3 = vpop.f32.mrf.mxu1 }
 0x571   : > { %v4855_v12 = vrot.slane %v4854_v62, 4  ;;  %v7469_v17 = vsel %vm3753_vm2, %v3221_v34, %v3881_v30  ;;  %vm3754_vm3 = vcmp.ge.f32.partialorder %v3223_v19, 0.0  ;;  %v3882_v54 = vmul.f32 0.2, %v3223_v19 }
 0x572   : > { %v4607_v58 = vrot.slane %v4606_v31, 2  ;;  %v4836_v15 = vrot.slane %v4835_v60, 2  ;;  %v4627_v45 = vmax.f32 %v4625_v22, %v4626_v2  ;;  %v3225_v1 = vadd.f32 %v8272_v36, %v3112_v48  ;;  %v3117_v57 = vpop.f32.mrf.mxu0  ;;  %v7472_v25 = vpop.f32.mrf.mxu1 }
 0x573   : > { %8273 = vst [vmem:[#allocation31_spill] sm:$0xff] %v7472_v25  ;;  %v4856_v9 = vadd.f32 %v4855_v12, %v4854_v62  ;;  %v7474_v43 = vsel %vm3754_vm3, %v3223_v19, %v3882_v54  ;;  %v3114_v59 = vadd.f32 %v3113_v0, %v7451_v21  ;;  %v3118_v61 = vadd.f32 %v3117_v57, %v7445_v53 }
 0x574   : > { %v4608_v34 = vmax.f32 %v4606_v31, %v4607_v58  ;;  %v4837_v28 = vadd.f32 %v4836_v15, %v4835_v60  ;;  %v4628_v29 = vrot.slane %v4627_v45, 2  ;;  %v5632_v63 = vpack.c.bf16 %v7474_v43, %v7469_v17  ;;  %v3119_v22 = vpop.f32.mrf.mxu0  ;;  %v7480_v33 = vpop.f32.mrf.mxu1 }
 0x575   : > { %8274 = vst [vmem:[#allocation27_spill] sm:$0xff] %v7480_v33  ;;  %v4857_v30 = vrot.slane %v4856_v9, 2  ;;  %vm3761_vm4 = vcmp.ge.f32.partialorder %v3225_v1, 0.0  ;;  %v3889_v2 = vmul.f32 0.2, %v3225_v1  ;;  %v3227_v62 = vadd.f32 %v7291_v11, %v3114_v59 }
 0x576   : > { %v4609_v19 = vrot.slane %v4608_v34, 1  ;;  %v4838_v48 = vrot.slane %v4837_v28, 1  ;;  %v4629_v12 = vmax.f32 %v4627_v45, %v4628_v29  ;;  %4520 = vst [vmem:[%s7303_s18 + $0x8] sm:$0xff] %v5632_v63  ;;  %v3231_v0 = vadd.f32 %v7296_v39, %v3118_v61  ;;  %v3121_v31 = vpop.f32.mrf.mxu0  ;;  %v7485_v60 = vpop.f32.mrf.mxu1 }
 0x577   : > { %v4858_v54 = vadd.f32 %v4857_v30, %v4856_v9  ;;  %v4017_v58 = vsel %vm3761_vm4, %v3225_v1, %v3889_v2  ;;  %vm3762_vm5 = vcmp.ge.f32.partialorder %v3227_v62, 0.0  ;;  %v3890_v15 = vmul.f32 0.2, %v3227_v62 }
 0x578   : > { %v7487_v36 = vmax.f32 %v4608_v34, %v4609_v19  ;;  %v7489_v57 = vadd.f32 %v4838_v48, %v4837_v28  ;;  %v4630_v33 = vrot.slane %v4629_v12, 1  ;;  %v4632_v11 = vmax.f32 %v7469_v17, %v4017_v58  ;;  %v3123_v59 = vpop.f32.mrf.mxu0  ;;  %v7492_v25 = vpop.f32.mrf.mxu1 }
 0x579   : > { %v4859_v45 = vrot.slane %v4858_v54, 1  ;;  %v4861_v39 = vadd.f32 %v4017_v58, %v7469_v17  ;;  %v4018_v61 = vsel %vm3762_vm5, %v3227_v62, %v3890_v15  ;;  %vm3769_vm6 = vcmp.ge.f32.partialorder %v3231_v0, 0.0 }
 0x57a   : > { %8275 = vst [vmem:[#allocation32_spill] sm:$0xff] %v7487_v36  ;;  %v7495_v9 = vmax.f32 %v4629_v12, %v4630_v33  ;;  %v5636_v1 = vpack.c.bf16 %v4018_v61, %v4017_v58  ;;  %v4653_v34 = vmax.f32 %v7474_v43, %v4018_v61  ;;  %v4882_v28 = vadd.f32 %v4018_v61, %v7474_v43  ;;  %v3127_v29 = vpop.f32.mrf.mxu0  ;;  %v7499_v63 = vpop.f32.mrf.mxu1 }
 0x57b   : > { %v7501_v30 = vadd.f32 %v4859_v45, %v4858_v54  ;;  %v3897_v2 = vmul.f32 0.2, %v3231_v0  ;;  %v3120_v19 = vadd.f32 %v3119_v22, %v7451_v21  ;;  %v3122_v48 = vadd.f32 %v3121_v31, %v7445_v53 }
 0x57c   : > { %8276 = vst [vmem:[#allocation28_spill] sm:$0xff] %v7495_v9  ;;  %4524 = vst [vmem:[%s7303_s18 + $0x28] sm:$0xff] %v5636_v1  ;;  %v3124_v33 = vadd.f32 %v3123_v59, %v7451_v21  ;;  %v3128_v62 = vadd.f32 %v3127_v29, %v7445_v53  ;;  %v3129_v12 = vpop.f32.mrf.mxu0  ;;  %v7510_v43 = vpop.f32.mrf.mxu1 }
 0x57d   : > { %8277 = vst [vmem:[#allocation29_spill] sm:$0xff] %v7510_v43  ;;  %v4025_v58 = vsel %vm3769_vm6, %v3231_v0, %v3897_v2  ;;  %v3233_v22 = vadd.f32 %v7306_v10, %v3120_v19  ;;  %v3235_v31 = vadd.f32 %v7311_v35, %v3122_v48 }
 0x57e   : > { %v4633_v15 = vmax.f32 %v4632_v11, %v4025_v58  ;;  %v4862_v45 = vadd.f32 %v4861_v39, %v4025_v58  ;;  %v3237_v61 = vadd.f32 %v7317_v47, %v3124_v33  ;;  %v3131_v1 = vpop.f32.mrf.mxu0  ;;  %v7518_v59 = vpop.f32.mrf.mxu1  ;;  %v3241_v54 = vadd.f32 %v7322_v40, %v3128_v62 }
 0x57f   : > { %8278 = vst [vmem:[#allocation33_spill] sm:$0xff] %v7518_v59  ;;  %vm3770_vm7 = vcmp.ge.f32.partialorder %v3233_v22, 0.0  ;;  %v3898_v29 = vmul.f32 0.2, %v3233_v22  ;;  %vm3777_vm8 = vcmp.ge.f32.partialorder %v3235_v31, 0.0  ;;  %v3130_v11 = vadd.f32 %v3129_v12, %v7451_v21 }
 0x580   : > { %v3905_v17 = vmul.f32 0.2, %v3235_v31  ;;  %vm3778_vm9 = vcmp.ge.f32.partialorder %v3237_v61, 0.0  ;;  %v3906_v9 = vmul.f32 0.2, %v3237_v61  ;;  %v3133_v0 = vpop.f32.mrf.mxu0  ;;  %v7521_v10 = vpop.f32.mrf.mxu1  ;;  %v3132_v47 = vadd.f32 %v3131_v1, %v7445_v53 }
 0x581   : > { %8279 = vst [vmem:[#allocation30_spill] sm:$0xff] %v7521_v10  ;;  %v4026_v35 = vsel %vm3770_vm7, %v3233_v22, %v3898_v29  ;;  %v3134_v39 = vadd.f32 %v3133_v0, %v7451_v21  ;;  %vm3785_vm10 = vcmp.ge.f32.partialorder %v3241_v54, 0.0  ;;  %v3913_v1 = vmul.f32 0.2, %v3241_v54 }
 0x582   : > { %v5640_v2 = vpack.c.bf16 %v4026_v35, %v4025_v58  ;;  %v4654_v19 = vmax.f32 %v4653_v34, %v4026_v35  ;;  %v4883_v48 = vadd.f32 %v4882_v28, %v4026_v35  ;;  %v4033_v33 = vsel %vm3777_vm8, %v3235_v31, %v3905_v17  ;;  %v3137_v36 = vpop.f32.mrf.mxu0  ;;  %v7526_v59 = vpop.f32.mrf.mxu1 }
 0x583   : > { %v4634_v40 = vmax.f32 %v4633_v15, %v4033_v33  ;;  %v4863_v62 = vadd.f32 %v4862_v45, %v4033_v33  ;;  %v4034_v43 = vsel %vm3778_vm9, %v3237_v61, %v3906_v9  ;;  %v3243_v34 = vadd.f32 %v7330_v51, %v3130_v11 }
 0x584   : > { %4528 = vst [vmem:[%s7303_s18 + $0x48] sm:$0xff] %v5640_v2  ;;  %v5644_v22 = vpack.c.bf16 %v4034_v43, %v4033_v33  ;;  %v4655_v12 = vmax.f32 %v4654_v19, %v4034_v43  ;;  %v4884_v29 = vadd.f32 %v4883_v48, %v4034_v43  ;;  %v3139_v10 = vpop.f32.mrf.mxu0  ;;  %v7530_v0 = vpop.f32.mrf.mxu1  ;;  %v3245_v28 = vadd.f32 %v7335_v26, %v3132_v47 }
 0x585   : > { %v3247_v17 = vadd.f32 %v7341_v55, %v3134_v39  ;;  %v3138_v58 = vadd.f32 %v3137_v36, %v7445_v53  ;;  %v4041_v31 = vsel %vm3785_vm10, %v3241_v54, %v3913_v1  ;;  %v3140_v9 = vadd.f32 %v3139_v10, %v7451_v21 }
 0x586   : > { %4532 = vst [vmem:[%s7303_s18 + $0x68] sm:$0xff] %v5644_v22  ;;  %v3141_v15 = vpop.f32.mrf.mxu0  ;;  %v7538_v45 = vpop.f32.mrf.mxu1  ;;  %v4635_v43 = vmax.f32 %v4634_v40, %v4041_v31  ;;  %v4864_v61 = vadd.f32 %v4863_v62, %v4041_v31  ;;  %vm3786_vm11 = vcmp.ge.f32.partialorder %v3243_v34, 0.0  ;;  %v3914_v35 = vmul.f32 0.2, %v3243_v34 }
 0x587   : > { %vm3793_vm12 = vcmp.ge.f32.partialorder %v3245_v28, 0.0  ;;  %v3921_v2 = vmul.f32 0.2, %v3245_v28  ;;  %vm3794_vm13 = vcmp.ge.f32.partialorder %v3247_v17, 0.0  ;;  %v3922_v51 = vmul.f32 0.2, %v3247_v17 }
 0x588   : > { %v3143_v26 = vpop.f32.mrf.mxu0  ;;  %v7540_v55 = vpop.f32.mrf.mxu1  ;;  %v4042_v36 = vsel %vm3786_vm11, %v3243_v34, %v3914_v35  ;;  %v3251_v54 = vadd.f32 %v7346_v49, %v3138_v58  ;;  %v3253_v10 = vadd.f32 %v7354_v7, %v3140_v9  ;;  %v3142_v11 = vadd.f32 %v3141_v15, %v7445_v53 }
 0x589   : > { %v5648_v47 = vpack.c.bf16 %v4042_v36, %v4041_v31  ;;  %v4656_v39 = vmax.f32 %v4655_v12, %v4042_v36  ;;  %v4885_v19 = vadd.f32 %v4884_v29, %v4042_v36  ;;  %v4049_v48 = vsel %vm3793_vm12, %v3245_v28, %v3921_v2 }
 0x58a   : > { %v3147_v33 = vpop.f32.mrf.mxu0  ;;  %v7545_v40 = vpop.f32.mrf.mxu1  ;;  %v4636_v62 = vmax.f32 %v4635_v43, %v4049_v48  ;;  %v4865_v22 = vadd.f32 %v4864_v61, %v4049_v48  ;;  %v4050_v1 = vsel %vm3794_vm13, %v3247_v17, %v3922_v51  ;;  %vm3801_vm14 = vcmp.ge.f32.partialorder %v3251_v54, 0.0 }
 0x58b   : > { %4536 = vst [vmem:[%s7303_s18 + $0x88] sm:$0xff] %v5648_v47  ;;  %v5652_v34 = vpack.c.bf16 %v4050_v1, %v4049_v48  ;;  %v4657_v49 = vmax.f32 %v4656_v39, %v4050_v1  ;;  %v4886_v58 = vadd.f32 %v4885_v19, %v4050_v1  ;;  %v3929_v7 = vmul.f32 0.2, %v3251_v54 }
 0x58c   : > { %v3149_v9 = vpop.f32.mrf.mxu0  ;;  %v7549_v15 = vpop.f32.mrf.mxu1  ;;  %vm3802_vm15 = vcmp.ge.f32.partialorder %v3253_v10, 0.0  ;;  %v3930_v12 = vmul.f32 0.2, %v3253_v10  ;;  %v3255_v29 = vadd.f32 %v7359_v37, %v3142_v11  ;;  %v3144_v28 = vadd.f32 %v3143_v26, %v7451_v21 }
 0x58d   : > { %4540 = vst [vmem:[%s7303_s18 + $0xa8] sm:$0xff] %v5652_v34  ;;  %v4057_v31 = vsel %vm3801_vm14, %v3251_v54, %v3929_v7  ;;  %v3148_v43 = vadd.f32 %v3147_v33, %v7445_v53  ;;  %v3150_v17 = vadd.f32 %v3149_v9, %v7451_v21 }
 0x58e   : > { %v3151_v61 = vpop.f32.mrf.mxu0  ;;  %v7556_v35 = vpop.f32.mrf.mxu1  ;;  %v4637_v2 = vmax.f32 %v4636_v62, %v4057_v31  ;;  %v4866_v51 = vadd.f32 %v4865_v22, %v4057_v31  ;;  %v4058_v36 = vsel %vm3802_vm15, %v3253_v10, %v3930_v12  ;;  %vm3809_vm0 = vcmp.ge.f32.partialorder %v3255_v29, 0.0 }
 0x58f   : > { %v5656_v47 = vpack.c.bf16 %v4058_v36, %v4057_v31  ;;  %v4658_v39 = vmax.f32 %v4657_v49, %v4058_v36  ;;  %v4887_v19 = vadd.f32 %v4886_v58, %v4058_v36  ;;  %v3937_v37 = vmul.f32 0.2, %v3255_v29 }
 0x590   : > { %v3153_v11 = vpop.f32.mrf.mxu0  ;;  %v7558_v26 = vpop.f32.mrf.mxu1  ;;  %v3257_v54 = vadd.f32 %v7365_v4, %v3144_v28  ;;  %v3261_v48 = vadd.f32 %v7369_v50, %v3148_v43  ;;  %v3263_v33 = vadd.f32 %v7376_v46, %v3150_v17  ;;  %v3152_v1 = vadd.f32 %v3151_v61, %v7445_v53 }
 0x591   : > { %v6350_v62 = vmov 1966171168   ;;  %4544 = vst [vmem:[%s7303_s18 + $0xc8] sm:$0xff] %v5656_v47  ;;  %v4065_v10 = vsel %vm3809_vm0, %v3255_v29, %v3937_v37  ;;  %v3154_v22 = vadd.f32 %v3153_v11, %v7451_v21 }
 0x592   : > { %v7564_v34 = vunpack.c.l.s4 %v6350_v62  ;;  %v3157_v49 = vpop.f32.mrf.mxu0  ;;  %v7568_v58 = vpop.f32.mrf.mxu1  ;;  %v4638_v7 = vmax.f32 %v4637_v2, %v4065_v10  ;;  %v4867_v9 = vadd.f32 %v4866_v51, %v4065_v10  ;;  %vm3810_vm1 = vcmp.ge.f32.partialorder %v3257_v54, 0.0 }
 0x593   : > { %8280 = vst [vmem:[#allocation34_spill] sm:$0xff] %v7568_v58  ;;  %v3938_v4 = vmul.f32 0.2, %v3257_v54  ;;  %vm3817_vm2 = vcmp.ge.f32.partialorder %v3261_v48, 0.0  ;;  %v3945_v50 = vmul.f32 0.2, %v3261_v48  ;;  %v3265_v29 = vadd.f32 %v7380_v32, %v3152_v1 }
 0x594   : > { %vm3818_vm3 = vcmp.ge.f32.partialorder %v3263_v33, 0.0  ;;  %v3946_v46 = vmul.f32 0.2, %v3263_v33  ;;  %v3159_v12 = vpop.f32.mrf.mxu0  ;;  %v7570_v28 = vpop.f32.mrf.mxu1  ;;  %v3267_v43 = vadd.f32 %v7385_v18, %v3154_v22  ;;  %v3158_v17 = vadd.f32 %v3157_v49, %v7445_v53 }
 0x595   : > { %v4066_v31 = vsel %vm3810_vm1, %v3257_v54, %v3938_v4  ;;  %v4073_v36 = vsel %vm3817_vm2, %v3261_v48, %v3945_v50  ;;  %vm3825_vm4 = vcmp.ge.f32.partialorder %v3265_v29, 0.0  ;;  %v3953_v1 = vmul.f32 0.2, %v3265_v29 }
 0x596   : > { %v5660_v61 = vpack.c.bf16 %v4066_v31, %v4065_v10  ;;  %v4659_v2 = vmax.f32 %v4658_v39, %v4066_v31  ;;  %v4888_v51 = vadd.f32 %v4887_v19, %v4066_v31  ;;  %v3161_v47 = vpop.f32.mrf.mxu0  ;;  %v4639_v37 = vmax.f32 %v4638_v7, %v4073_v36  ;;  %v7575_v58 = vpop.f32.mrf.mxu1 }
 0x597   : > { %v4868_v11 = vadd.f32 %v4867_v9, %v4073_v36  ;;  %v4074_v62 = vsel %vm3818_vm3, %v3263_v33, %v3946_v46  ;;  %vm3826_vm5 = vcmp.ge.f32.partialorder %v3267_v43, 0.0  ;;  %v3954_v22 = vmul.f32 0.2, %v3267_v43 }
 0x598   : > { %4548 = vst [vmem:[%s7303_s18 + $0xe8] sm:$0xff] %v5660_v61  ;;  %v5664_v54 = vpack.c.bf16 %v4074_v62, %v4073_v36  ;;  %v4660_v4 = vmax.f32 %v4659_v2, %v4074_v62  ;;  %v4889_v32 = vadd.f32 %v4888_v51, %v4074_v62  ;;  %v3163_v18 = vpop.f32.mrf.mxu0  ;;  %v3271_v39 = vadd.f32 %v7389_v41, %v3158_v17  ;;  %v7584_v31 = vpop.f32.mrf.mxu1 }
 0x599   : > { %v3160_v19 = vadd.f32 %v3159_v12, %v7451_v21  ;;  %v4081_v48 = vsel %vm3825_vm4, %v3265_v29, %v3953_v1  ;;  %v3162_v10 = vadd.f32 %v3161_v47, %v7445_v53  ;;  %v3164_v33 = vadd.f32 %v3163_v18, %v7451_v21 }
 0x59a   : > { %4552 = vst [vmem:[%s7303_s18 + $0x108] sm:$0xff] %v5664_v54  ;;  %v3167_v49 = vpop.f32.mrf.mxu0  ;;  %v1865_v7 = vsub.s32 4, %v7242_v14  ;;  %v4640_v9 = vmax.f32 %v4639_v37, %v4081_v48  ;;  %v4869_v50 = vadd.f32 %v4868_v11, %v4081_v48  ;;  %v4082_v46 = vsel %vm3826_vm5, %v3267_v43, %v3954_v22  ;;  %v7596_v54 = vld [vmem:[%s8203_s12] sm:$0xff] }
 0x59b   : > { %vm3833_vm6 = vcmp.ge.f32.partialorder %v3271_v39, 0.0  ;;  %v5668_v61 = vpack.c.bf16 %v4082_v46, %v4081_v48  ;;  %v4661_v41 = vmax.f32 %v4660_v4, %v4082_v46  ;;  %v4890_v17 = vadd.f32 %v4889_v32, %v4082_v46  ;;  %v7601_v32 = vpop.f32.mrf.mxu1 }
 0x59c   : > { %v3961_v12 = vmul.f32 0.2, %v3271_v39  ;;  %v3169_v2 = vpop.f32.mrf.mxu0  ;;  %v3273_v29 = vadd.f32 %v7396_v24, %v3160_v19  ;;  %v3275_v51 = vadd.f32 %v7400_v20, %v3162_v10  ;;  %v3277_v36 = vadd.f32 %v7405_v52, %v3164_v33 }
 0x59d   : > { %v3168_v47 = vadd.f32 %v3167_v49, %v7445_v53  ;;  %v4772_v37 = vunpack.c.0.s8 %v7564_v34  ;;  %4556 = vst [vmem:[%s7303_s18 + $0x128] sm:$0xff] %v5668_v61  ;;  %v3170_v11 = vadd.f32 %v3169_v2, %v7451_v21  ;;  %v7599_v24 = vrot.slane %v7596_v54, %v1865_v7 }
 0x59e   : > { %v4089_v43 = vsel %vm3833_vm6, %v3271_v39, %v3961_v12  ;;  %v3171_v62 = vpop.f32.mrf.mxu0  ;;  %vm3834_vm7 = vcmp.ge.f32.partialorder %v3273_v29, 0.0  ;;  %v3962_v52 = vmul.f32 0.2, %v3273_v29  ;;  %vm3841_vm8 = vcmp.ge.f32.partialorder %v3275_v51, 0.0  ;;  %v7606_v12 = vpop.f32.mrf.mxu1 }
 0x59f   : > { %v4641_v20 = vmax.f32 %v4640_v9, %v4089_v43  ;;  %v4870_v4 = vadd.f32 %v4869_v50, %v4089_v43  ;;  %v3969_v34 = vmul.f32 0.2, %v3275_v51  ;;  %vm3842_vm9 = vcmp.ge.f32.partialorder %v3277_v36, 0.0 }
 0x5a0   : > { %v3970_v1 = vmul.f32 0.2, %v3277_v36  ;;  %v3173_v18 = vpop.f32.mrf.mxu0  ;;  %v4090_v22 = vsel %vm3834_vm7, %v3273_v29, %v3962_v52  ;;  %v3281_v39 = vadd.f32 %v7409_v23, %v3168_v47  ;;  %v3283_v19 = vadd.f32 %v7418_v16, %v3170_v11 }
 0x5a1   : > { %v3172_v48 = vadd.f32 %v3171_v62, %v7445_v53  ;;  %v5672_v10 = vpack.c.bf16 %v4090_v22, %v4089_v43  ;;  %v4662_v33 = vmax.f32 %v4661_v41, %v4090_v22  ;;  %v4891_v49 = vadd.f32 %v4890_v17, %v4090_v22 }
 0x5a2   : > { %v4097_v7 = vsel %vm3841_vm8, %v3275_v51, %v3969_v34  ;;  %v3177_v9 = vpop.f32.mrf.mxu0  ;;  %v4098_v61 = vsel %vm3842_vm9, %v3277_v36, %v3970_v1  ;;  %vm3849_vm10 = vcmp.ge.f32.partialorder %v3281_v39, 0.0  ;;  %v3977_v47 = vmul.f32 0.2, %v3281_v39  ;;  %v7615_v1 = vpop.f32.mrf.mxu1 }
 0x5a3   : > { %v4642_v50 = vmax.f32 %v4641_v20, %v4097_v7  ;;  %v4871_v46 = vadd.f32 %v4870_v4, %v4097_v7  ;;  %4560 = vst [vmem:[%s7303_s18 + $0x148] sm:$0xff] %v5672_v10  ;;  %v5676_v2 = vpack.c.bf16 %v4098_v61, %v4097_v7  ;;  %v4663_v29 = vmax.f32 %v4662_v33, %v4098_v61 }
 0x5a4   : > { %v4892_v23 = vadd.f32 %v4891_v49, %v4098_v61  ;;  %v3179_v16 = vpop.f32.mrf.mxu0  ;;  %vm3850_vm11 = vcmp.ge.f32.partialorder %v3283_v19, 0.0  ;;  %v3978_v11 = vmul.f32 0.2, %v3283_v19  ;;  %v3285_v41 = vadd.f32 %v7422_v44, %v3172_v48 }
 0x5a5   : > { %v3174_v17 = vadd.f32 %v3173_v18, %v7451_v21  ;;  %4564 = vst [vmem:[%s7303_s18 + $0x168] sm:$0xff] %v5676_v2  ;;  %v4105_v51 = vsel %vm3849_vm10, %v3281_v39, %v3977_v47  ;;  %v3178_v43 = vadd.f32 %v3177_v9, %v7445_v53  ;;  %v3180_v36 = vadd.f32 %v3179_v16, %v7451_v21 }
 0x5a6   : > { %v3181_v62 = vpop.f32.mrf.mxu0  ;;  %v1869_v20 = vsub.s32 5, %v7242_v14  ;;  %v4643_v4 = vmax.f32 %v4642_v50, %v4105_v51  ;;  %v4872_v52 = vadd.f32 %v4871_v46, %v4105_v51  ;;  %v4106_v34 = vsel %vm3850_vm11, %v3283_v19, %v3978_v11 }
 0x5a7   : > { %vm3857_vm12 = vcmp.ge.f32.partialorder %v3285_v41, 0.0  ;;  %v5680_v22 = vpack.c.bf16 %v4106_v34, %v4105_v51  ;;  %v4664_v44 = vmax.f32 %v4663_v29, %v4106_v34  ;;  %v4893_v48 = vadd.f32 %v4892_v23, %v4106_v34 }
 0x5a8   : > { %v3985_v18 = vmul.f32 0.2, %v3285_v41  ;;  %v3183_v10 = vpop.f32.mrf.mxu0  ;;  %v3287_v39 = vadd.f32 %v7429_v38, %v3174_v17  ;;  %v3291_v33 = vadd.f32 %v7431_v13, %v3178_v43  ;;  %v3293_v49 = vadd.f32 %v7439_v8, %v3180_v36  ;;  %v7629_v13 = vpop.f32.mrf.mxu1 }
 0x5a9   : > { %v3182_v7 = vadd.f32 %v3181_v62, %v7445_v53  ;;  %v7622_v9 = vsub.s32 %v4772_v37, %v7242_v14  ;;  %4568 = vst [vmem:[%s7303_s18 + $0x188] sm:$0xff] %v5680_v22  ;;  %v3184_v50 = vadd.f32 %v3183_v10, %v7451_v21  ;;  %v7627_v61 = vrot.slane %v7596_v54, %v1869_v20 }
 0x5aa   : > { %v4113_v19 = vsel %vm3857_vm12, %v3285_v41, %v3985_v18  ;;  %v3333_v46 = vpop.f32.mrf.mxu0  ;;  %vm3858_vm13 = vcmp.ge.f32.partialorder %v3287_v39, 0.0  ;;  %v3986_v38 = vmul.f32 0.2, %v3287_v39  ;;  %vm3865_vm14 = vcmp.ge.f32.partialorder %v3291_v33, 0.0  ;;  %v7634_v20 = vpop.f32.mrf.mxu1 }
 0x5ab   : > { %v4644_v2 = vmax.f32 %v4643_v4, %v4113_v19  ;;  %v4873_v29 = vadd.f32 %v4872_v52, %v4113_v19  ;;  %v3993_v8 = vmul.f32 0.2, %v3291_v33  ;;  %vm3866_vm15 = vcmp.ge.f32.partialorder %v3293_v49, 0.0 }
 0x5ac   : > { %v3994_v53 = vmul.f32 0.2, %v3293_v49  ;;  %v3335_v37 = vpop.f32.mrf.mxu0  ;;  %v4114_v23 = vsel %vm3858_vm13, %v3287_v39, %v3986_v38  ;;  %v3295_v47 = vadd.f32 %v7442_v42, %v3182_v7  ;;  %v3297_v21 = vadd.f32 %v7448_v56, %v3184_v50 }
 0x5ad   : > { %v3334_v16 = vadd.f32 %v3333_v46, %v7599_v24  ;;  %v5684_v11 = vpack.c.bf16 %v4114_v23, %v4113_v19  ;;  %v4665_v41 = vmax.f32 %v4664_v44, %v4114_v23  ;;  %v4894_v17 = vadd.f32 %v4893_v48, %v4114_v23  ;;  %v7643_v19 = vpop.f32.mrf.mxu1 }
 0x5ae   : > { %v4121_v51 = vsel %vm3865_vm14, %v3291_v33, %v3993_v8  ;;  %v3337_v43 = vpop.f32.mrf.mxu0  ;;  %v4122_v4 = vsel %vm3866_vm15, %v3293_v49, %v3994_v53  ;;  %vm3873_vm0 = vcmp.ge.f32.partialorder %v3295_v47, 0.0  ;;  %v4001_v22 = vmul.f32 0.2, %v3295_v47 }
 0x5af   : > { %v4645_v36 = vmax.f32 %v4644_v2, %v4121_v51  ;;  %v4874_v62 = vadd.f32 %v4873_v29, %v4121_v51  ;;  %4572 = vst [vmem:[%s7303_s18 + $0x1a8] sm:$0xff] %v5684_v11  ;;  %v5688_v52 = vpack.c.bf16 %v4122_v4, %v4121_v51  ;;  %v4666_v34 = vmax.f32 %v4665_v41, %v4122_v4 }
 0x5b0   : > { %v4895_v42 = vadd.f32 %v4894_v17, %v4122_v4  ;;  %v3339_v56 = vpop.f32.mrf.mxu0  ;;  %vm3874_vm1 = vcmp.ge.f32.partialorder %v3297_v21, 0.0  ;;  %v4002_v18 = vmul.f32 0.2, %v3297_v21  ;;  %v3447_v44 = vadd.f32 %v7453_v27, %v3334_v16 }
 0x5b1   : > { %v3336_v48 = vadd.f32 %v3335_v37, %v7627_v61  ;;  %4576 = vst [vmem:[%s7303_s18 + $0x1c8] sm:$0xff] %v5688_v52  ;;  %v4129_v10 = vsel %vm3873_vm0, %v3295_v47, %v4001_v22  ;;  %v3338_v39 = vadd.f32 %v3337_v43, %v7599_v24  ;;  %v3340_v33 = vadd.f32 %v3339_v56, %v7627_v61 }
 0x5b2   : > { %v3343_v49 = vpop.f32.mrf.mxu0  ;;  %v1873_v7 = vsub.s32 6, %v7242_v14  ;;  %v4646_v50 = vmax.f32 %v4645_v36, %v4129_v10  ;;  %v4875_v46 = vadd.f32 %v4874_v62, %v4129_v10  ;;  %v4130_v2 = vsel %vm3874_vm1, %v3297_v21, %v4002_v18  ;;  %v7651_v62 = vpop.f32.mrf.mxu1 }
 0x5b3   : > { %vm3755_vm2 = vcmp.ge.f32.partialorder %v3447_v44, 0.0  ;;  %v5692_v29 = vpack.c.bf16 %v4130_v2, %v4129_v10  ;;  %v4667_v27 = vmax.f32 %v4666_v34, %v4130_v2  ;;  %v4896_v38 = vadd.f32 %v4895_v42, %v4130_v2 }
 0x5b4   : > { %v3883_v8 = vmul.f32 0.2, %v3447_v44  ;;  %v3345_v53 = vpop.f32.mrf.mxu0  ;;  %v4647_v37 = vrot.slane %v4646_v50, 4  ;;  %v4876_v23 = vrot.slane %v4875_v46, 4  ;;  %v3449_v47 = vadd.f32 %v7458_v5, %v3336_v48 }
 0x5b5   : > { %v3451_v16 = vadd.f32 %v7462_v6, %v3338_v39  ;;  %4580 = vst [vmem:[%s7303_s18 + $0x1e8] sm:$0xff] %v5692_v29  ;;  %v4668_v11 = vrot.slane %v4667_v27, 4  ;;  %v4897_v41 = vrot.slane %v4896_v38, 4  ;;  %v3453_v51 = vadd.f32 %v7467_v3, %v3340_v33 }
 0x5b6   : > { %v7648_v17 = vsel %vm3755_vm2, %v3447_v44, %v3883_v8  ;;  %v3347_v21 = vpop.f32.mrf.mxu0  ;;  %v4648_v43 = vmax.f32 %v4646_v50, %v4647_v37  ;;  %v4877_v36 = vadd.f32 %v4876_v23, %v4875_v46  ;;  %vm3756_vm3 = vcmp.ge.f32.partialorder %v3449_v47, 0.0  ;;  %v7657_v50 = vpop.f32.mrf.mxu1 }
 0x5b7   : > { %v3884_v4 = vmul.f32 0.2, %v3449_v47  ;;  %v4669_v52 = vmax.f32 %v4667_v27, %v4668_v11  ;;  %v4898_v34 = vadd.f32 %v4897_v41, %v4896_v38  ;;  %vm3763_vm4 = vcmp.ge.f32.partialorder %v3451_v16, 0.0 }
 0x5b8   : > { %v3891_v5 = vmul.f32 0.2, %v3451_v16  ;;  %v3349_v42 = vpop.f32.mrf.mxu0  ;;  %v4649_v6 = vrot.slane %v4648_v43, 2  ;;  %v4878_v22 = vrot.slane %v4877_v36, 2  ;;  %vm3764_vm5 = vcmp.ge.f32.partialorder %v3453_v51, 0.0 }
 0x5b9   : > { %v7653_v56 = vsel %vm3756_vm3, %v3449_v47, %v3884_v4  ;;  %v4670_v18 = vrot.slane %v4669_v52, 2  ;;  %v4899_v3 = vrot.slane %v4898_v34, 2  ;;  %v3892_v38 = vmul.f32 0.2, %v3453_v51  ;;  %v8281_v4 = vld [vmem:[#allocation31_spill] sm:$0xff] }
 0x5ba   : > { %v5633_v44 = vpack.c.bf16 %v7653_v56, %v7648_v17  ;;  %v4019_v48 = vsel %vm3763_vm4, %v3451_v16, %v3891_v5  ;;  %v3353_v10 = vpop.f32.mrf.mxu0  ;;  %v4650_v39 = vmax.f32 %v4648_v43, %v4649_v6  ;;  %v4879_v33 = vadd.f32 %v4878_v22, %v4877_v36  ;;  %v7669_v6 = vpop.f32.mrf.mxu1 }
 0x5bb   : > { %v4674_v46 = vmax.f32 %v7648_v17, %v4019_v48  ;;  %v4903_v2 = vadd.f32 %v4019_v48, %v7648_v17  ;;  %v4671_v29 = vmax.f32 %v4669_v52, %v4670_v18  ;;  %v4900_v27 = vadd.f32 %v4899_v3, %v4898_v34 }
 0x5bc   : > { %4521 = vst [vmem:[%s7303_s18 + $0x10] sm:$0xff] %v5633_v44  ;;  %v3344_v8 = vadd.f32 %v3343_v49, %v7599_v24  ;;  %v3355_v37 = vpop.f32.mrf.mxu0  ;;  %v4651_v23 = vrot.slane %v4650_v39, 1  ;;  %v4880_v47 = vrot.slane %v4879_v33, 1  ;;  %v3346_v16 = vadd.f32 %v3345_v53, %v7627_v61  ;;  %v8282_v44 = vld [vmem:[#allocation27_spill] sm:$0xff] }
 0x5bd   : > { %v3348_v11 = vadd.f32 %v3347_v21, %v7599_v24  ;;  %v4672_v41 = vrot.slane %v4671_v29, 1  ;;  %v4901_v43 = vrot.slane %v4900_v27, 1  ;;  %v4020_v36 = vsel %vm3764_vm5, %v3453_v51, %v3892_v38 }
 0x5be   : > { %v3457_v17 = vadd.f32 %v8281_v4, %v3344_v8  ;;  %v3357_v52 = vpop.f32.mrf.mxu0  ;;  %v7667_v34 = vmax.f32 %v4650_v39, %v4651_v23  ;;  %v4881_v5 = vadd.f32 %v4880_v47, %v4879_v33  ;;  %v5637_v49 = vpack.c.bf16 %v4020_v36, %v4019_v48  ;;  %v7688_v47 = vpop.f32.mrf.mxu1 }
 0x5bf   : > { %v4695_v22 = vmax.f32 %v7653_v56, %v4020_v36  ;;  %v7672_v18 = vmax.f32 %v4671_v29, %v4672_v41  ;;  %v4902_v53 = vadd.f32 %v4901_v43, %v4900_v27  ;;  %v4924_v21 = vadd.f32 %v4020_v36, %v7653_v56 }
 0x5c0   : > { %vm3771_vm6 = vcmp.ge.f32.partialorder %v3457_v17, 0.0  ;;  %v3359_v3 = vpop.f32.mrf.mxu0  ;;  %4525 = vst [vmem:[%s7303_s18 + $0x30] sm:$0xff] %v5637_v49  ;;  %v3899_v51 = vmul.f32 0.2, %v3457_v17  ;;  %v3459_v38 = vadd.f32 %v8282_v44, %v3346_v16  ;;  %v3461_v39 = vadd.f32 %v7485_v60, %v3348_v11 }
 0x5c1   : > { %v3350_v33 = vadd.f32 %v3349_v42, %v7627_v61  ;;  %v8283_v48 = vcombine.low %v7489_v57, %v7501_v30  ;;  %v4767_v29 = vcombine.low %v7667_v34, %v7672_v18  ;;  %v4996_v56 = vcombine.low %v4881_v5, %v4902_v53  ;;  %v8288_v34 = vld [vmem:[#allocation32_spill] sm:$0xff] }
 0x5c2   : > { %v3354_v27 = vadd.f32 %v3353_v10, %v7599_v24  ;;  %v3363_v23 = vpop.f32.mrf.mxu0  ;;  %v4027_v16 = vsel %vm3771_vm6, %v3457_v17, %v3899_v51  ;;  %vm3772_vm7 = vcmp.ge.f32.partialorder %v3459_v38, 0.0  ;;  %v3900_v60 = vmul.f32 0.2, %v3459_v38  ;;  %v7698_v51 = vpop.f32.mrf.mxu1  ;;  %v8289_v18 = vld [vmem:[#allocation28_spill] sm:$0xff] }
 0x5c3   : > { %v7683_v8 = vrot.slane %v8283_v48, %v7622_v9  ;;  %v3356_v42 = vadd.f32 %v3355_v37, %v7627_v61  ;;  %v7692_v11 = vrot.slane %v4996_v56, %v7622_v9  ;;  %v4675_v57 = vmax.f32 %v4674_v46, %v4027_v16 }
 0x5c4   : > { %v4904_v30 = vadd.f32 %v4903_v2, %v4027_v16  ;;  %vm3779_vm8 = vcmp.ge.f32.partialorder %v3461_v39, 0.0  ;;  %v3365_v41 = vpop.f32.mrf.mxu0  ;;  %v4028_v43 = vsel %vm3772_vm7, %v3459_v38, %v3900_v60  ;;  %v3907_v36 = vmul.f32 0.2, %v3461_v39 }
 0x5c5   : > { %v3463_v10 = vadd.f32 %v7492_v25, %v3350_v33  ;;  %v3467_v4 = vadd.f32 %v7499_v63, %v3354_v27  ;;  %v5641_v5 = vpack.c.bf16 %v4028_v43, %v4027_v16  ;;  %v4696_v49 = vmax.f32 %v4695_v22, %v4028_v43  ;;  %v8284_v25 = vld [vmem:[#allocation29_spill] sm:$0xff] }
 0x5c6   : > { %v4925_v37 = vadd.f32 %v4924_v21, %v4028_v43  ;;  %v3367_v53 = vpop.f32.mrf.mxu0  ;;  %v4035_v46 = vsel %vm3779_vm8, %v3461_v39, %v3907_v36  ;;  %v3469_v33 = vadd.f32 %v8284_v25, %v3356_v42  ;;  %v3358_v27 = vadd.f32 %v3357_v52, %v7599_v24  ;;  %v8285_v25 = vld [vmem:[#allocation33_spill] sm:$0xff] }
 0x5c7   : > { %vm3780_vm9 = vcmp.ge.f32.partialorder %v3463_v10, 0.0  ;;  %v3908_v2 = vmul.f32 0.2, %v3463_v10  ;;  %vm3787_vm10 = vcmp.ge.f32.partialorder %v3467_v4, 0.0  ;;  %4529 = vst [vmem:[%s7303_s18 + $0x50] sm:$0xff] %v5641_v5  ;;  %v4676_v44 = vmax.f32 %v4675_v57, %v4035_v46  ;;  %v7705_v5 = vpop.f32.mrf.mxu1 }
 0x5c8   : > { %v4905_v38 = vadd.f32 %v4904_v30, %v4035_v46  ;;  %v3915_v48 = vmul.f32 0.2, %v3467_v4  ;;  %v3369_v63 = vpop.f32.mrf.mxu0  ;;  %v3360_v22 = vadd.f32 %v3359_v3, %v7627_v61  ;;  %v3364_v21 = vadd.f32 %v3363_v23, %v7599_v24 }
 0x5c9   : > { %v4036_v56 = vsel %vm3780_vm9, %v3463_v10, %v3908_v2  ;;  %vm3788_vm11 = vcmp.ge.f32.partialorder %v3469_v33, 0.0  ;;  %v3916_v42 = vmul.f32 0.2, %v3469_v33  ;;  %v3471_v10 = vadd.f32 %v8285_v25, %v3358_v27  ;;  %v8286_v2 = vld [vmem:[#allocation30_spill] sm:$0xff] }
 0x5ca   : > { %v5645_v16 = vpack.c.bf16 %v4036_v56, %v4035_v46  ;;  %v4697_v39 = vmax.f32 %v4696_v49, %v4036_v56  ;;  %v4926_v60 = vadd.f32 %v4925_v37, %v4036_v56  ;;  %v4043_v43 = vsel %vm3787_vm10, %v3467_v4, %v3915_v48  ;;  %v3373_v36 = vpop.f32.mrf.mxu0 }
 0x5cb   : > { %v4677_v57 = vmax.f32 %v4676_v44, %v4043_v43  ;;  %v4906_v30 = vadd.f32 %v4905_v38, %v4043_v43  ;;  %v3473_v52 = vadd.f32 %v8286_v2, %v3360_v22  ;;  %v3477_v3 = vadd.f32 %v7526_v59, %v3364_v21 }
 0x5cc   : > { %4533 = vst [vmem:[%s7303_s18 + $0x70] sm:$0xff] %v5645_v16  ;;  %v3366_v23 = vadd.f32 %v3365_v41, %v7627_v61  ;;  %v3375_v49 = vpop.f32.mrf.mxu0  ;;  %v4044_v37 = vsel %vm3788_vm11, %v3469_v33, %v3916_v42  ;;  %v3368_v4 = vadd.f32 %v3367_v53, %v7599_v24  ;;  %v3370_v46 = vadd.f32 %v3369_v63, %v7627_v61  ;;  %v7715_v16 = vpop.f32.mrf.mxu1 }
 0x5cd   : > { %v3374_v44 = vadd.f32 %v3373_v36, %v7599_v24  ;;  %v5649_v38 = vpack.c.bf16 %v4044_v37, %v4043_v43  ;;  %v4698_v48 = vmax.f32 %v4697_v39, %v4044_v37  ;;  %v4927_v56 = vadd.f32 %v4926_v60, %v4044_v37 }
 0x5ce   : > { %vm3795_vm12 = vcmp.ge.f32.partialorder %v3471_v10, 0.0  ;;  %v3377_v27 = vpop.f32.mrf.mxu0  ;;  %v3923_v22 = vmul.f32 0.2, %v3471_v10  ;;  %vm3796_vm13 = vcmp.ge.f32.partialorder %v3473_v52, 0.0  ;;  %v3924_v59 = vmul.f32 0.2, %v3473_v52  ;;  %v7723_v17 = vpop.f32.mrf.mxu1 }
 0x5cf   : > { %vm3803_vm14 = vcmp.ge.f32.partialorder %v3477_v3, 0.0  ;;  %4537 = vst [vmem:[%s7303_s18 + $0x90] sm:$0xff] %v5649_v38  ;;  %v3931_v41 = vmul.f32 0.2, %v3477_v3  ;;  %v3479_v33 = vadd.f32 %v7530_v0, %v3366_v23  ;;  %v3481_v53 = vadd.f32 %v7538_v45, %v3368_v4 }
 0x5d0   : > { %v3483_v63 = vadd.f32 %v7540_v55, %v3370_v46  ;;  %v3379_v21 = vpop.f32.mrf.mxu0  ;;  %v4051_v39 = vsel %vm3795_vm12, %v3471_v10, %v3923_v22  ;;  %v4052_v60 = vsel %vm3796_vm13, %v3473_v52, %v3924_v59  ;;  %v3487_v43 = vadd.f32 %v7545_v40, %v3374_v44 }
 0x5d1   : > { %v3376_v36 = vadd.f32 %v3375_v49, %v7627_v61  ;;  %v4678_v42 = vmax.f32 %v4677_v57, %v4051_v39  ;;  %v4907_v25 = vadd.f32 %v4906_v30, %v4051_v39  ;;  %v5653_v2 = vpack.c.bf16 %v4052_v60, %v4051_v39 }
 0x5d2   : > { %v4699_v37 = vmax.f32 %v4698_v48, %v4052_v60  ;;  %v3383_v38 = vpop.f32.mrf.mxu0  ;;  %v4928_v0 = vadd.f32 %v4927_v56, %v4052_v60  ;;  %v4059_v45 = vsel %vm3803_vm14, %v3477_v3, %v3931_v41  ;;  %vm3804_vm15 = vcmp.ge.f32.partialorder %v3479_v33, 0.0  ;;  %v7727_v3 = vpop.f32.mrf.mxu1 }
 0x5d3   : > { %v3932_v55 = vmul.f32 0.2, %v3479_v33  ;;  %4541 = vst [vmem:[%s7303_s18 + $0xb0] sm:$0xff] %v5653_v2  ;;  %v4679_v23 = vmax.f32 %v4678_v42, %v4059_v45  ;;  %v4908_v10 = vadd.f32 %v4907_v25, %v4059_v45  ;;  %vm3811_vm0 = vcmp.ge.f32.partialorder %v3481_v53, 0.0 }
 0x5d4   : > { %v3939_v52 = vmul.f32 0.2, %v3481_v53  ;;  %v3385_v40 = vpop.f32.mrf.mxu0  ;;  %vm3812_vm1 = vcmp.ge.f32.partialorder %v3483_v63, 0.0  ;;  %v3940_v57 = vmul.f32 0.2, %v3483_v63  ;;  %vm3819_vm2 = vcmp.ge.f32.partialorder %v3487_v43, 0.0 }
 0x5d5   : > { %v4060_v49 = vsel %vm3804_vm15, %v3479_v33, %v3932_v55  ;;  %v3947_v41 = vmul.f32 0.2, %v3487_v43  ;;  %v3489_v33 = vadd.f32 %v7549_v15, %v3376_v36  ;;  %v8287_v36 = vld [vmem:[#allocation34_spill] sm:$0xff] }
 0x5d6   : > { %v5657_v30 = vpack.c.bf16 %v4060_v49, %v4059_v45  ;;  %v4700_v4 = vmax.f32 %v4699_v37, %v4060_v49  ;;  %v4929_v46 = vadd.f32 %v4928_v0, %v4060_v49  ;;  %v4067_v44 = vsel %vm3811_vm0, %v3481_v53, %v3939_v52  ;;  %v3387_v48 = vpop.f32.mrf.mxu0 }
 0x5d7   : > { %v4680_v56 = vmax.f32 %v4679_v23, %v4067_v44  ;;  %v4909_v22 = vadd.f32 %v4908_v10, %v4067_v44  ;;  %v4068_v59 = vsel %vm3812_vm1, %v3483_v63, %v3940_v57  ;;  %v4075_v2 = vsel %vm3819_vm2, %v3487_v43, %v3947_v41  ;;  %v7736_v10 = vpop.f32.mrf.mxu1 }
 0x5d8   : > { %4545 = vst [vmem:[%s7303_s18 + $0xd0] sm:$0xff] %v5657_v30  ;;  %v5661_v39 = vpack.c.bf16 %v4068_v59, %v4067_v44  ;;  %v4701_v60 = vmax.f32 %v4700_v4, %v4068_v59  ;;  %v4930_v42 = vadd.f32 %v4929_v46, %v4068_v59  ;;  %v3389_v25 = vpop.f32.mrf.mxu0  ;;  %v3378_v37 = vadd.f32 %v3377_v27, %v7599_v24 }
 0x5d9   : > { %v3380_v53 = vadd.f32 %v3379_v21, %v7627_v61  ;;  %v3384_v0 = vadd.f32 %v3383_v38, %v7599_v24  ;;  %v4681_v45 = vmax.f32 %v4680_v56, %v4075_v2  ;;  %v4910_v55 = vadd.f32 %v4909_v22, %v4075_v2  ;;  %v7745_v22 = vpop.f32.mrf.mxu1 }
 0x5da   : > { %4549 = vst [vmem:[%s7303_s18 + $0xf0] sm:$0xff] %v5661_v39  ;;  %vm3820_vm3 = vcmp.ge.f32.partialorder %v3489_v33, 0.0  ;;  %v3948_v63 = vmul.f32 0.2, %v3489_v33  ;;  %v3393_v23 = vpop.f32.mrf.mxu0  ;;  %v3491_v52 = vadd.f32 %v7556_v35, %v3378_v37  ;;  %v3386_v27 = vadd.f32 %v3385_v40, %v7627_v61 }
 0x5db   : > { %v3493_v15 = vadd.f32 %v7558_v26, %v3380_v53  ;;  %v3497_v43 = vadd.f32 %v8287_v36, %v3384_v0  ;;  %v3388_v38 = vadd.f32 %v3387_v48, %v7599_v24  ;;  %v3390_v49 = vadd.f32 %v3389_v25, %v7627_v61  ;;  %v7754_v36 = vpop.f32.mrf.mxu1 }
 0x5dc   : > { %v4076_v21 = vsel %vm3820_vm3, %v3489_v33, %v3948_v63  ;;  %v3394_v57 = vadd.f32 %v3393_v23, %v7599_v24  ;;  %v3395_v30 = vpop.f32.mrf.mxu0  ;;  %vm3827_vm4 = vcmp.ge.f32.partialorder %v3491_v52, 0.0  ;;  %v3955_v35 = vmul.f32 0.2, %v3491_v52 }
 0x5dd   : > { %v5665_v4 = vpack.c.bf16 %v4076_v21, %v4075_v2  ;;  %v4702_v46 = vmax.f32 %v4701_v60, %v4076_v21  ;;  %v4931_v44 = vadd.f32 %v4930_v42, %v4076_v21  ;;  %vm3828_vm5 = vcmp.ge.f32.partialorder %v3493_v15, 0.0 }
 0x5de   : > { %v3956_v26 = vmul.f32 0.2, %v3493_v15  ;;  %vm3835_vm6 = vcmp.ge.f32.partialorder %v3497_v43, 0.0  ;;  %v3397_v56 = vpop.f32.mrf.mxu0  ;;  %v3963_v40 = vmul.f32 0.2, %v3497_v43  ;;  %v3499_v48 = vadd.f32 %v7570_v28, %v3386_v27 }
 0x5df   : > { %4553 = vst [vmem:[%s7303_s18 + $0x110] sm:$0xff] %v5665_v4  ;;  %v3501_v59 = vadd.f32 %v7575_v58, %v3388_v38  ;;  %v3503_v41 = vadd.f32 %v7584_v31, %v3390_v49  ;;  %v4083_v39 = vsel %vm3827_vm4, %v3491_v52, %v3955_v35  ;;  %v3507_v42 = vadd.f32 %v7601_v32, %v3394_v57 }
 0x5e0   : > { %v4084_v60 = vsel %vm3828_vm5, %v3493_v15, %v3956_v26  ;;  %v3396_v33 = vadd.f32 %v3395_v30, %v7627_v61  ;;  %v3399_v25 = vpop.f32.mrf.mxu0  ;;  %v4682_v2 = vmax.f32 %v4681_v45, %v4083_v39  ;;  %v4911_v37 = vadd.f32 %v4910_v55, %v4083_v39 }
 0x5e1   : > { %v5669_v53 = vpack.c.bf16 %v4084_v60, %v4083_v39  ;;  %v4703_v0 = vmax.f32 %v4702_v46, %v4084_v60  ;;  %v4932_v63 = vadd.f32 %v4931_v44, %v4084_v60  ;;  %v4091_v23 = vsel %vm3835_vm6, %v3497_v43, %v3963_v40  ;;  %v7757_v44 = vpop.f32.mrf.mxu1 }
 0x5e2   : > { %vm3836_vm7 = vcmp.ge.f32.partialorder %v3499_v48, 0.0  ;;  %v3964_v28 = vmul.f32 0.2, %v3499_v48  ;;  %v3403_v58 = vpop.f32.mrf.mxu0  ;;  %v4683_v31 = vmax.f32 %v4682_v2, %v4091_v23  ;;  %v4912_v52 = vadd.f32 %v4911_v37, %v4091_v23 }
 0x5e3   : > { %4557 = vst [vmem:[%s7303_s18 + $0x130] sm:$0xff] %v5669_v53  ;;  %vm3843_vm8 = vcmp.ge.f32.partialorder %v3501_v59, 0.0  ;;  %v3971_v32 = vmul.f32 0.2, %v3501_v59  ;;  %vm3844_vm9 = vcmp.ge.f32.partialorder %v3503_v41, 0.0  ;;  %vm3851_vm10 = vcmp.ge.f32.partialorder %v3507_v42, 0.0 }
 0x5e4   : > { %v4092_v15 = vsel %vm3836_vm7, %v3499_v48, %v3964_v28  ;;  %v3972_v45 = vmul.f32 0.2, %v3503_v41  ;;  %v3405_v55 = vpop.f32.mrf.mxu0  ;;  %v3979_v4 = vmul.f32 0.2, %v3507_v42  ;;  %v3509_v48 = vadd.f32 %v7606_v12, %v3396_v33  ;;  %v7772_v33 = vpop.f32.mrf.mxu1 }
 0x5e5   : > { %v5673_v27 = vpack.c.bf16 %v4092_v15, %v4091_v23  ;;  %v4704_v21 = vmax.f32 %v4703_v0, %v4092_v15  ;;  %v4933_v38 = vadd.f32 %v4932_v63, %v4092_v15  ;;  %v4099_v43 = vsel %vm3843_vm8, %v3501_v59, %v3971_v32 }
 0x5e6   : > { %v4684_v49 = vmax.f32 %v4683_v31, %v4099_v43  ;;  %v4913_v57 = vadd.f32 %v4912_v52, %v4099_v43  ;;  %v4100_v30 = vsel %vm3844_vm9, %v3503_v41, %v3972_v45  ;;  %v3407_v46 = vpop.f32.mrf.mxu0  ;;  %v4107_v39 = vsel %vm3851_vm10, %v3507_v42, %v3979_v4 }
 0x5e7   : > { %4561 = vst [vmem:[%s7303_s18 + $0x150] sm:$0xff] %v5673_v27  ;;  %v5677_v35 = vpack.c.bf16 %v4100_v30, %v4099_v43  ;;  %v4705_v26 = vmax.f32 %v4704_v21, %v4100_v30  ;;  %v4934_v40 = vadd.f32 %v4933_v38, %v4100_v30  ;;  %v3398_v60 = vadd.f32 %v3397_v56, %v7599_v24  ;;  %v7788_v27 = vpop.f32.mrf.mxu1 }
 0x5e8   : > { %v3400_v59 = vadd.f32 %v3399_v25, %v7627_v61  ;;  %v3404_v2 = vadd.f32 %v3403_v58, %v7599_v24  ;;  %v3409_v37 = vpop.f32.mrf.mxu0  ;;  %v4685_v41 = vmax.f32 %v4684_v49, %v4107_v39  ;;  %v4914_v53 = vadd.f32 %v4913_v57, %v4107_v39 }
 0x5e9   : > { %4565 = vst [vmem:[%s7303_s18 + $0x170] sm:$0xff] %v5677_v35  ;;  %vm3852_vm11 = vcmp.ge.f32.partialorder %v3509_v48, 0.0  ;;  %v3980_v0 = vmul.f32 0.2, %v3509_v48  ;;  %v3511_v63 = vadd.f32 %v7615_v1, %v3398_v60  ;;  %v3406_v42 = vadd.f32 %v3405_v55, %v7627_v61 }
 0x5ea   : > { %v3513_v23 = vadd.f32 %v7629_v13, %v3400_v59  ;;  %v3517_v12 = vadd.f32 %v7634_v20, %v3404_v2  ;;  %v7770_v56 = vpop.f32.mrf.mxu0  ;;  %v3408_v28 = vadd.f32 %v3407_v46, %v7599_v24  ;;  %v3410_v58 = vadd.f32 %v3409_v37, %v7627_v61 }
 0x5eb   : > { %v4108_v25 = vsel %vm3852_vm11, %v3509_v48, %v3980_v0  ;;  %vm3859_vm12 = vcmp.ge.f32.partialorder %v3511_v63, 0.0  ;;  %v3987_v13 = vmul.f32 0.2, %v3511_v63  ;;  %v7781_v15 = vrot.slane %v7596_v54, %v1873_v7 }
 0x5ec   : > { %v5681_v31 = vpack.c.bf16 %v4108_v25, %v4107_v39  ;;  %v4706_v52 = vmax.f32 %v4705_v26, %v4108_v25  ;;  %v4935_v32 = vadd.f32 %v4934_v40, %v4108_v25  ;;  %v7776_v1 = vpop.f32.mrf.mxu0  ;;  %vm3860_vm13 = vcmp.ge.f32.partialorder %v3513_v23, 0.0  ;;  %v7796_v39 = vpop.f32.mrf.mxu1 }
 0x5ed   : > { %v3988_v20 = vmul.f32 0.2, %v3513_v23  ;;  %vm3867_vm14 = vcmp.ge.f32.partialorder %v3517_v12, 0.0  ;;  %v3995_v45 = vmul.f32 0.2, %v3517_v12  ;;  %v3519_v24 = vadd.f32 %v7643_v19, %v3406_v42 }
 0x5ee   : > { %4569 = vst [vmem:[%s7303_s18 + $0x190] sm:$0xff] %v5681_v31  ;;  %v3521_v61 = vadd.f32 %v7651_v62, %v3408_v28  ;;  %v7786_v55 = vpop.f32.mrf.mxu0  ;;  %v4115_v21 = vsel %vm3859_vm12, %v3511_v63, %v3987_v13  ;;  %v3523_v43 = vadd.f32 %v7657_v50, %v3410_v58  ;;  %v1877_v49 = vsub.s32 7, %v7242_v14 }
 0x5ef   : > { %v4116_v38 = vsel %vm3860_vm13, %v3513_v23, %v3988_v20  ;;  %v4686_v7 = vmax.f32 %v4685_v41, %v4115_v21  ;;  %v4915_v57 = vadd.f32 %v4914_v53, %v4115_v21  ;;  %v4123_v62 = vsel %vm3867_vm14, %v3517_v12, %v3995_v45 }
 0x5f0   : > { %v5685_v30 = vpack.c.bf16 %v4116_v38, %v4115_v21  ;;  %v4707_v4 = vmax.f32 %v4706_v52, %v4116_v38  ;;  %v7792_v46 = vpop.f32.mrf.mxu0  ;;  %v4936_v19 = vadd.f32 %v4935_v32, %v4116_v38  ;;  %vm3868_vm15 = vcmp.ge.f32.partialorder %v3519_v24, 0.0 }
 0x5f1   : > { %v3996_v35 = vmul.f32 0.2, %v3519_v24  ;;  %v4687_v26 = vmax.f32 %v4686_v7, %v4123_v62  ;;  %v4916_v40 = vadd.f32 %v4915_v57, %v4123_v62  ;;  %vm3875_vm0 = vcmp.ge.f32.partialorder %v3521_v61, 0.0 }
 0x5f2   : > { %4573 = vst [vmem:[%s7303_s18 + $0x1b0] sm:$0xff] %v5685_v30  ;;  %v4003_v48 = vmul.f32 0.2, %v3521_v61  ;;  %v3569_v50 = vpop.f32.mrf.mxu0  ;;  %vm3876_vm1 = vcmp.ge.f32.partialorder %v3523_v43, 0.0  ;;  %v4004_v60 = vmul.f32 0.2, %v3523_v43  ;;  %v7799_v59 = vrot.slane %v7596_v54, %v1877_v49  ;;  %v7804_v54 = vpop.f32.mrf.mxu1 }
 0x5f3   : > { %v4124_v14 = vsel %vm3868_vm15, %v3519_v24, %v3996_v35  ;;  %v3570_v42 = vadd.f32 %v3569_v50, %v7781_v15 }
 0x5f4   : > { %v5689_v2 = vpack.c.bf16 %v4124_v14, %v4123_v62  ;;  %v4708_v37 = vmax.f32 %v4707_v4, %v4124_v14  ;;  %v4937_v41 = vadd.f32 %v4936_v19, %v4124_v14  ;;  %v4131_v53 = vsel %vm3875_vm0, %v3521_v61, %v4003_v48  ;;  %v3571_v0 = vpop.f32.mrf.mxu0  ;;  %v7810_v62 = vpop.f32.mrf.mxu1 }
 0x5f5   : > { %v4688_v63 = vmax.f32 %v4687_v26, %v4131_v53  ;;  %v4917_v23 = vadd.f32 %v4916_v40, %v4131_v53  ;;  %v4132_v12 = vsel %vm3876_vm1, %v3523_v43, %v4004_v60  ;;  %v3572_v31 = vadd.f32 %v3571_v0, %v7799_v59 }
 0x5f6   : > { %4577 = vst [vmem:[%s7303_s18 + $0x1d0] sm:$0xff] %v5689_v2  ;;  %v5693_v25 = vpack.c.bf16 %v4132_v12, %v4131_v53  ;;  %v4709_v28 = vmax.f32 %v4708_v37, %v4132_v12  ;;  %v4938_v58 = vadd.f32 %v4937_v41, %v4132_v12  ;;  %v3573_v52 = vpop.f32.mrf.mxu0  ;;  %v3683_v20 = vadd.f32 %v7669_v6, %v3570_v42  ;;  %v7821_v12 = vpop.f32.mrf.mxu1 }
 0x5f7   : > { %v4689_v32 = vrot.slane %v4688_v63, 4  ;;  %v4918_v13 = vrot.slane %v4917_v23, 4  ;;  %v3574_v45 = vadd.f32 %v3573_v52, %v7781_v15  ;;  %v3685_v21 = vadd.f32 %v7688_v47, %v3572_v31 }
 0x5f8   : > { %4581 = vst [vmem:[%s7303_s18 + $0x1f0] sm:$0xff] %v5693_v25  ;;  %v4710_v24 = vrot.slane %v4709_v28, 4  ;;  %v4939_v61 = vrot.slane %v4938_v58, 4  ;;  %v3575_v38 = vpop.f32.mrf.mxu0  ;;  %vm3773_vm2 = vcmp.ge.f32.partialorder %v3683_v20, 0.0  ;;  %v3901_v7 = vmul.f32 0.2, %v3683_v20 }
 0x5f9   : > { %v4690_v43 = vmax.f32 %v4688_v63, %v4689_v32  ;;  %v4919_v49 = vadd.f32 %v4918_v13, %v4917_v23  ;;  %vm3774_vm3 = vcmp.ge.f32.partialorder %v3685_v21, 0.0  ;;  %v3902_v4 = vmul.f32 0.2, %v3685_v21 }
 0x5fa   : > { %v4711_v57 = vmax.f32 %v4709_v28, %v4710_v24  ;;  %v4940_v30 = vadd.f32 %v4939_v61, %v4938_v58  ;;  %v3579_v19 = vpop.f32.mrf.mxu0  ;;  %v7812_v26 = vsel %vm3773_vm2, %v3683_v20, %v3901_v7  ;;  %v3687_v40 = vadd.f32 %v7698_v51, %v3574_v45 }
 0x5fb   : > { %v4691_v6 = vrot.slane %v4690_v43, 2  ;;  %v4920_v35 = vrot.slane %v4919_v49, 2  ;;  %v7815_v50 = vsel %vm3774_vm3, %v3685_v21, %v3902_v4  ;;  %v3576_v14 = vadd.f32 %v3575_v38, %v7799_v59 }
 0x5fc   : > { %v4712_v48 = vrot.slane %v4711_v57, 2  ;;  %v4941_v47 = vrot.slane %v4940_v30, 2  ;;  %v3581_v60 = vpop.f32.mrf.mxu0  ;;  %v5642_v41 = vpack.c.bf16 %v7815_v50, %v7812_v26  ;;  %vm3781_vm4 = vcmp.ge.f32.partialorder %v3687_v40, 0.0 }
 0x5fd   : > { %v4692_v2 = vmax.f32 %v4690_v43, %v4691_v6  ;;  %v4921_v37 = vadd.f32 %v4920_v35, %v4919_v49  ;;  %v3909_v63 = vmul.f32 0.2, %v3687_v40  ;;  %v3689_v23 = vadd.f32 %v7705_v5, %v3576_v14  ;;  %v7839_v49 = vpop.f32.mrf.mxu1 }
 0x5fe   : > { %v4713_v53 = vmax.f32 %v4711_v57, %v4712_v48  ;;  %v4942_v0 = vadd.f32 %v4941_v47, %v4940_v30  ;;  %v3583_v51 = vpop.f32.mrf.mxu0  ;;  %4530 = vst [vmem:[%s7303_s18 + $0x58] sm:$0xff] %v5642_v41  ;;  %v3580_v28 = vadd.f32 %v3579_v19, %v7781_v15  ;;  %v3582_v58 = vadd.f32 %v3581_v60, %v7799_v59 }
 0x5ff   : > { %v4693_v42 = vrot.slane %v4692_v2, 1  ;;  %v4922_v25 = vrot.slane %v4921_v37, 1  ;;  %vm3782_vm5 = vcmp.ge.f32.partialorder %v3689_v23, 0.0  ;;  %v7831_v5 = vsel %vm3781_vm4, %v3687_v40, %v3909_v63 }
 0x600   : > { %v4714_v31 = vrot.slane %v4713_v53, 1  ;;  %v4943_v52 = vrot.slane %v4942_v0, 1  ;;  %v3585_v32 = vpop.f32.mrf.mxu0  ;;  %v3910_v45 = vmul.f32 0.2, %v3689_v23  ;;  %v3693_v21 = vadd.f32 %v7715_v16, %v3580_v28 }
 0x601   : > { %v7826_v13 = vmax.f32 %v4692_v2, %v4693_v42  ;;  %v7828_v20 = vadd.f32 %v4922_v25, %v4921_v37  ;;  %v3695_v38 = vadd.f32 %v7723_v17, %v3582_v58  ;;  %v3584_v57 = vadd.f32 %v3583_v51, %v7781_v15  ;;  %v7861_v2 = vpop.f32.mrf.mxu1 }
 0x602   : > { %v7833_v24 = vmax.f32 %v4713_v53, %v4714_v31  ;;  %v7835_v61 = vadd.f32 %v4943_v52, %v4942_v0  ;;  %v3589_v43 = vpop.f32.mrf.mxu0  ;;  %v7841_v7 = vsel %vm3782_vm5, %v3689_v23, %v3910_v45  ;;  %v3586_v30 = vadd.f32 %v3585_v32, %v7799_v59 }
 0x603   : > { %v3590_v4 = vadd.f32 %v3589_v43, %v7781_v15  ;;  %v5646_v17 = vpack.c.bf16 %v7841_v7, %v7831_v5  ;;  %vm3789_vm6 = vcmp.ge.f32.partialorder %v3693_v21, 0.0  ;;  %v3917_v35 = vmul.f32 0.2, %v3693_v21  ;;  %v7881_v31 = vpop.f32.mrf.mxu1 }
 0x604   : > { %v4768_v19 = vcombine.low %v7826_v13, %v7833_v24  ;;  %v4997_v16 = vcombine.low %v7828_v20, %v7835_v61  ;;  %v3591_v6 = vpop.f32.mrf.mxu0  ;;  %vm3790_vm7 = vcmp.ge.f32.partialorder %v3695_v38, 0.0  ;;  %v3918_v40 = vmul.f32 0.2, %v3695_v38 }
 0x605   : > { %v7856_v48 = vrot.slane %v4767_v29, %v7622_v9  ;;  %4534 = vst [vmem:[%s7303_s18 + $0x78] sm:$0xff] %v5646_v17  ;;  %v3697_v47 = vadd.f32 %v7727_v3, %v3584_v57  ;;  %v3699_v14 = vadd.f32 %v7736_v10, %v3586_v30  ;;  %v7863_v37 = vsel %vm3789_vm6, %v3693_v21, %v3917_v35 }
 0x606   : > { %v3593_v60 = vpop.f32.mrf.mxu0  ;;  %v7865_v41 = vsel %vm3790_vm7, %v3695_v38, %v3918_v40  ;;  %v3703_v53 = vadd.f32 %v7745_v22, %v3590_v4  ;;  %v3592_v0 = vadd.f32 %v3591_v6, %v7799_v59  ;;  %v8290_v29 = vcombine.low %v8288_v34, %v8289_v18  ;;  %v7900_v40 = vpop.f32.mrf.mxu1 }
 0x607   : > { %v5650_v3 = vpack.c.bf16 %v7865_v41, %v7863_v37  ;;  %vm3797_vm8 = vcmp.ge.f32.partialorder %v3697_v47, 0.0  ;;  %v3925_v23 = vmul.f32 0.2, %v3697_v47  ;;  %vm3798_vm9 = vcmp.ge.f32.partialorder %v3699_v14, 0.0 }
 0x608   : > { %v7873_v63 = vrot.slane %v8290_v29, %v7622_v9  ;;  %v3595_v10 = vpop.f32.mrf.mxu0  ;;  %v3926_v51 = vmul.f32 0.2, %v3699_v14  ;;  %vm3805_vm10 = vcmp.ge.f32.partialorder %v3703_v53, 0.0  ;;  %v3933_v42 = vmul.f32 0.2, %v3703_v53 }
 0x609   : > { %4538 = vst [vmem:[%s7303_s18 + $0x98] sm:$0xff] %v5650_v3  ;;  %v3705_v22 = vadd.f32 %v7754_v36, %v3592_v0  ;;  %v3594_v25 = vadd.f32 %v3593_v60, %v7781_v15  ;;  %v3596_v28 = vadd.f32 %v3595_v10, %v7799_v59  ;;  %v7883_v52 = vsel %vm3797_vm8, %v3697_v47, %v3925_v23  ;;  %v3734_v10 = vpop.f32.mrf.mxu1 }
 0x60a   : > { %v3599_v58 = vpop.f32.mrf.mxu0  ;;  %v7885_v32 = vsel %vm3798_vm9, %v3699_v14, %v3926_v51  ;;  %v4798_v21 = vcombine.low %v7873_v63, %v7856_v48  ;;  %v7896_v4 = vsel %vm3805_vm10, %v3703_v53, %v3933_v42 }
 0x60b   : > { %v3600_v45 = vadd.f32 %v3599_v58, %v7781_v15  ;;  %v5654_v38 = vpack.c.bf16 %v7885_v32, %v7883_v52  ;;  %vm3806_vm11 = vcmp.ge.f32.partialorder %v3705_v22, 0.0  ;;  %v3934_v43 = vmul.f32 0.2, %v3705_v22 }
 0x60c   : > { %v3601_v36 = vpop.f32.mrf.mxu0  ;;  %v3707_v57 = vadd.f32 %v7757_v44, %v3594_v25  ;;  %v3709_v30 = vadd.f32 %v7772_v33, %v3596_v28 }
 0x60d   : > { %4542 = vst [vmem:[%s7303_s18 + $0xb8] sm:$0xff] %v5654_v38  ;;  %v3713_v17 = vadd.f32 %v7788_v27, %v3600_v45  ;;  %v3602_v6 = vadd.f32 %v3601_v36, %v7799_v59  ;;  %v7902_v47 = vsel %vm3806_vm11, %v3705_v22, %v3934_v43  ;;  %v3736_v43 = vpop.f32.mrf.mxu1 }
 0x60e   : > { %v3603_v35 = vpop.f32.mrf.mxu0  ;;  %vm3813_vm12 = vcmp.ge.f32.partialorder %v3707_v57, 0.0  ;;  %v3941_v14 = vmul.f32 0.2, %v3707_v57  ;;  %vm3814_vm13 = vcmp.ge.f32.partialorder %v3709_v30, 0.0  ;;  %v5658_v44 = vpack.c.bf16 %v7902_v47, %v7896_v4 }
 0x60f   : > { %v3942_v33 = vmul.f32 0.2, %v3709_v30  ;;  %v3949_v0 = vmul.f32 0.2, %v3713_v17  ;;  %v3715_v53 = vadd.f32 %v7796_v39, %v3602_v6  ;;  %v3604_v27 = vadd.f32 %v3603_v35, %v7781_v15 }
 0x610   : > { %v3605_v60 = vpop.f32.mrf.mxu0  ;;  %4546 = vst [vmem:[%s7303_s18 + $0xd8] sm:$0xff] %v5658_v44  ;;  %v7909_v34 = vsel %vm3813_vm12, %v3707_v57, %v3941_v14  ;;  %vm3821_vm14 = vcmp.ge.f32.partialorder %v3713_v17, 0.0 }
 0x611   : > { %v7911_v18 = vsel %vm3814_vm13, %v3709_v30, %v3942_v33  ;;  %v3606_v29 = vadd.f32 %v3605_v60, %v7799_v59  ;;  %vm3822_vm15 = vcmp.ge.f32.partialorder %v3715_v53, 0.0  ;;  %v3950_v51 = vmul.f32 0.2, %v3715_v53 }
 0x612   : > { %v3609_v3 = vpop.f32.mrf.mxu0  ;;  %v5662_v23 = vpack.c.bf16 %v7911_v18, %v7909_v34  ;;  %v3717_v42 = vadd.f32 %v7804_v54, %v3604_v27  ;;  %v7919_v25 = vsel %vm3821_vm14, %v3713_v17, %v3949_v0  ;;  %v4717_v30 = vmax.f32 %v7831_v5, %v7812_v26 }
 0x613   : > { %v3719_v39 = vadd.f32 %v7810_v62, %v3606_v29  ;;  %v3610_v28 = vadd.f32 %v3609_v3, %v7781_v15  ;;  %v7923_v45 = vsel %vm3822_vm15, %v3715_v53, %v3950_v51  ;;  %v4738_v17 = vmax.f32 %v7841_v7, %v7815_v50 }
 0x614   : > { %v3611_v22 = vpop.f32.mrf.mxu0  ;;  %4550 = vst [vmem:[%s7303_s18 + $0xf8] sm:$0xff] %v5662_v23  ;;  %vm3829_vm0 = vcmp.ge.f32.partialorder %v3717_v42, 0.0  ;;  %v3957_v38 = vmul.f32 0.2, %v3717_v42  ;;  %v5666_v54 = vpack.c.bf16 %v7923_v45, %v7919_v25 }
 0x615   : > { %v3612_v58 = vadd.f32 %v3611_v22, %v7799_v59  ;;  %vm3830_vm1 = vcmp.ge.f32.partialorder %v3719_v39, 0.0  ;;  %v3958_v62 = vmul.f32 0.2, %v3719_v39  ;;  %v3723_v57 = vadd.f32 %v7821_v12, %v3610_v28 }
 0x616   : > { %v3613_v36 = vpop.f32.mrf.mxu0  ;;  %4554 = vst [vmem:[%s7303_s18 + $0x118] sm:$0xff] %v5666_v54  ;;  %v7935_v44 = vsel %vm3829_vm0, %v3717_v42, %v3957_v38  ;;  %v4718_v12 = vmax.f32 %v4717_v30, %v7863_v37  ;;  %v4739_v29 = vmax.f32 %v4738_v17, %v7865_v41 }
 0x617   : > { %v3725_v6 = vadd.f32 %v7839_v49, %v3612_v58  ;;  %v3614_v35 = vadd.f32 %v3613_v36, %v7781_v15  ;;  %v7937_v33 = vsel %vm3830_vm1, %v3719_v39, %v3958_v62  ;;  %vm3837_vm2 = vcmp.ge.f32.partialorder %v3723_v57, 0.0  ;;  %v3738_v49 = vpop.f32.mrf.mxu1 }
 0x618   : > { %v3615_v14 = vpop.f32.mrf.mxu0  ;;  %v3965_v60 = vmul.f32 0.2, %v3723_v57  ;;  %v5670_v0 = vpack.c.bf16 %v7937_v33, %v7935_v44  ;;  %v4719_v28 = vmax.f32 %v4718_v12, %v7883_v52  ;;  %v4740_v58 = vmax.f32 %v4739_v29, %v7885_v32 }
 0x619   : > { %vm3838_vm3 = vcmp.ge.f32.partialorder %v3725_v6, 0.0  ;;  %v3966_v53 = vmul.f32 0.2, %v3725_v6  ;;  %v3727_v3 = vadd.f32 %v7861_v2, %v3614_v35  ;;  %v3616_v23 = vadd.f32 %v3615_v14, %v7799_v59 }
 0x61a   : > { %v3619_v27 = vpop.f32.mrf.mxu0  ;;  %4558 = vst [vmem:[%s7303_s18 + $0x138] sm:$0xff] %v5670_v0  ;;  %v7947_v42 = vsel %vm3837_vm2, %v3723_v57, %v3965_v60  ;;  %v3742_v57 = vpop.f32.mrf.mxu1  ;;  %v4720_v17 = vmax.f32 %v4719_v28, %v7896_v4  ;;  %v4741_v35 = vmax.f32 %v4740_v58, %v7902_v47 }
 0x61b   : > { %v3620_v51 = vadd.f32 %v3619_v27, %v7781_v15  ;;  %v7949_v39 = vsel %vm3838_vm3, %v3725_v6, %v3966_v53  ;;  %v3973_v36 = vmul.f32 0.2, %v3727_v3  ;;  %v3729_v2 = vadd.f32 %v7881_v31, %v3616_v23 }
 0x61c   : > { %v3621_v22 = vpop.f32.mrf.mxu0  ;;  %v5674_v38 = vpack.c.bf16 %v7949_v39, %v7947_v42  ;;  %vm3845_vm4 = vcmp.ge.f32.partialorder %v3727_v3, 0.0  ;;  %v4721_v12 = vmax.f32 %v4720_v17, %v7909_v34  ;;  %v4742_v53 = vmax.f32 %v4741_v35, %v7911_v18 }
 0x61d   : > { %v3733_v54 = vadd.f32 %v7900_v40, %v3620_v51  ;;  %v3622_v62 = vadd.f32 %v3621_v22, %v7799_v59  ;;  %vm3846_vm5 = vcmp.ge.f32.partialorder %v3729_v2, 0.0  ;;  %v3974_v14 = vmul.f32 0.2, %v3729_v2  ;;  %v3744_v22 = vpop.f32.mrf.mxu1 }
 0x61e   : > { %v3623_v30 = vpop.f32.mrf.mxu0  ;;  %4562 = vst [vmem:[%s7303_s18 + $0x158] sm:$0xff] %v5674_v38  ;;  %v7965_v27 = vsel %vm3845_vm4, %v3727_v3, %v3973_v36  ;;  %v4743_v58 = vmax.f32 %v4742_v53, %v7923_v45  ;;  %v3562_v17 = vadd.f32 %v7776_v1, %v7799_v59 }
 0x61f   : > { %v3624_v6 = vadd.f32 %v3623_v30, %v7781_v15  ;;  %v3735_v31 = vadd.f32 %v3734_v10, %v3622_v62  ;;  %v7967_v29 = vsel %vm3846_vm5, %v3729_v2, %v3974_v14  ;;  %v3981_v23 = vmul.f32 0.2, %v3733_v54  ;;  %v3746_v14 = vpop.f32.mrf.mxu1 }
 0x620   : > { %v3625_v60 = vpop.f32.mrf.mxu0  ;;  %v5678_v28 = vpack.c.bf16 %v7967_v29, %v7965_v27  ;;  %vm3853_vm6 = vcmp.ge.f32.partialorder %v3733_v54, 0.0  ;;  %v3560_v10 = vadd.f32 %v7770_v56, %v7781_v15 }
 0x621   : > { %v3737_v0 = vadd.f32 %v3736_v43, %v3624_v6  ;;  %v3626_v40 = vadd.f32 %v3625_v60, %v7799_v59  ;;  %vm3854_vm7 = vcmp.ge.f32.partialorder %v3735_v31, 0.0  ;;  %v4722_v43 = vmax.f32 %v4721_v12, %v7919_v25 }
 0x622   : > { %v3629_v51 = vpop.f32.mrf.mxu0  ;;  %v3982_v38 = vmul.f32 0.2, %v3735_v31  ;;  %4566 = vst [vmem:[%s7303_s18 + $0x178] sm:$0xff] %v5678_v28  ;;  %v7980_v6 = vsel %vm3853_vm6, %v3733_v54, %v3981_v23  ;;  %v4744_v12 = vmax.f32 %v4743_v58, %v7937_v33 }
 0x623   : > { %v3989_v36 = vmul.f32 0.2, %v3737_v0  ;;  %v3739_v2 = vadd.f32 %v3738_v49, %v3626_v40  ;;  %v3630_v62 = vadd.f32 %v3629_v51, %v7781_v15  ;;  %vm3861_vm8 = vcmp.ge.f32.partialorder %v3737_v0, 0.0 }
 0x624   : > { %v3631_v3 = vpop.f32.mrf.mxu0  ;;  %v7982_v56 = vsel %vm3854_vm7, %v3735_v31, %v3982_v38  ;;  %v4723_v60 = vmax.f32 %v4722_v43, %v7935_v44  ;;  %v4745_v23 = vmax.f32 %v4744_v12, %v7949_v39 }
 0x625   : > { %v3632_v30 = vadd.f32 %v3631_v3, %v7799_v59  ;;  %v5682_v49 = vpack.c.bf16 %v7982_v56, %v7980_v6  ;;  %vm3862_vm9 = vcmp.ge.f32.partialorder %v3739_v2, 0.0  ;;  %v3990_v40 = vmul.f32 0.2, %v3739_v2 }
 0x626   : > { %v3633_v35 = vpop.f32.mrf.mxu0  ;;  %v3743_v53 = vadd.f32 %v3742_v57, %v3630_v62  ;;  %v4724_v31 = vmax.f32 %v4723_v60, %v7947_v42  ;;  %v7992_v28 = vsel %vm3861_vm8, %v3737_v0, %v3989_v36  ;;  %v3564_v3 = vadd.f32 %v7786_v55, %v7781_v15 }
 0x627   : > { %v3745_v51 = vadd.f32 %v3744_v22, %v3632_v30  ;;  %v3634_v1 = vadd.f32 %v3633_v35, %v7781_v15  ;;  %4570 = vst [vmem:[%s7303_s18 + $0x198] sm:$0xff] %v5682_v49  ;;  %v7995_v58 = vsel %vm3862_vm9, %v3739_v2, %v3990_v40  ;;  %v3748_v22 = vpop.f32.mrf.mxu1  ;;  %v4746_v36 = vmax.f32 %v4745_v23, %v7967_v29 }
 0x628   : > { %v3635_v54 = vpop.f32.mrf.mxu0  ;;  %vm3869_vm10 = vcmp.ge.f32.partialorder %v3743_v53, 0.0  ;;  %v3997_v38 = vmul.f32 0.2, %v3743_v53  ;;  %v5686_v62 = vpack.c.bf16 %v7995_v58, %v7992_v28  ;;  %v4725_v0 = vmax.f32 %v4724_v31, %v7965_v27 }
 0x629   : > { %v3636_v43 = vadd.f32 %v3635_v54, %v7799_v59  ;;  %vm3870_vm11 = vcmp.ge.f32.partialorder %v3745_v51, 0.0  ;;  %v3998_v30 = vmul.f32 0.2, %v3745_v51  ;;  %v3747_v35 = vadd.f32 %v3746_v14, %v3634_v1 }
 0x62a   : > { %v3672_v57 = vpop.f32.mrf.mxu0  ;;  %4574 = vst [vmem:[%s7303_s18 + $0x1b8] sm:$0xff] %v5686_v62  ;;  %v8004_v49 = vsel %vm3869_vm10, %v3743_v53, %v3997_v38  ;;  %v3566_v55 = vadd.f32 %v7792_v46, %v7799_v59  ;;  %v4747_v31 = vmax.f32 %v4746_v36, %v7982_v56 }
 0x62b   : > { %v3749_v60 = vadd.f32 %v3748_v22, %v3636_v43  ;;  %v3673_v2 = vadd.f32 %v3672_v57, %v3560_v10  ;;  %v8006_v40 = vsel %vm3870_vm11, %v3745_v51, %v3998_v30  ;;  %vm3877_vm12 = vcmp.ge.f32.partialorder %v3747_v35, 0.0 }
 0x62c   : > { %v3674_v12 = vpop.f32.mrf.mxu0  ;;  %v4005_v15 = vmul.f32 0.2, %v3747_v35  ;;  %v5690_v14 = vpack.c.bf16 %v8006_v40, %v8004_v49  ;;  %v4726_v10 = vmax.f32 %v4725_v0, %v7980_v6  ;;  %v4748_v57 = vmax.f32 %v4747_v31, %v7995_v58 }
 0x62d   : > { %vm3878_vm13 = vcmp.ge.f32.partialorder %v3749_v60, 0.0  ;;  %v4006_v1 = vmul.f32 0.2, %v3749_v60  ;;  %v3885_v23 = vmul.f32 0.2, %v3673_v2  ;;  %v3675_v53 = vadd.f32 %v3674_v12, %v3562_v17 }
 0x62e   : > { %v3676_v54 = vpop.f32.mrf.mxu0  ;;  %4578 = vst [vmem:[%s7303_s18 + $0x1d8] sm:$0xff] %v5690_v14  ;;  %v8015_v51 = vsel %vm3877_vm12, %v3747_v35, %v4005_v15  ;;  %vm3757_vm14 = vcmp.ge.f32.partialorder %v3673_v2, 0.0  ;;  %v4727_v38 = vmax.f32 %v4726_v10, %v7992_v28  ;;  %v4749_v0 = vmax.f32 %v4748_v57, %v8006_v40 }
 0x62f   : > { %v8017_v43 = vsel %vm3878_vm13, %v3749_v60, %v4006_v1  ;;  %v3677_v46 = vadd.f32 %v3676_v54, %v3564_v3  ;;  %vm3758_vm15 = vcmp.ge.f32.partialorder %v3675_v53, 0.0  ;;  %v3886_v17 = vmul.f32 0.2, %v3675_v53 }
 0x630   : > { %v3678_v59 = vpop.f32.mrf.mxu0  ;;  %v5694_v22 = vpack.c.bf16 %v8017_v43, %v8015_v51  ;;  %v4728_v35 = vmax.f32 %v4727_v38, %v8004_v49  ;;  %v4013_v3 = vsel %vm3757_vm14, %v3673_v2, %v3885_v23 }
 0x631   : > { %vm3765_vm0 = vcmp.ge.f32.partialorder %v3677_v46, 0.0  ;;  %v3893_v62 = vmul.f32 0.2, %v3677_v46  ;;  %v3679_v30 = vadd.f32 %v3678_v59, %v3566_v55  ;;  %v4014_v36 = vsel %vm3758_vm15, %v3675_v53, %v3886_v17 }
 0x632   : > { %4582 = vst [vmem:[%s7303_s18 + $0x1f8] sm:$0xff] %v5694_v22  ;;  %v4729_v15 = vmax.f32 %v4728_v35, %v8015_v51  ;;  %v5634_v14 = vpack.c.bf16 %v4014_v36, %v4013_v3  ;;  %v4750_v55 = vmax.f32 %v4749_v0, %v8017_v43 }
 0x633   : > { %v4021_v60 = vsel %vm3765_vm0, %v3677_v46, %v3893_v62  ;;  %vm3766_vm1 = vcmp.ge.f32.partialorder %v3679_v30, 0.0  ;;  %v3894_v12 = vmul.f32 0.2, %v3679_v30 }
 0x634   : > { %v4716_v1 = vmax.f32 %v4013_v3, %v4021_v60  ;;  %v4945_v54 = vadd.f32 %v4021_v60, %v4013_v3  ;;  %4522 = vst [vmem:[%s7303_s18 + $0x18] sm:$0xff] %v5634_v14 }
 0x635   : > { %v4022_v10 = vsel %vm3766_vm1, %v3679_v30, %v3894_v12 }
 0x636   : > { %v4730_v2 = vmax.f32 %v4729_v15, %v4716_v1  ;;  %v4946_v31 = vadd.f32 %v4945_v54, %v7812_v26  ;;  %v5638_v23 = vpack.c.bf16 %v4022_v10, %v4021_v60  ;;  %v4737_v53 = vmax.f32 %v4014_v36, %v4022_v10 }
 0x637   : > { %v4966_v46 = vadd.f32 %v4022_v10, %v4014_v36 }
 0x638   : > { %v4947_v59 = vadd.f32 %v4946_v31, %v7831_v5  ;;  %4526 = vst [vmem:[%s7303_s18 + $0x38] sm:$0xff] %v5638_v23  ;;  %v4751_v38 = vmax.f32 %v4750_v55, %v4737_v53  ;;  %v4731_v57 = vrot.slane %v4730_v2, 4 }
 0x639   : > { %v4967_v22 = vadd.f32 %v4966_v46, %v7815_v50 }
 0x63a   : > { %6208 = shalt.err (!%p6205_p12)
}
 0x63b   : > { %s6209_s18 = scalar_lea.hbm %s8033_s27, 8192  ;;  %s6213_s25 = scalar_lea.hbm %s8204_s13, 16384 }
 0x63c   : > { %p6210_p2 = scmp.ne.s32.totalorder %s8033_s27, %s6209_s18  ;;  %p6214_p5 = scmp.lt.s32.totalorder %s8033_s27, %s8204_s13 }
 0x63d   : > { %p6215_p10 = scmp.lt.s32.totalorder %s6213_s25, %s6209_s18 }
 0x63e   : > { %p6211_p1 = pnand %p6210_p2, %p6479_p4 }
 0x63f   : > { %p6216_p11 = por %p6215_p10, %p6214_p5 }
 0x640   : > { %p6212_p3 = pneg %p6211_p1 }
 0x642   : > { %p6217_p13 = pnand %p6216_p11, %p6212_p3 }
 0x644   : > { %6220 = shalt.err (!%p6217_p13)
}
 0x645   : > { %s6352_s1 = smov 512   ;;  %s6353_s23 = smov 32   ;;  %v4948_v26 = vadd.f32 %v4947_v59, %v7863_v37  ;;  %v4732_v50 = vmax.f32 %v4730_v2, %v4731_v57  ;;  %v4752_v5 = vrot.slane %v4751_v38, 4  ;;  %v4968_v17 = vadd.f32 %v4967_v22, %v7841_v7 }
 0x646   : > { %s8291_s26 = scalar_lea.sflag [#allocation4], %s7276_s17  ;;  %v4806_v13 = vrot.slane %v4798_v21, %v7622_v9  ;;  %s8225_s30 = sshll.u32 %s6331_s21, 7 }
 0x647   : > { %5950 = dma.vmem_to_hbm [thread:$0]  (%p6479_p4), %s8035_s20, 8192, %s8033_s27, %s8291_s26, %s6352_s1, %s6352_s1, %s6353_s23   ;;  %v4949_v62 = vadd.f32 %v4948_v26, %v7883_v52  ;;  %v4733_v30 = vrot.slane %v4732_v50, 2  ;;  %v4753_v35 = vmax.f32 %v4751_v38, %v4752_v5  ;;  %v4969_v0 = vadd.f32 %v4968_v17, %v7865_v41 }
 0x648   : > { %s8226_s20 = sshll.u32 %s7276_s17, 3  ;;  %s5052_s27 = sand.u32 1, %s6467_s24  }
 0x649   : > { %v4950_v3 = vadd.f32 %v4949_v62, %v7896_v4  ;;  %v4734_v36 = vmax.f32 %v4732_v50, %v4733_v30  ;;  %v4754_v60 = vrot.slane %v4753_v35, 2  ;;  %v4970_v12 = vadd.f32 %v4969_v0, %v7885_v32  ;;  %s598_s18 = scalar_lea.vmem [#allocation11], %s8226_s20  ;;  %s8107_s29 = scalar_lea.hbm %s8205_s14, %s8225_s30 }
 0x64a   : > { %s5093_s22 = sshll.u32 %s598_s18, 4  ;;  %s8113_s24 = scalar_lea.sflag [#allocation12], %s5052_s27  ;;  %s8109_s22 = int_to_ptr.vmem [resolvable:$true] %s5093_s22 }
 0x64b   : > { %v4951_v15 = vadd.f32 %v4950_v3, %v7909_v34  ;;  %v4735_v14 = vrot.slane %v4734_v36, 1  ;;  %v4755_v37 = vmax.f32 %v4753_v35, %v4754_v60  ;;  %v4971_v1 = vadd.f32 %v4970_v12, %v7902_v47  ;;  %s6221_s1 = scalar_lea.vmem %s8109_s22, 128  ;;  %s6354_s23 = smov [#allocation11]  }
 0x64c   : > { %v4790_v47 = vrot.slane %v4768_v19, %v7622_v9  ;;  %p6222_p0 = scmp.ne.s32.totalorder %s8109_s22, %s6221_s1  ;;  %s6225_s26 = sshll.u32 %s6354_s23, 4  ;;  %s6226_s26 = int_to_ptr.vmem [resolvable:$false] %s6225_s26 }
 0x64d   : > { %v4952_v7 = vadd.f32 %v4951_v15, %v7919_v25  ;;  %v4756_v52 = vrot.slane %v4755_v37, 1  ;;  %v4972_v54 = vadd.f32 %v4971_v1, %v7911_v18  ;;  %v4736_v55 = vmax.f32 %v4734_v36, %v4735_v14  ;;  %s6227_s16 = scalar_lea.vmem %s6226_s26, 256  ;;  %p6228_p9 = scmp.lt.s32.totalorder %s8109_s22, %s6226_s26 }
 0x64e   : > { %p6223_p6 = pnand %p6222_p0, %p6479_p4  ;;  %p6229_p12 = scmp.lt.s32.totalorder %s6227_s16, %s6221_s1 }
 0x64f   : > { %v4953_v41 = vadd.f32 %v4952_v7, %v7935_v44  ;;  %v4757_v4 = vmax.f32 %v4755_v37, %v4756_v52  ;;  %v4973_v10 = vadd.f32 %v4972_v54, %v7923_v45 }
 0x650   : > { %p6224_p7 = pneg %p6223_p6  ;;  %p6230_p2 = por %p6229_p12, %p6228_p9 }
 0x651   : > { %v4954_v32 = vadd.f32 %v4953_v41, %v7947_v42  ;;  %v4769_v34 = vcombine.low %v4736_v55, %v4757_v4  ;;  %v4974_v2 = vadd.f32 %v4973_v10, %v7937_v33 }
 0x652   : > { %p6231_p1 = pnand %p6230_p2, %p6224_p7 }
 0x653   : > { %v4955_v18 = vadd.f32 %v4954_v32, %v7965_v27  ;;  %v4797_v25 = vrot.slane %v4769_v34, %v7622_v9  ;;  %v4975_v44 = vadd.f32 %v4974_v2, %v7949_v39 }
 0x655   : > { %v4956_v45 = vadd.f32 %v4955_v18, %v7980_v6  ;;  %v4799_v42 = vcombine.low %v4790_v47, %v4797_v25  ;;  %v4976_v31 = vadd.f32 %v4975_v44, %v7967_v29 }
 0x657   : > { %v4957_v33 = vadd.f32 %v4956_v45, %v7992_v28  ;;  %v4813_v24 = vrot.slane %v4799_v42, %v7622_v9  ;;  %v4977_v19 = vadd.f32 %v4976_v31, %v7982_v56 }
 0x659   : > { %v4958_v39 = vadd.f32 %v4957_v33, %v8004_v49  ;;  %v4814_v27 = vcombine.low %v4806_v13, %v4813_v24  ;;  %v4978_v29 = vadd.f32 %v4977_v19, %v7995_v58 }
 0x65b   : > { %v4959_v48 = vadd.f32 %v4958_v39, %v8015_v51  ;;  %v4979_v63 = vadd.f32 %v4978_v29, %v8006_v40  ;;  %4817 = vst [vmem:[%s598_s18] sm:$0xff] %v4814_v27 }
 0x65d   : > { %v4960_v21 = vrot.slane %v4959_v48, 4 }
 0x65e   : > { %6234 = shalt.err (!%p6231_p1)
}
 0x65f   : > { %s6235_s27 = scalar_lea.hbm %s8107_s29, 128  ;;  %s6239_s23 = scalar_lea.hbm %s8205_s14, 256 }
 0x660   : > { %p6236_p3 = scmp.ne.s32.totalorder %s8107_s29, %s6235_s27  ;;  %p6240_p11 = scmp.lt.s32.totalorder %s8107_s29, %s8205_s14 }
 0x661   : > { %p6241_p13 = scmp.lt.s32.totalorder %s6239_s23, %s6235_s27 }
 0x662   : > { %p6237_p5 = pnand %p6236_p3, %p6479_p4 }
 0x663   : > { %p6242_p0 = por %p6241_p13, %p6240_p11 }
 0x664   : > { %p6238_p10 = pneg %p6237_p5 }
 0x666   : > { %p6243_p6 = pnand %p6242_p0, %p6238_p10 }
 0x668   : > { %6246 = shalt.err (!%p6243_p6)
}
 0x669   : > { %5951 = dma.vmem_to_hbm [thread:$0]  (%p6479_p4), %s8109_s22, 128, %s8107_s29, %s8113_s24   ;;  %v4980_v6 = vadd.f32 %v4979_v63, %v8017_v43  ;;  %v4961_v56 = vadd.f32 %v4960_v21, %v4959_v48  ;;  %v5019_v43 = vrot.slane %v4997_v16, %v7622_v9  ;;  %v8292_v50 = vcombine.low %v7683_v8, %v7692_v11 }
 0x66a   : > { %s8293_s20 = sshll.u32 %s7276_s17, 3  ;;  %s8294_s29 = sshll.u32 %s6331_s21, 7 }
 0x66b   : > { %v4981_v28 = vrot.slane %v4980_v6, 4  ;;  %v4962_v58 = vrot.slane %v4961_v56, 2  ;;  %v5035_v5 = vrot.slane %v8292_v50, %v7622_v9  ;;  %s605_s30 = scalar_lea.vmem [#allocation13], %s8293_s20  ;;  %s5106_s16 = scalar_lea.hbm %s8206_s15, %s8294_s29 }
 0x66c   : > { %s5108_s22 = sshll.u32 %s605_s30, 4  ;;  %s6355_s18 = smov [#allocation13]   ;;  %s5109_s22 = int_to_ptr.vmem [resolvable:$true] %s5108_s22 }
 0x66d   : > { %v4982_v49 = vadd.f32 %v4981_v28, %v4980_v6  ;;  %v4963_v40 = vadd.f32 %v4962_v58, %v4961_v56  ;;  %s6247_s27 = scalar_lea.vmem %s5109_s22, 128  ;;  %s6251_s25 = sshll.u32 %s6355_s18, 4  ;;  %s6252_s25 = int_to_ptr.vmem [resolvable:$false] %s6251_s25 }
 0x66e   : > { %p6248_p7 = scmp.ne.s32.totalorder %s5109_s22, %s6247_s27  ;;  %s6253_s23 = scalar_lea.vmem %s6252_s25, 256 }
 0x66f   : > { %v4983_v51 = vrot.slane %v4982_v49, 2  ;;  %v4964_v23 = vrot.slane %v4963_v40, 1  ;;  %p6254_p2 = scmp.lt.s32.totalorder %s5109_s22, %s6252_s25  ;;  %p6255_p1 = scmp.lt.s32.totalorder %s6253_s23, %s6247_s27 }
 0x670   : > { %p6249_p9 = pnand %p6248_p7, %p6479_p4 }
 0x671   : > { %v4984_v53 = vadd.f32 %v4983_v51, %v4982_v49  ;;  %v4965_v59 = vadd.f32 %v4964_v23, %v4963_v40  ;;  %p6256_p3 = por %p6255_p1, %p6254_p2 }
 0x672   : > { %p6250_p12 = pneg %p6249_p9 }
 0x673   : > { %v4985_v46 = vrot.slane %v4984_v53, 1 }
 0x674   : > { %p6257_p5 = pnand %p6256_p3, %p6250_p12 }
 0x675   : > { %v4986_v38 = vadd.f32 %v4985_v46, %v4984_v53 }
 0x677   : > { %v4998_v57 = vcombine.low %v4965_v59, %v4986_v38 }
 0x679   : > { %v5026_v22 = vrot.slane %v4998_v57, %v7622_v9 }
 0x67b   : > { %v5028_v26 = vcombine.low %v5019_v43, %v5026_v22 }
 0x67d   : > { %v5042_v17 = vrot.slane %v5028_v26, %v7622_v9 }
 0x67f   : > { %v5043_v62 = vcombine.low %v5035_v5, %v5042_v17 }
 0x681   : > { %5046 = vst [vmem:[%s605_s30] sm:$0xff] %v5043_v62 }
 0x682   : > { %6260 = shalt.err (!%p6257_p5)
}
 0x683   : > { %s6261_s21 = scalar_lea.hbm %s5106_s16, 128  ;;  %s6265_s30 = scalar_lea.hbm %s8206_s15, 256 }
 0x684   : > { %p6262_p10 = scmp.ne.s32.totalorder %s5106_s16, %s6261_s21  ;;  %p6266_p0 = scmp.lt.s32.totalorder %s5106_s16, %s8206_s15 }
 0x685   : > { %p6267_p6 = scmp.lt.s32.totalorder %s6265_s30, %s6261_s21 }
 0x686   : > { %p6263_p11 = pnand %p6262_p10, %p6479_p4 }
 0x687   : > { %p6268_p7 = por %p6267_p6, %p6266_p0 }
 0x688   : > { %p6264_p13 = pneg %p6263_p11 }
 0x68a   : > { %p6269_p9 = pnand %p6268_p7, %p6264_p13 }
 0x68c   : > { %6272 = shalt.err (!%p6269_p9)
}
 0x68d   : > { %5952 = dma.vmem_to_hbm [thread:$0]  (%p6479_p4), %s5109_s22, 128, %s5106_s16, %s8113_s24  }
 0x68e PF: > { %s8295_s26 = sld [smem:[#allocation22_spill]] }
 0x68f   : > { %s8296_s27 = sld [smem:[#allocation19_spill]] }
 0x694   : > { %p5987_p12 = scmp.ge.s32.totalorder %s8295_s26, 2 }
 0x695   : > { %s5120_s25 = sand.u32 1, %s8296_s27  }
 0x696   : > { %p5970_p2 = pnand %p5987_p12, %p6488_p8  ;;  %s5121_s23 = scalar_lea.sflag [#allocation4], %s5120_s25 }
 0x698   : > { %p5971_p1 = pneg %p5970_p2 }
 0x69a   : > { %6310 = dma.done.wait (%p5971_p1), %s5121_s23, 8192  }
 0x69b   : > { %6312 = vsyncadd (%p5971_p1), %s5121_s23, 4294959104  ;;  %s8298_s21 = sadd.s32 4294967294, %s8295_s26  }
 0x69c   : > { %s5129_s17 = sand.u32 1, %s8298_s21  }
 0x69d   : > { %s5130_s20 = scalar_lea.sflag [#allocation12], %s5129_s17 }
 0x69e   : > { %6314 = dma.done.wait (%p5971_p1), %s5130_s20, 256  }
 0x69f   : > { %6316 = vsyncadd (%p5971_p1), %s5130_s20, 4294967040  ;;  %s35_s23 = sadd.s32 1, %s8295_s26   ;;  %s8299_s28 = sld [smem:[#allocation20_spill]] }
 0x6a0   : > { %p32_p4 = scmp.ge.s32.totalorder %s35_s23, 4   ;;  %s8300_s20 = sld [smem:[#allocation25_spill]] }
 0x6a1   : > { %s8301_s21 = sld [smem:[#allocation21_spill]]  ;;  %s8303_s18 = smov %s6323_s19 }
 0x6a2   : > { %s8302_s22 = sld [smem:[#allocation23_spill]]  ;;  %34 = sbr.rel (!%p32_p4) target bundleno = 11 (0xb), region = 160 }
 0x6a5   : > { %s8304_s19 = smov %s8299_s28 }
 0x6a7   :  { %5144 = vsyncpa [#allocation3], 1 }
 0x6a8   :  { %5146 = vsyncpa [#allocation3 + $0x1], 1 }
 0x6a9   :  { %5147 = vsyncpa [#allocation6], 1 }
 0x6aa   :  { %5148 = vsyncpa [#allocation9], 1 }
 0x6ab   :  { %5149 = vsyncpa [#allocation4], 1 }
 0x6ac   :  { %5151 = vsyncpa [#allocation4 + $0x1], 1 }
 0x6ad   :  { %5152 = vsyncpa [#allocation12], 1 }
 0x6ae   :  { %5154 = vsyncpa [#allocation12 + $0x1], 1 }

</bundles_post_ra>
